<compile_context>
chip_gen: v5e
topology: v5e:2x2
jax: 0.10.0
libtpu: 0.0.40
codegen_flags: <defaults>
</compile_context>

<pallas_src>
import jax
import jax.numpy as jnp
from jax.experimental import pallas as pl
from jax.experimental.pallas import tpu as pltpu


def _round_up(x, m):
    return (x + m - 1) // m * m


# ----------------------------------------------------------------------------
# Pallas kernels (feature-major: tensors are (D, N), batch on lanes)
# ----------------------------------------------------------------------------
def _gru_ln_compute(msg_ref, wih_ref, whh_ref, bi_ref, bh_ref, g_ref, b_ref):
    """GRU reducer (PyTorch nn.GRU semantics, gates r/z/n) + LayerNorm.

    msg_ref : (L, D, TN) timestep-major, feature-major mailbox tile.
      h0      = msg[L-1]          ("current_input" in the reducer)
      inputs  = msg[0 .. L-2]     processed in order
    Returns the LayerNorm-affine features (D, TN) in f32.
    """
    L, D, TN = msg_ref.shape

    wih = wih_ref[...]          # (3D, D)  PyTorch weight_ih layout  [r|z|n]
    whh = whh_ref[...]          # (3D, D)  PyTorch weight_hh layout
    bi = bi_ref[...]            # (3D, 1)  = [bir+bhr | biz+bhz | bin]
    bh = bh_ref[...]            # (3D, 1)  = [0 | 0 | bhn]

    h = msg_ref[L - 1].astype(jnp.float32)                  # (D, TN) initial state
    for t in range(L - 1):                                  # static unrolled loop
        x_t = msg_ref[t].astype(jnp.float32)                # (D, TN)
        gi = jnp.dot(wih, x_t, preferred_element_type=jnp.float32) + bi   # (3D, TN)
        gh = jnp.dot(whh, h, preferred_element_type=jnp.float32) + bh     # (3D, TN)
        rz = jax.nn.sigmoid(gi[:2 * D] + gh[:2 * D])        # (2D, TN) one EUP pass
        r = rz[:D]
        z = rz[D:]
        n = jnp.tanh(gi[2 * D:] + r * gh[2 * D:])
        h = (1.0 - z) * n + z * h

    # Dropout(p=0.0) is the identity -> skipped.
    # LayerNorm over the feature (sublane) axis.
    mean = jnp.mean(h, axis=0, keepdims=True)               # (1, TN)
    var = jnp.mean((h - mean) ** 2, axis=0, keepdims=True)
    hn = (h - mean) * jax.lax.rsqrt(var + 1e-5)
    return hn * g_ref[...] + b_ref[...]                     # (D, TN)


def _gru_ln_kernel(msg_ref, wih, whh, bi, bh, g, b, ft_ref):
    ft_ref[...] = _gru_ln_compute(msg_ref, wih, whh, bi, bh, g, b)


def _gru_ln_fc_kernel(msg_ref, wih, whh, bi, bh, g, b, fcw, fcb, out_ref):
    ft = _gru_ln_compute(msg_ref, wih, whh, bi, bh, g, b)   # (D, TN)
    out_ref[...] = (jnp.dot(fcw[...], ft,
                            preferred_element_type=jnp.float32) + fcb[...])


# ----------------------------------------------------------------------------
# Pallas wrappers
# ----------------------------------------------------------------------------
def _pad_nodes(msg):
    """Pad the node (lane) axis of an (L, D, N) mailbox and pick tile_n."""
    L, D, N = msg.shape
    n128 = _round_up(N, 128)
    tile_n = min(n128, 256)
    n_pad = _round_up(n128, tile_n)
    if n_pad != N:
        msg = jnp.pad(msg, ((0, 0), (0, 0), (0, n_pad - N)))
    return msg, tile_n, n_pad


def _common_in_specs(L, D, tile_n):
    return [
        pl.BlockSpec((L, D, tile_n), lambda i: (0, 0, i)),   # mailbox tile
        pl.BlockSpec((3 * D, D), lambda i: (0, 0)),          # w_ih
        pl.BlockSpec((3 * D, D), lambda i: (0, 0)),          # w_hh
        pl.BlockSpec((3 * D, 1), lambda i: (0, 0)),          # fused input bias
        pl.BlockSpec((3 * D, 1), lambda i: (0, 0)),          # hidden bias (bhn)
        pl.BlockSpec((D, 1), lambda i: (0, 0)),              # ln gamma
        pl.BlockSpec((D, 1), lambda i: (0, 0)),              # ln beta
    ]


def gru_reduce_ln(msg, p):
    """Intermediate block: GRU reducer + LayerNorm.

    msg: (L, D, N) feature-major -> features (D, N) feature-major.
    """
    L, D, N = msg.shape
    msg, tile_n, n_pad = _pad_nodes(msg)
    out = pl.pallas_call(
        _gru_ln_kernel,
        out_shape=jax.ShapeDtypeStruct((D, n_pad), jnp.float32),
        grid_spec=pltpu.PrefetchScalarGridSpec(
            num_scalar_prefetch=0,
            grid=(n_pad // tile_n,),
            in_specs=_common_in_specs(L, D, tile_n),
            out_specs=pl.BlockSpec((D, tile_n), lambda i: (0, i)),
        ),
        compiler_params=pltpu.CompilerParams(
            dimension_semantics=("parallel",)),
    )(msg, p["w_ih"], p["w_hh"], p["bi"], p["bh"], p["ln_g"], p["ln_b"])
    return out[:, :N]


def gru_reduce_ln_fc(msg, p):
    """Final block: GRU reducer + LayerNorm + fused classifier.

    msg: (L, D, N) -> logits (N, n_classes).  Logits are computed lane-dense
    as a (c_pad, N_pad) slab inside the kernel and sliced / transposed here.
    """
    L, D, N = msg.shape
    c_pad = p["c_pad"]
    msg, tile_n, n_pad = _pad_nodes(msg)
    out = pl.pallas_call(
        _gru_ln_fc_kernel,
        out_shape=jax.ShapeDtypeStruct((c_pad, n_pad), jnp.float32),
        grid_spec=pltpu.PrefetchScalarGridSpec(
            num_scalar_prefetch=0,
            grid=(n_pad // tile_n,),
            in_specs=_common_in_specs(L, D, tile_n)
            + [pl.BlockSpec((c_pad, D), lambda i: (0, 0)),
               pl.BlockSpec((c_pad, 1), lambda i: (0, 0))],
            out_specs=pl.BlockSpec((c_pad, tile_n), lambda i: (0, i)),
        ),
        compiler_params=pltpu.CompilerParams(
            dimension_semantics=("parallel",)),
    )(msg, p["w_ih"], p["w_hh"], p["bi"], p["bh"], p["ln_g"], p["ln_b"],
      p["fcw_pad"], p["fcb_pad"])
    return out[:p["n_classes"], :N].T


# ----------------------------------------------------------------------------
# Model forward (glue = embedding lookup, mailbox gather, block loop)
# ----------------------------------------------------------------------------
def gte_program_classification(blocks, params):
    """blocks: list of (token_ids, mailbox_idx) dense stand-ins for DGL blocks.
       token_ids   : (N_tok,)   int32 token ids (src for block 0, dst after)
       mailbox_idx : (N_dst, L) int32 indices into the block's node features
    """
    n_blocks = len(blocks)
    rst_t = None
    for idx, (token_ids, mailbox_idx) in enumerate(blocks):
        last = idx == n_blocks - 1
        feat_t = jnp.take(params["emb_t"], token_ids, axis=1)       # (D, N_tok)
        if idx == 0:
            node_feat_t = feat_t                                     # first layer
        else:
            node_feat_t = jnp.concatenate([feat_t, rst_t], axis=1)  # cat(dst, rst)
        # dense mailbox gather -> timestep-major, feature-major (L, D, N_dst)
        msg = jnp.transpose(jnp.take(node_feat_t, mailbox_idx.T, axis=1),
                            (1, 0, 2))
        if msg.shape[0] == 1:
            rst_t = msg[0]                # reducer short-circuit (no GRU / LN)
            if last:
                # TODO(synk): rare L==1 final block -- plain-JAX classifier.
                return (jnp.dot(params["fcw_full"], rst_t)
                        + params["fcb_col"]).T
        else:
            if last:
                return gru_reduce_ln_fc(msg, params)    # fused GRU+LN+Linear
            rst_t = gru_reduce_ln(msg, params)
    return rst_t


# ----------------------------------------------------------------------------
# Pure-JAX reference (PyTorch-layout weights, for correctness check)
# ----------------------------------------------------------------------------
def _ref_gru_ln(msg, raw):
    N, L, D = msg.shape
    h = msg[:, -1, :]
    for t in range(L - 1):
        x = msg[:, t, :]
        gi = x @ raw["w_ih"].T + raw["b_ih"]
        gh = h @ raw["w_hh"].T + raw["b_hh"]
        i_r, i_z, i_n = jnp.split(gi, 3, axis=1)
        h_r, h_z, h_n = jnp.split(gh, 3, axis=1)
        r = jax.nn.sigmoid(i_r + h_r)
        z = jax.nn.sigmoid(i_z + h_z)
        n = jnp.tanh(i_n + r * h_n)
        h = (1.0 - z) * n + z * h
    mean = jnp.mean(h, axis=-1, keepdims=True)
    var = jnp.mean((h - mean) ** 2, axis=-1, keepdims=True)
    hn = (h - mean) * jax.lax.rsqrt(var + 1e-5)
    return hn * raw["ln_g"] + raw["ln_b"]


def _ref_forward(blocks, raw):
    rst = None
    for idx, (token_ids, mailbox_idx) in enumerate(blocks):
        feat = raw["emb"][token_ids]
        node_feat = feat if idx == 0 else jnp.concatenate([feat, rst], axis=0)
        msg = node_feat[mailbox_idx]                   # (N_dst, L, D)
        rst = msg[:, 0, :] if msg.shape[1] == 1 else _ref_gru_ln(msg, raw)
    return rst @ raw["fcw"].T + raw["fcb"]


# ----------------------------------------------------------------------------
# Parameter init (PyTorch layout) + packing for the Pallas kernels
# ----------------------------------------------------------------------------
def init_raw_params(key, hidden_dim, vocab_size, n_classes):
    D = hidden_dim
    k = 1.0 / float(D) ** 0.5
    ks = jax.random.split(key, 7)
    return {
        # nn.Embedding(vocab_size, D), kaiming_normal_
        "emb": jax.random.normal(ks[0], (vocab_size, D), jnp.float32)
               * (2.0 / D) ** 0.5,
        # nn.GRU(D, D, 1): weight_ih/hh (3D, D), gate order [r|z|n]
        "w_ih": jax.random.uniform(ks[1], (3 * D, D), jnp.float32, -k, k),
        "w_hh": jax.random.uniform(ks[2], (3 * D, D), jnp.float32, -k, k),
        "b_ih": jax.random.uniform(ks[3], (3 * D,), jnp.float32, -k, k),
        "b_hh": jax.random.uniform(ks[4], (3 * D,), jnp.float32, -k, k),
        # nn.LayerNorm(D)
        "ln_g": jnp.ones((D,), jnp.float32),
        "ln_b": jnp.zeros((D,), jnp.float32),
        # nn.Linear(D, n_classes)
        "fcw": jax.random.uniform(ks[5], (n_classes, D), jnp.float32, -k, k),
        "fcb": jax.random.uniform(ks[6], (n_classes,), jnp.float32, -k, k),
    }


def pack_params(raw):
    D = raw["w_ih"].shape[1]
    C = raw["fcw"].shape[0]
    c_pad = _round_up(C, 8)
    b_ih, b_hh = raw["b_ih"], raw["b_hh"]
    # fused input-side bias [bir+bhr | biz+bhz | bin]; hidden-side [0 | 0 | bhn]
    bi = jnp.concatenate([b_ih[0 * D:1 * D] + b_hh[0 * D:1 * D],
                          b_ih[1 * D:2 * D] + b_hh[1 * D:2 * D],
                          b_ih[2 * D:3 * D]])
    bh = jnp.concatenate([jnp.zeros((2 * D,), jnp.float32),
                          b_hh[2 * D:3 * D]])
    return {
        "emb_t": raw["emb"].T,                               # (D, V) feature-major
        "w_ih": raw["w_ih"],                                 # (3D, D) native layout
        "w_hh": raw["w_hh"],
        "bi": bi.reshape(3 * D, 1),
        "bh": bh.reshape(3 * D, 1),
        "ln_g": raw["ln_g"].reshape(D, 1),
        "ln_b": raw["ln_b"].reshape(D, 1),
        # classifier, sublane-padded for the fused feature-major kernel
        "fcw_pad": jnp.pad(raw["fcw"], ((0, c_pad - C), (0, 0))),
        "fcb_pad": jnp.pad(raw["fcb"], (0, c_pad - C)).reshape(c_pad, 1),
        # unpadded copies for the L==1 plain-JAX fallback
        "fcw_full": raw["fcw"],
        "fcb_col": raw["fcb"].reshape(C, 1),
        "n_classes": C,
        "c_pad": c_pad,
    }


# ----------------------------------------------------------------------------
if __name__ == "__main__":
    hidden_dim, vocab_size, n_classes = 32, 50, 4
    L = 8            # fixed in-degree (mailbox length) per dst node
    key = jax.random.PRNGKey(0)
    kp, k0, k1, k2, k3 = jax.random.split(key, 5)

    raw = init_raw_params(kp, hidden_dim, vocab_size, n_classes)
    params = pack_params(raw)

    # Block 0: 24 src nodes, 16 dst nodes.
    tok0 = jax.random.randint(k0, (24,), 0, vocab_size, jnp.int32)
    mbox0 = jax.random.randint(k1, (16, L), 0, 24, jnp.int32)
    # Block 1: 8 dst-embedding nodes, node_feat = cat(emb(tok1), rst0) -> 24 rows.
    tok1 = jax.random.randint(k2, (8,), 0, vocab_size, jnp.int32)
    mbox1 = jax.random.randint(k3, (8, L), 0, 24, jnp.int32)

    blocks = [(tok0, mbox0), (tok1, mbox1)]

    out = gte_program_classification(blocks, params)
    out = jax.block_until_ready(out)

    ref = _ref_forward(blocks, raw)
    assert out.shape == (8, n_classes), out.shape
    assert jnp.allclose(out, ref, rtol=1e-3, atol=1e-3), (
        float(jnp.max(jnp.abs(out - ref))))

    print("KERNEL_OK")
</pallas_src>

<mosaic_0001>
module attributes {stable_mosaic.version = 11 : i64} {
  func.func @_gru_ln_kernel(%arg0: i32, %arg1: memref<8x32x128xf32, #tpu.memory_space<vmem>>, %arg2: memref<96x32xf32, #tpu.memory_space<vmem>>, %arg3: memref<96x32xf32, #tpu.memory_space<vmem>>, %arg4: memref<96x1xf32, #tpu.memory_space<vmem>>, %arg5: memref<96x1xf32, #tpu.memory_space<vmem>>, %arg6: memref<32x1xf32, #tpu.memory_space<vmem>>, %arg7: memref<32x1xf32, #tpu.memory_space<vmem>>, %arg8: memref<32x128xf32, #tpu.memory_space<vmem>>) attributes {dimension_semantics = [#tpu.dimension_semantics<parallel>], iteration_bounds = array<i64: 1>, scalar_prefetch = 0 : i64, scratch_operands = 0 : i64, tpu.core_type = #tpu.core_type<tc>, window_params = [{transform_indices = @transform_0, window_bounds = array<i64: 8, 32, 128>}, {pipeline_mode = #tpu.pipeline_mode<synchronous>, transform_indices = @transform_1, window_bounds = array<i64: 96, 32>}, {pipeline_mode = #tpu.pipeline_mode<synchronous>, transform_indices = @transform_2, window_bounds = array<i64: 96, 32>}, {pipeline_mode = #tpu.pipeline_mode<synchronous>, transform_indices = @transform_3, window_bounds = array<i64: 96, 1>}, {pipeline_mode = #tpu.pipeline_mode<synchronous>, transform_indices = @transform_4, window_bounds = array<i64: 96, 1>}, {pipeline_mode = #tpu.pipeline_mode<synchronous>, transform_indices = @transform_5, window_bounds = array<i64: 32, 1>}, {pipeline_mode = #tpu.pipeline_mode<synchronous>, transform_indices = @transform_6, window_bounds = array<i64: 32, 1>}, {transform_indices = @transform_7, window_bounds = array<i64: 32, 128>}]} {
    %c0 = arith.constant 0 : index
    %c0_0 = arith.constant 0 : index
    %0 = vector.load %arg2[%c0, %c0_0] : memref<96x32xf32, #tpu.memory_space<vmem>>, vector<96x32xf32>
    %c0_1 = arith.constant 0 : index
    %c0_2 = arith.constant 0 : index
    %1 = vector.load %arg3[%c0_1, %c0_2] : memref<96x32xf32, #tpu.memory_space<vmem>>, vector<96x32xf32>
    %c0_3 = arith.constant 0 : index
    %c0_4 = arith.constant 0 : index
    %2 = vector.load %arg4[%c0_3, %c0_4] : memref<96x1xf32, #tpu.memory_space<vmem>>, vector<96x1xf32>
    %c0_5 = arith.constant 0 : index
    %c0_6 = arith.constant 0 : index
    %3 = vector.load %arg5[%c0_5, %c0_6] : memref<96x1xf32, #tpu.memory_space<vmem>>, vector<96x1xf32>
    %c7 = arith.constant 7 : index
    %c0_7 = arith.constant 0 : index
    %c0_8 = arith.constant 0 : index
    %4 = vector.load %arg1[%c7, %c0_7, %c0_8] : memref<8x32x128xf32, #tpu.memory_space<vmem>>, vector<1x32x128xf32>
    %5 = vector.shape_cast %4 : vector<1x32x128xf32> to vector<32x128xf32>
    %c0_9 = arith.constant 0 : index
    %c0_10 = arith.constant 0 : index
    %c0_11 = arith.constant 0 : index
    %6 = vector.load %arg1[%c0_9, %c0_10, %c0_11] : memref<8x32x128xf32, #tpu.memory_space<vmem>>, vector<1x32x128xf32>
    %7 = vector.shape_cast %6 : vector<1x32x128xf32> to vector<32x128xf32>
    %cst = arith.constant dense<0.000000e+00> : vector<96x128xf32>
    %8 = tpu.matmul %0, %7, %cst {dimension_numbers = #tpu.dot_dimension_numbers<[1], [0], [0], [1], [0, 0, 1, 1], [], []>} : vector<96x32xf32>, vector<32x128xf32>, vector<96x128xf32> -> vector<96x128xf32>
    %9 = vector.broadcast %2 : vector<96x1xf32> to vector<96x128xf32>
    %10 = arith.addf %8, %9 : vector<96x128xf32>
    %cst_12 = arith.constant dense<0.000000e+00> : vector<96x128xf32>
    %11 = tpu.matmul %1, %5, %cst_12 {dimension_numbers = #tpu.dot_dimension_numbers<[1], [0], [0], [1], [0, 0, 1, 1], [], []>} : vector<96x32xf32>, vector<32x128xf32>, vector<96x128xf32> -> vector<96x128xf32>
    %12 = vector.broadcast %3 : vector<96x1xf32> to vector<96x128xf32>
    %13 = arith.addf %11, %12 : vector<96x128xf32>
    %14 = vector.extract_strided_slice %10 {offsets = [0, 0], sizes = [64, 128], strides = [1, 1]} : vector<96x128xf32> to vector<64x128xf32>
    %15 = vector.extract_strided_slice %13 {offsets = [0, 0], sizes = [64, 128], strides = [1, 1]} : vector<96x128xf32> to vector<64x128xf32>
    %16 = arith.addf %14, %15 : vector<64x128xf32>
    %17 = arith.negf %16 : vector<64x128xf32>
    %18 = math.exp %17 : vector<64x128xf32>
    %cst_13 = arith.constant 1.000000e+00 : f32
    %19 = vector.broadcast %cst_13 : f32 to vector<64x128xf32>
    %20 = arith.addf %19, %18 : vector<64x128xf32>
    %21 = arith.divf %19, %20 : vector<64x128xf32>
    %22 = vector.extract_strided_slice %21 {offsets = [0, 0], sizes = [32, 128], strides = [1, 1]} : vector<64x128xf32> to vector<32x128xf32>
    %23 = vector.extract_strided_slice %21 {offsets = [32, 0], sizes = [32, 128], strides = [1, 1]} : vector<64x128xf32> to vector<32x128xf32>
    %24 = vector.extract_strided_slice %10 {offsets = [64, 0], sizes = [32, 128], strides = [1, 1]} : vector<96x128xf32> to vector<32x128xf32>
    %25 = vector.extract_strided_slice %13 {offsets = [64, 0], sizes = [32, 128], strides = [1, 1]} : vector<96x128xf32> to vector<32x128xf32>
    %26 = arith.mulf %22, %25 : vector<32x128xf32>
    %27 = arith.addf %24, %26 : vector<32x128xf32>
    %28 = math.tanh %27 : vector<32x128xf32>
    %cst_14 = arith.constant 1.000000e+00 : f32
    %29 = vector.broadcast %cst_14 : f32 to vector<32x128xf32>
    %30 = arith.subf %29, %23 : vector<32x128xf32>
    %31 = arith.mulf %30, %28 : vector<32x128xf32>
    %32 = arith.mulf %23, %5 : vector<32x128xf32>
    %33 = arith.addf %31, %32 : vector<32x128xf32>
    %c1 = arith.constant 1 : index
    %c0_15 = arith.constant 0 : index
    %c0_16 = arith.constant 0 : index
    %34 = vector.load %arg1[%c1, %c0_15, %c0_16] : memref<8x32x128xf32, #tpu.memory_space<vmem>>, vector<1x32x128xf32>
    %35 = vector.shape_cast %34 : vector<1x32x128xf32> to vector<32x128xf32>
    %cst_17 = arith.constant dense<0.000000e+00> : vector<96x128xf32>
    %36 = tpu.matmul %0, %35, %cst_17 {dimension_numbers = #tpu.dot_dimension_numbers<[1], [0], [0], [1], [0, 0, 1, 1], [], []>} : vector<96x32xf32>, vector<32x128xf32>, vector<96x128xf32> -> vector<96x128xf32>
    %37 = vector.broadcast %2 : vector<96x1xf32> to vector<96x128xf32>
    %38 = arith.addf %36, %37 : vector<96x128xf32>
    %cst_18 = arith.constant dense<0.000000e+00> : vector<96x128xf32>
    %39 = tpu.matmul %1, %33, %cst_18 {dimension_numbers = #tpu.dot_dimension_numbers<[1], [0], [0], [1], [0, 0, 1, 1], [], []>} : vector<96x32xf32>, vector<32x128xf32>, vector<96x128xf32> -> vector<96x128xf32>
    %40 = vector.broadcast %3 : vector<96x1xf32> to vector<96x128xf32>
    %41 = arith.addf %39, %40 : vector<96x128xf32>
    %42 = vector.extract_strided_slice %38 {offsets = [0, 0], sizes = [64, 128], strides = [1, 1]} : vector<96x128xf32> to vector<64x128xf32>
    %43 = vector.extract_strided_slice %41 {offsets = [0, 0], sizes = [64, 128], strides = [1, 1]} : vector<96x128xf32> to vector<64x128xf32>
    %44 = arith.addf %42, %43 : vector<64x128xf32>
    %45 = arith.negf %44 : vector<64x128xf32>
    %46 = math.exp %45 : vector<64x128xf32>
    %cst_19 = arith.constant 1.000000e+00 : f32
    %47 = vector.broadcast %cst_19 : f32 to vector<64x128xf32>
    %48 = arith.addf %47, %46 : vector<64x128xf32>
    %49 = arith.divf %47, %48 : vector<64x128xf32>
    %50 = vector.extract_strided_slice %49 {offsets = [0, 0], sizes = [32, 128], strides = [1, 1]} : vector<64x128xf32> to vector<32x128xf32>
    %51 = vector.extract_strided_slice %49 {offsets = [32, 0], sizes = [32, 128], strides = [1, 1]} : vector<64x128xf32> to vector<32x128xf32>
    %52 = vector.extract_strided_slice %38 {offsets = [64, 0], sizes = [32, 128], strides = [1, 1]} : vector<96x128xf32> to vector<32x128xf32>
    %53 = vector.extract_strided_slice %41 {offsets = [64, 0], sizes = [32, 128], strides = [1, 1]} : vector<96x128xf32> to vector<32x128xf32>
    %54 = arith.mulf %50, %53 : vector<32x128xf32>
    %55 = arith.addf %52, %54 : vector<32x128xf32>
    %56 = math.tanh %55 : vector<32x128xf32>
    %cst_20 = arith.constant 1.000000e+00 : f32
    %57 = vector.broadcast %cst_20 : f32 to vector<32x128xf32>
    %58 = arith.subf %57, %51 : vector<32x128xf32>
    %59 = arith.mulf %58, %56 : vector<32x128xf32>
    %60 = arith.mulf %51, %33 : vector<32x128xf32>
    %61 = arith.addf %59, %60 : vector<32x128xf32>
    %c2 = arith.constant 2 : index
    %c0_21 = arith.constant 0 : index
    %c0_22 = arith.constant 0 : index
    %62 = vector.load %arg1[%c2, %c0_21, %c0_22] : memref<8x32x128xf32, #tpu.memory_space<vmem>>, vector<1x32x128xf32>
    %63 = vector.shape_cast %62 : vector<1x32x128xf32> to vector<32x128xf32>
    %cst_23 = arith.constant dense<0.000000e+00> : vector<96x128xf32>
    %64 = tpu.matmul %0, %63, %cst_23 {dimension_numbers = #tpu.dot_dimension_numbers<[1], [0], [0], [1], [0, 0, 1, 1], [], []>} : vector<96x32xf32>, vector<32x128xf32>, vector<96x128xf32> -> vector<96x128xf32>
    %65 = vector.broadcast %2 : vector<96x1xf32> to vector<96x128xf32>
    %66 = arith.addf %64, %65 : vector<96x128xf32>
    %cst_24 = arith.constant dense<0.000000e+00> : vector<96x128xf32>
    %67 = tpu.matmul %1, %61, %cst_24 {dimension_numbers = #tpu.dot_dimension_numbers<[1], [0], [0], [1], [0, 0, 1, 1], [], []>} : vector<96x32xf32>, vector<32x128xf32>, vector<96x128xf32> -> vector<96x128xf32>
    %68 = vector.broadcast %3 : vector<96x1xf32> to vector<96x128xf32>
    %69 = arith.addf %67, %68 : vector<96x128xf32>
    %70 = vector.extract_strided_slice %66 {offsets = [0, 0], sizes = [64, 128], strides = [1, 1]} : vector<96x128xf32> to vector<64x128xf32>
    %71 = vector.extract_strided_slice %69 {offsets = [0, 0], sizes = [64, 128], strides = [1, 1]} : vector<96x128xf32> to vector<64x128xf32>
    %72 = arith.addf %70, %71 : vector<64x128xf32>
    %73 = arith.negf %72 : vector<64x128xf32>
    %74 = math.exp %73 : vector<64x128xf32>
    %cst_25 = arith.constant 1.000000e+00 : f32
    %75 = vector.broadcast %cst_25 : f32 to vector<64x128xf32>
    %76 = arith.addf %75, %74 : vector<64x128xf32>
    %77 = arith.divf %75, %76 : vector<64x128xf32>
    %78 = vector.extract_strided_slice %77 {offsets = [0, 0], sizes = [32, 128], strides = [1, 1]} : vector<64x128xf32> to vector<32x128xf32>
    %79 = vector.extract_strided_slice %77 {offsets = [32, 0], sizes = [32, 128], strides = [1, 1]} : vector<64x128xf32> to vector<32x128xf32>
    %80 = vector.extract_strided_slice %66 {offsets = [64, 0], sizes = [32, 128], strides = [1, 1]} : vector<96x128xf32> to vector<32x128xf32>
    %81 = vector.extract_strided_slice %69 {offsets = [64, 0], sizes = [32, 128], strides = [1, 1]} : vector<96x128xf32> to vector<32x128xf32>
    %82 = arith.mulf %78, %81 : vector<32x128xf32>
    %83 = arith.addf %80, %82 : vector<32x128xf32>
    %84 = math.tanh %83 : vector<32x128xf32>
    %cst_26 = arith.constant 1.000000e+00 : f32
    %85 = vector.broadcast %cst_26 : f32 to vector<32x128xf32>
    %86 = arith.subf %85, %79 : vector<32x128xf32>
    %87 = arith.mulf %86, %84 : vector<32x128xf32>
    %88 = arith.mulf %79, %61 : vector<32x128xf32>
    %89 = arith.addf %87, %88 : vector<32x128xf32>
    %c3 = arith.constant 3 : index
    %c0_27 = arith.constant 0 : index
    %c0_28 = arith.constant 0 : index
    %90 = vector.load %arg1[%c3, %c0_27, %c0_28] : memref<8x32x128xf32, #tpu.memory_space<vmem>>, vector<1x32x128xf32>
    %91 = vector.shape_cast %90 : vector<1x32x128xf32> to vector<32x128xf32>
    %cst_29 = arith.constant dense<0.000000e+00> : vector<96x128xf32>
    %92 = tpu.matmul %0, %91, %cst_29 {dimension_numbers = #tpu.dot_dimension_numbers<[1], [0], [0], [1], [0, 0, 1, 1], [], []>} : vector<96x32xf32>, vector<32x128xf32>, vector<96x128xf32> -> vector<96x128xf32>
    %93 = vector.broadcast %2 : vector<96x1xf32> to vector<96x128xf32>
    %94 = arith.addf %92, %93 : vector<96x128xf32>
    %cst_30 = arith.constant dense<0.000000e+00> : vector<96x128xf32>
    %95 = tpu.matmul %1, %89, %cst_30 {dimension_numbers = #tpu.dot_dimension_numbers<[1], [0], [0], [1], [0, 0, 1, 1], [], []>} : vector<96x32xf32>, vector<32x128xf32>, vector<96x128xf32> -> vector<96x128xf32>
    %96 = vector.broadcast %3 : vector<96x1xf32> to vector<96x128xf32>
    %97 = arith.addf %95, %96 : vector<96x128xf32>
    %98 = vector.extract_strided_slice %94 {offsets = [0, 0], sizes = [64, 128], strides = [1, 1]} : vector<96x128xf32> to vector<64x128xf32>
    %99 = vector.extract_strided_slice %97 {offsets = [0, 0], sizes = [64, 128], strides = [1, 1]} : vector<96x128xf32> to vector<64x128xf32>
    %100 = arith.addf %98, %99 : vector<64x128xf32>
    %101 = arith.negf %100 : vector<64x128xf32>
    %102 = math.exp %101 : vector<64x128xf32>
    %cst_31 = arith.constant 1.000000e+00 : f32
    %103 = vector.broadcast %cst_31 : f32 to vector<64x128xf32>
    %104 = arith.addf %103, %102 : vector<64x128xf32>
    %105 = arith.divf %103, %104 : vector<64x128xf32>
    %106 = vector.extract_strided_slice %105 {offsets = [0, 0], sizes = [32, 128], strides = [1, 1]} : vector<64x128xf32> to vector<32x128xf32>
    %107 = vector.extract_strided_slice %105 {offsets = [32, 0], sizes = [32, 128], strides = [1, 1]} : vector<64x128xf32> to vector<32x128xf32>
    %108 = vector.extract_strided_slice %94 {offsets = [64, 0], sizes = [32, 128], strides = [1, 1]} : vector<96x128xf32> to vector<32x128xf32>
    %109 = vector.extract_strided_slice %97 {offsets = [64, 0], sizes = [32, 128], strides = [1, 1]} : vector<96x128xf32> to vector<32x128xf32>
    %110 = arith.mulf %106, %109 : vector<32x128xf32>
    %111 = arith.addf %108, %110 : vector<32x128xf32>
    %112 = math.tanh %111 : vector<32x128xf32>
    %cst_32 = arith.constant 1.000000e+00 : f32
    %113 = vector.broadcast %cst_32 : f32 to vector<32x128xf32>
    %114 = arith.subf %113, %107 : vector<32x128xf32>
    %115 = arith.mulf %114, %112 : vector<32x128xf32>
    %116 = arith.mulf %107, %89 : vector<32x128xf32>
    %117 = arith.addf %115, %116 : vector<32x128xf32>
    %c4 = arith.constant 4 : index
    %c0_33 = arith.constant 0 : index
    %c0_34 = arith.constant 0 : index
    %118 = vector.load %arg1[%c4, %c0_33, %c0_34] : memref<8x32x128xf32, #tpu.memory_space<vmem>>, vector<1x32x128xf32>
    %119 = vector.shape_cast %118 : vector<1x32x128xf32> to vector<32x128xf32>
    %cst_35 = arith.constant dense<0.000000e+00> : vector<96x128xf32>
    %120 = tpu.matmul %0, %119, %cst_35 {dimension_numbers = #tpu.dot_dimension_numbers<[1], [0], [0], [1], [0, 0, 1, 1], [], []>} : vector<96x32xf32>, vector<32x128xf32>, vector<96x128xf32> -> vector<96x128xf32>
    %121 = vector.broadcast %2 : vector<96x1xf32> to vector<96x128xf32>
    %122 = arith.addf %120, %121 : vector<96x128xf32>
    %cst_36 = arith.constant dense<0.000000e+00> : vector<96x128xf32>
    %123 = tpu.matmul %1, %117, %cst_36 {dimension_numbers = #tpu.dot_dimension_numbers<[1], [0], [0], [1], [0, 0, 1, 1], [], []>} : vector<96x32xf32>, vector<32x128xf32>, vector<96x128xf32> -> vector<96x128xf32>
    %124 = vector.broadcast %3 : vector<96x1xf32> to vector<96x128xf32>
    %125 = arith.addf %123, %124 : vector<96x128xf32>
    %126 = vector.extract_strided_slice %122 {offsets = [0, 0], sizes = [64, 128], strides = [1, 1]} : vector<96x128xf32> to vector<64x128xf32>
    %127 = vector.extract_strided_slice %125 {offsets = [0, 0], sizes = [64, 128], strides = [1, 1]} : vector<96x128xf32> to vector<64x128xf32>
    %128 = arith.addf %126, %127 : vector<64x128xf32>
    %129 = arith.negf %128 : vector<64x128xf32>
    %130 = math.exp %129 : vector<64x128xf32>
    %cst_37 = arith.constant 1.000000e+00 : f32
    %131 = vector.broadcast %cst_37 : f32 to vector<64x128xf32>
    %132 = arith.addf %131, %130 : vector<64x128xf32>
    %133 = arith.divf %131, %132 : vector<64x128xf32>
    %134 = vector.extract_strided_slice %133 {offsets = [0, 0], sizes = [32, 128], strides = [1, 1]} : vector<64x128xf32> to vector<32x128xf32>
    %135 = vector.extract_strided_slice %133 {offsets = [32, 0], sizes = [32, 128], strides = [1, 1]} : vector<64x128xf32> to vector<32x128xf32>
    %136 = vector.extract_strided_slice %122 {offsets = [64, 0], sizes = [32, 128], strides = [1, 1]} : vector<96x128xf32> to vector<32x128xf32>
    %137 = vector.extract_strided_slice %125 {offsets = [64, 0], sizes = [32, 128], strides = [1, 1]} : vector<96x128xf32> to vector<32x128xf32>
    %138 = arith.mulf %134, %137 : vector<32x128xf32>
    %139 = arith.addf %136, %138 : vector<32x128xf32>
    %140 = math.tanh %139 : vector<32x128xf32>
    %cst_38 = arith.constant 1.000000e+00 : f32
    %141 = vector.broadcast %cst_38 : f32 to vector<32x128xf32>
    %142 = arith.subf %141, %135 : vector<32x128xf32>
    %143 = arith.mulf %142, %140 : vector<32x128xf32>
    %144 = arith.mulf %135, %117 : vector<32x128xf32>
    %145 = arith.addf %143, %144 : vector<32x128xf32>
    %c5 = arith.constant 5 : index
    %c0_39 = arith.constant 0 : index
    %c0_40 = arith.constant 0 : index
    %146 = vector.load %arg1[%c5, %c0_39, %c0_40] : memref<8x32x128xf32, #tpu.memory_space<vmem>>, vector<1x32x128xf32>
    %147 = vector.shape_cast %146 : vector<1x32x128xf32> to vector<32x128xf32>
    %cst_41 = arith.constant dense<0.000000e+00> : vector<96x128xf32>
    %148 = tpu.matmul %0, %147, %cst_41 {dimension_numbers = #tpu.dot_dimension_numbers<[1], [0], [0], [1], [0, 0, 1, 1], [], []>} : vector<96x32xf32>, vector<32x128xf32>, vector<96x128xf32> -> vector<96x128xf32>
    %149 = vector.broadcast %2 : vector<96x1xf32> to vector<96x128xf32>
    %150 = arith.addf %148, %149 : vector<96x128xf32>
    %cst_42 = arith.constant dense<0.000000e+00> : vector<96x128xf32>
    %151 = tpu.matmul %1, %145, %cst_42 {dimension_numbers = #tpu.dot_dimension_numbers<[1], [0], [0], [1], [0, 0, 1, 1], [], []>} : vector<96x32xf32>, vector<32x128xf32>, vector<96x128xf32> -> vector<96x128xf32>
    %152 = vector.broadcast %3 : vector<96x1xf32> to vector<96x128xf32>
    %153 = arith.addf %151, %152 : vector<96x128xf32>
    %154 = vector.extract_strided_slice %150 {offsets = [0, 0], sizes = [64, 128], strides = [1, 1]} : vector<96x128xf32> to vector<64x128xf32>
    %155 = vector.extract_strided_slice %153 {offsets = [0, 0], sizes = [64, 128], strides = [1, 1]} : vector<96x128xf32> to vector<64x128xf32>
    %156 = arith.addf %154, %155 : vector<64x128xf32>
    %157 = arith.negf %156 : vector<64x128xf32>
    %158 = math.exp %157 : vector<64x128xf32>
    %cst_43 = arith.constant 1.000000e+00 : f32
    %159 = vector.broadcast %cst_43 : f32 to vector<64x128xf32>
    %160 = arith.addf %159, %158 : vector<64x128xf32>
    %161 = arith.divf %159, %160 : vector<64x128xf32>
    %162 = vector.extract_strided_slice %161 {offsets = [0, 0], sizes = [32, 128], strides = [1, 1]} : vector<64x128xf32> to vector<32x128xf32>
    %163 = vector.extract_strided_slice %161 {offsets = [32, 0], sizes = [32, 128], strides = [1, 1]} : vector<64x128xf32> to vector<32x128xf32>
    %164 = vector.extract_strided_slice %150 {offsets = [64, 0], sizes = [32, 128], strides = [1, 1]} : vector<96x128xf32> to vector<32x128xf32>
    %165 = vector.extract_strided_slice %153 {offsets = [64, 0], sizes = [32, 128], strides = [1, 1]} : vector<96x128xf32> to vector<32x128xf32>
    %166 = arith.mulf %162, %165 : vector<32x128xf32>
    %167 = arith.addf %164, %166 : vector<32x128xf32>
    %168 = math.tanh %167 : vector<32x128xf32>
    %cst_44 = arith.constant 1.000000e+00 : f32
    %169 = vector.broadcast %cst_44 : f32 to vector<32x128xf32>
    %170 = arith.subf %169, %163 : vector<32x128xf32>
    %171 = arith.mulf %170, %168 : vector<32x128xf32>
    %172 = arith.mulf %163, %145 : vector<32x128xf32>
    %173 = arith.addf %171, %172 : vector<32x128xf32>
    %c6 = arith.constant 6 : index
    %c0_45 = arith.constant 0 : index
    %c0_46 = arith.constant 0 : index
    %174 = vector.load %arg1[%c6, %c0_45, %c0_46] : memref<8x32x128xf32, #tpu.memory_space<vmem>>, vector<1x32x128xf32>
    %175 = vector.shape_cast %174 : vector<1x32x128xf32> to vector<32x128xf32>
    %cst_47 = arith.constant dense<0.000000e+00> : vector<96x128xf32>
    %176 = tpu.matmul %0, %175, %cst_47 {dimension_numbers = #tpu.dot_dimension_numbers<[1], [0], [0], [1], [0, 0, 1, 1], [], []>} : vector<96x32xf32>, vector<32x128xf32>, vector<96x128xf32> -> vector<96x128xf32>
    %177 = vector.broadcast %2 : vector<96x1xf32> to vector<96x128xf32>
    %178 = arith.addf %176, %177 : vector<96x128xf32>
    %cst_48 = arith.constant dense<0.000000e+00> : vector<96x128xf32>
    %179 = tpu.matmul %1, %173, %cst_48 {dimension_numbers = #tpu.dot_dimension_numbers<[1], [0], [0], [1], [0, 0, 1, 1], [], []>} : vector<96x32xf32>, vector<32x128xf32>, vector<96x128xf32> -> vector<96x128xf32>
    %180 = vector.broadcast %3 : vector<96x1xf32> to vector<96x128xf32>
    %181 = arith.addf %179, %180 : vector<96x128xf32>
    %182 = vector.extract_strided_slice %178 {offsets = [0, 0], sizes = [64, 128], strides = [1, 1]} : vector<96x128xf32> to vector<64x128xf32>
    %183 = vector.extract_strided_slice %181 {offsets = [0, 0], sizes = [64, 128], strides = [1, 1]} : vector<96x128xf32> to vector<64x128xf32>
    %184 = arith.addf %182, %183 : vector<64x128xf32>
    %185 = arith.negf %184 : vector<64x128xf32>
    %186 = math.exp %185 : vector<64x128xf32>
    %cst_49 = arith.constant 1.000000e+00 : f32
    %187 = vector.broadcast %cst_49 : f32 to vector<64x128xf32>
    %188 = arith.addf %187, %186 : vector<64x128xf32>
    %189 = arith.divf %187, %188 : vector<64x128xf32>
    %190 = vector.extract_strided_slice %189 {offsets = [0, 0], sizes = [32, 128], strides = [1, 1]} : vector<64x128xf32> to vector<32x128xf32>
    %191 = vector.extract_strided_slice %189 {offsets = [32, 0], sizes = [32, 128], strides = [1, 1]} : vector<64x128xf32> to vector<32x128xf32>
    %192 = vector.extract_strided_slice %178 {offsets = [64, 0], sizes = [32, 128], strides = [1, 1]} : vector<96x128xf32> to vector<32x128xf32>
    %193 = vector.extract_strided_slice %181 {offsets = [64, 0], sizes = [32, 128], strides = [1, 1]} : vector<96x128xf32> to vector<32x128xf32>
    %194 = arith.mulf %190, %193 : vector<32x128xf32>
    %195 = arith.addf %192, %194 : vector<32x128xf32>
    %196 = math.tanh %195 : vector<32x128xf32>
    %cst_50 = arith.constant 1.000000e+00 : f32
    %197 = vector.broadcast %cst_50 : f32 to vector<32x128xf32>
    %198 = arith.subf %197, %191 : vector<32x128xf32>
    %199 = arith.mulf %198, %196 : vector<32x128xf32>
    %200 = arith.mulf %191, %173 : vector<32x128xf32>
    %201 = arith.addf %199, %200 : vector<32x128xf32>
    %cst_51 = arith.constant dense<0.000000e+00> : vector<128xf32>
    %202 = vector.multi_reduction <add>, %201, %cst_51 [0] : vector<32x128xf32> to vector<128xf32>
    %203 = vector.shape_cast %202 : vector<128xf32> to vector<1x128xf32>
    %cst_52 = arith.constant 3.200000e+01 : f32
    %204 = vector.broadcast %cst_52 : f32 to vector<1x128xf32>
    %205 = arith.divf %203, %204 : vector<1x128xf32>
    %206 = vector.broadcast %205 : vector<1x128xf32> to vector<32x128xf32>
    %207 = arith.subf %201, %206 : vector<32x128xf32>
    %208 = arith.mulf %207, %207 : vector<32x128xf32>
    %cst_53 = arith.constant dense<0.000000e+00> : vector<128xf32>
    %209 = vector.multi_reduction <add>, %208, %cst_53 [0] : vector<32x128xf32> to vector<128xf32>
    %210 = vector.shape_cast %209 : vector<128xf32> to vector<1x128xf32>
    %cst_54 = arith.constant 3.200000e+01 : f32
    %211 = vector.broadcast %cst_54 : f32 to vector<1x128xf32>
    %212 = arith.divf %210, %211 : vector<1x128xf32>
    %213 = vector.broadcast %205 : vector<1x128xf32> to vector<32x128xf32>
    %214 = arith.subf %201, %213 : vector<32x128xf32>
    %cst_55 = arith.constant 9.99999974E-6 : f32
    %215 = vector.broadcast %cst_55 : f32 to vector<1x128xf32>
    %216 = arith.addf %212, %215 : vector<1x128xf32>
    %217 = math.rsqrt %216 : vector<1x128xf32>
    %218 = vector.broadcast %217 : vector<1x128xf32> to vector<32x128xf32>
    %219 = arith.mulf %214, %218 : vector<32x128xf32>
    %c0_56 = arith.constant 0 : index
    %c0_57 = arith.constant 0 : index
    %220 = vector.load %arg6[%c0_56, %c0_57] : memref<32x1xf32, #tpu.memory_space<vmem>>, vector<32x1xf32>
    %221 = vector.broadcast %220 : vector<32x1xf32> to vector<32x128xf32>
    %222 = arith.mulf %219, %221 : vector<32x128xf32>
    %c0_58 = arith.constant 0 : index
    %c0_59 = arith.constant 0 : index
    %223 = vector.load %arg7[%c0_58, %c0_59] : memref<32x1xf32, #tpu.memory_space<vmem>>, vector<32x1xf32>
    %224 = vector.broadcast %223 : vector<32x1xf32> to vector<32x128xf32>
    %225 = arith.addf %222, %224 : vector<32x128xf32>
    %c0_60 = arith.constant 0 : index
    %c0_61 = arith.constant 0 : index
    %226 = vector.load %arg8[%c0_60, %c0_61] : memref<32x128xf32, #tpu.memory_space<vmem>>, vector<32x128xf32>
    tpu.vector_store %arg8[%c0_60, %c0_61], %225 {strides = array<i32>} : memref<32x128xf32, #tpu.memory_space<vmem>>, vector<32x128xf32>,
    return
  }
  func.func @transform_0(%arg0: i32) -> (i32, i32, i32) {
    %c0_i32 = arith.constant 0 : i32
    %c0_i32_0 = arith.constant 0 : i32
    %c0_i32_1 = arith.constant 0 : i32
    return %c0_i32, %c0_i32_0, %arg0 : i32, i32, i32
  }
  func.func @transform_1(%arg0: i32) -> (i32, i32) {
    %c0_i32 = arith.constant 0 : i32
    %c0_i32_0 = arith.constant 0 : i32
    %c0_i32_1 = arith.constant 0 : i32
    return %c0_i32, %c0_i32_0 : i32, i32
  }
  func.func @transform_2(%arg0: i32) -> (i32, i32) {
    %c0_i32 = arith.constant 0 : i32
    %c0_i32_0 = arith.constant 0 : i32
    %c0_i32_1 = arith.constant 0 : i32
    return %c0_i32, %c0_i32_0 : i32, i32
  }
  func.func @transform_3(%arg0: i32) -> (i32, i32) {
    %c0_i32 = arith.constant 0 : i32
    %c0_i32_0 = arith.constant 0 : i32
    %c0_i32_1 = arith.constant 0 : i32
    return %c0_i32, %c0_i32_0 : i32, i32
  }
  func.func @transform_4(%arg0: i32) -> (i32, i32) {
    %c0_i32 = arith.constant 0 : i32
    %c0_i32_0 = arith.constant 0 : i32
    %c0_i32_1 = arith.constant 0 : i32
    return %c0_i32, %c0_i32_0 : i32, i32
  }
  func.func @transform_5(%arg0: i32) -> (i32, i32) {
    %c0_i32 = arith.constant 0 : i32
    %c0_i32_0 = arith.constant 0 : i32
    %c0_i32_1 = arith.constant 0 : i32
    return %c0_i32, %c0_i32_0 : i32, i32
  }
  func.func @transform_6(%arg0: i32) -> (i32, i32) {
    %c0_i32 = arith.constant 0 : i32
    %c0_i32_0 = arith.constant 0 : i32
    %c0_i32_1 = arith.constant 0 : i32
    return %c0_i32, %c0_i32_0 : i32, i32
  }
  func.func @transform_7(%arg0: i32) -> (i32, i32) {
    %c0_i32 = arith.constant 0 : i32
    %c0_i32_0 = arith.constant 0 : i32
    return %c0_i32, %arg0 : i32, i32
  }
}

</mosaic_0001>

<bundles_post_ra>
// kernel: tpu_custom_call.1
= control target key start
LH: loop header
LB: loop body
LE: loop exit
PB: predicated region body
PF: predicated region fallthrough
CT: control target
= control target key end

     0   :  { %12 = vsyncpa [#allocation3], 0  ;;  %s5495_s0 = inlined_call_operand.hbm [shape: f32[8,32,128], index: 0, kind: input, shape index: {}]   ;;  %s5496_s1 = inlined_call_operand.vmem [shape: f32[96,32], index: 1, kind: input, shape index: {}]   ;;  %s5497_s2 = inlined_call_operand.vmem [shape: f32[96,32], index: 2, kind: input, shape index: {}]   ;;  %s5498_s3 = inlined_call_operand.vmem [shape: f32[96,1], index: 3, kind: input, shape index: {}]   ;;  %s5499_s4 = inlined_call_operand.vmem [shape: f32[96,1], index: 4, kind: input, shape index: {}]   ;;  %s5500_s5 = inlined_call_operand.vmem [shape: f32[32,1], index: 5, kind: input, shape index: {}]   ;;  %s5501_s6 = inlined_call_operand.vmem [shape: f32[32,1], index: 6, kind: input, shape index: {}]   ;;  %s5502_s7 = inlined_call_operand.hbm [shape: f32[32,128], index: 7, kind: output, shape index: {}]  }
   0x1   :  { %13 = vsyncpa [#allocation4], 0  ;;  %s18_s26 = sshll.u32 %s5495_s0, 4  ;;  %s3112_s27 = smov [#allocation2]   ;;  %s19_s26 = int_to_ptr.hbm [resolvable:$true] %s18_s26 }
   0x2   :  { %s20_s28 = sshll.u32 %s3112_s27, 4  ;;  %s3113_s29 = smov 128   ;;  %s21_s28 = int_to_ptr.vmem [resolvable:$true] %s20_s28 }
   0x3   :  { %s3114_s30 = smov 8  }
   0x4   :  { %26 = dma.hbm_to_vmem [thread:$0]  %s19_s26, 4096, %s21_s28, [#allocation3], %s3113_s29, %s3113_s29, %s3114_s30  }
   0x5   :  { %3108 = dma.done.wait [#allocation3], 4096  }
   0x6   :  { %3109 = vsyncadd [#allocation3], 4294963200  ;;  %v3115_v0 = vmov 0   ;;  %v99_v1 = vld [vmem:[#allocation2 + $0x18] sm:$0xff]  ;;  %v69_v4 = vld [vmem:[%s5498_s3 + $0x10] sm:$0xff]  ;;  %vm160_vm0 = vcmask 261120  }
   0x7   :  { %2750 = vset.pattern.permute.xlu2 %v3115_v0  ;;  %2749 = vset.pattern.permute.xlu1 %v3115_v0  ;;  %v3164_v2 = vld [vmem:[#allocation2 + $0xf8] sm:$0xff]  ;;  %v68_v5 = vld [vmem:[%s5498_s3 + $0x8] sm:$0xff]  ;;  %v98_v6 = vld [vmem:[#allocation2 + $0x10] sm:$0xff]  ;;  %s2497_s27 = sshll.u32 %s5502_s7, 4  ;;  %s2498_s27 = int_to_ptr.hbm [resolvable:$true] %s2497_s27 }
   0x8   :  { %2748 = vset.pattern.permute.xlu0 %v3115_v0  ;;  %v70_v3 = vld [vmem:[%s5498_s3 + $0x18] sm:$0xff]  ;;  %209 = vmatpush.msra.mxu0 %v99_v1  ;;  %v3177_v7 = vld [vmem:[#allocation2 + $0xf0] sm:$0xff]  ;;  %v97_v8 = vld [vmem:[#allocation2 + $0x8] sm:$0xff] }
   0x9   :  { %2734 = vmatpush.msra.mxu2 %v99_v1  ;;  %358 = vmatpush.msra.mxu1 %v3164_v2  ;;  %v3179_v9 = vld [vmem:[#allocation2 + $0xe8] sm:$0xff]  ;;  %v96_v10 = vld [vmem:[#allocation2] sm:$0xff]  ;;  %v3195_v13 = vld [vmem:[%s5496_s1 + $0x30] sm:$0xff] }
   0xa   :  { %2738 = vmatpush.msra.mxu3 %v3164_v2  ;;  %117 = vperm.xlu0 %2748, %v70_v3   ;;  %v3183_v11 = vld [vmem:[#allocation2 + $0xe0] sm:$0xff]  ;;  %v3206_v15 = vld [vmem:[%s5497_s2 + $0x30] sm:$0xff]  ;;  %v82_v16 = vld [vmem:[%s5499_s4 + $0x18] sm:$0xff] }
   0xb   :  { %112 = vperm.xlu1 %2749, %v69_v4   ;;  %107 = vperm.xlu2 %2750, %v68_v5   ;;  %v3189_v12 = vld [vmem:[%s5496_s1] sm:$0xff]  ;;  %5586 = vst [vmem:[#allocation8_spill] sm:$0xff] %v3206_v15  ;;  %v81_v17 = vld [vmem:[%s5499_s4 + $0x10] sm:$0xff]  ;;  %v80_v18 = vld [vmem:[%s5499_s4 + $0x8] sm:$0xff] }
   0xc   :  { %210 = vmatpush.msra.mxu0 %v98_v6  ;;  %2735 = vmatpush.msra.mxu2 %v98_v6  ;;  %v3200_v14 = vld [vmem:[%s5497_s2] sm:$0xff]  ;;  %v3229_v19 = vld [vmem:[%s5496_s1 + $0x8] sm:$0xff]  ;;  %v3234_v20 = vld [vmem:[%s5496_s1 + $0x38] sm:$0xff] }
   0xd   :  { %359 = vmatpush.msra.mxu1 %v3177_v7  ;;  %2739 = vmatpush.msra.mxu3 %v3177_v7  ;;  %v3239_v21 = vld [vmem:[%s5497_s2 + $0x8] sm:$0xff]  ;;  %v3244_v22 = vld [vmem:[%s5497_s2 + $0x38] sm:$0xff]  ;;  %v67_v23 = vld [vmem:[%s5498_s3] sm:$0xff] }
   0xe   :  { %211 = vmatpush.msra.mxu0 %v97_v8  ;;  %2736 = vmatpush.msra.mxu2 %v97_v8  ;;  %5587 = vst [vmem:[#allocation9_spill] sm:$0xff] %v3244_v22  ;;  %v79_v24 = vld [vmem:[%s5499_s4] sm:$0xff]  ;;  %v74_v25 = vld [vmem:[%s5498_s3 + $0x38] sm:$0xff]  ;;  %v590_v28 = vld [vmem:[#allocation2 + $0x30] sm:$0xff] }
   0xf   :  { %360 = vmatpush.msra.mxu1 %v3179_v9  ;;  %2740 = vmatpush.msra.mxu3 %v3179_v9  ;;  %v591_v26 = vld [vmem:[#allocation2 + $0x38] sm:$0xff]  ;;  %v889_v29 = vld [vmem:[#allocation2 + $0x50] sm:$0xff]  ;;  %v589_v31 = vld [vmem:[#allocation2 + $0x28] sm:$0xff] }
  0x10   :  { %212 = vmatpush.msra.mxu0 %v96_v10  ;;  %2737 = vmatpush.msra.mxu2 %v96_v10  ;;  %v890_v27 = vld [vmem:[#allocation2 + $0x58] sm:$0xff]  ;;  %v3266_v30 = vld [vmem:[%s5496_s1 + $0x10] sm:$0xff]  ;;  %v3271_v32 = vld [vmem:[%s5496_s1 + $0x40] sm:$0xff] }
  0x11   :  { %361 = vmatpush.msra.mxu1 %v3183_v11  ;;  %2741 = vmatpush.msra.mxu3 %v3183_v11  ;;  %5588 = vst [vmem:[#allocation10_spill] sm:$0xff] %v3266_v30  ;;  %v3276_v33 = vld [vmem:[%s5497_s2 + $0x10] sm:$0xff]  ;;  %v3281_v34 = vld [vmem:[%s5497_s2 + $0x40] sm:$0xff]  ;;  %v86_v35 = vld [vmem:[%s5499_s4 + $0x38] sm:$0xff] }
  0x12   :  { %2510 = vmatmul.msk.f32.vlgmr.msra.gmra.mxu0 %vm160_vm0, %v3189_v12  ;;  %2516 = vmatmul.msk.f32.vlgmr.msra.gmra.mxu2 %vm160_vm0, %v3195_v13  ;;  %5589 = vst [vmem:[#allocation11_spill] sm:$0xff] %v3281_v34  ;;  %v73_v36 = vld [vmem:[%s5498_s3 + $0x30] sm:$0xff]  ;;  %v888_v38 = vld [vmem:[#allocation2 + $0x48] sm:$0xff]  ;;  %v588_v39 = vld [vmem:[#allocation2 + $0x20] sm:$0xff] }
  0x13   :  { %2522 = vmatmul.msk.f32.vlgmr.msra.gmra.mxu1 %vm160_vm0, %v3200_v14  ;;  %2528 = vmatmul.msk.f32.vlgmr.msra.gmra.mxu3 %vm160_vm0, %v3206_v15  ;;  %v85_v37 = vld [vmem:[%s5499_s4 + $0x30] sm:$0xff]  ;;  %v887_v40 = vld [vmem:[#allocation2 + $0x40] sm:$0xff]  ;;  %v3303_v41 = vld [vmem:[%s5496_s1 + $0x18] sm:$0xff] }
  0x14   :  { %267 = vperm.xlu0 %2748, %v82_v16   ;;  %262 = vperm.xlu1 %2749, %v81_v17   ;;  %5590 = vst [vmem:[#allocation12_spill] sm:$0xff] %v3303_v41  ;;  %v3308_v42 = vld [vmem:[%s5496_s1 + $0x48] sm:$0xff]  ;;  %v3313_v43 = vld [vmem:[%s5497_s2 + $0x18] sm:$0xff]  ;;  %v71_v47 = vld [vmem:[%s5498_s3 + $0x20] sm:$0xff] }
  0x15   :  { %257 = vperm.xlu2 %2750, %v80_v18   ;;  %604 = vmatpush.msrb.mxu2 %v591_v26  ;;  %v3318_v44 = vld [vmem:[%s5497_s2 + $0x48] sm:$0xff]  ;;  %v3340_v48 = vld [vmem:[%s5496_s1 + $0x20] sm:$0xff]  ;;  %v3345_v49 = vld [vmem:[%s5496_s1 + $0x50] sm:$0xff] }
  0x16   :  { %903 = vmatpush.msrb.mxu0 %v890_v27  ;;  %5591 = vst [vmem:[#allocation13_spill] sm:$0xff] %v3318_v44  ;;  %v72_v45 = vld [vmem:[%s5498_s3 + $0x28] sm:$0xff]  ;;  %v3350_v50 = vld [vmem:[%s5497_s2 + $0x20] sm:$0xff]  ;;  %v3355_v51 = vld [vmem:[%s5497_s2 + $0x50] sm:$0xff] }
  0x17   :  { %605 = vmatpush.msrb.mxu2 %v590_v28  ;;  %v84_v46 = vld [vmem:[%s5499_s4 + $0x28] sm:$0xff]  ;;  %5592 = vst [vmem:[#allocation14_spill] sm:$0xff] %v3355_v51  ;;  %v83_v52 = vld [vmem:[%s5499_s4 + $0x20] sm:$0xff]  ;;  %v90_v53 = vld [vmem:[%s5499_s4 + $0x58] sm:$0xff] }
  0x18   :  { %904 = vmatpush.msrb.mxu0 %v889_v29  ;;  %v78_v54 = vld [vmem:[%s5498_s3 + $0x58] sm:$0xff]  ;;  %v3377_v55 = vld [vmem:[%s5496_s1 + $0x28] sm:$0xff]  ;;  %v89_v59 = vld [vmem:[%s5499_s4 + $0x50] sm:$0xff] }
  0x19   :  { %606 = vmatpush.msrb.mxu2 %v589_v31  ;;  %v3382_v56 = vld [vmem:[%s5496_s1 + $0x58] sm:$0xff]  ;;  %v3387_v57 = vld [vmem:[%s5497_s2 + $0x28] sm:$0xff]  ;;  %v77_v60 = vld [vmem:[%s5498_s3 + $0x50] sm:$0xff] }
  0x1a   :  { %2511 = vmatmul.msk.f32.gmra.mxu0 %vm160_vm0, %v3229_v19  ;;  %2517 = vmatmul.msk.f32.gmra.mxu2 %vm160_vm0, %v3234_v20  ;;  %5593 = vst [vmem:[#allocation15_spill] sm:$0xff] %v3387_v57  ;;  %v3392_v58 = vld [vmem:[%s5497_s2 + $0x58] sm:$0xff]  ;;  %v88_v61 = vld [vmem:[%s5499_s4 + $0x48] sm:$0xff]  ;;  %v87_v63 = vld [vmem:[%s5499_s4 + $0x40] sm:$0xff] }
  0x1b   :  { %2523 = vmatmul.msk.f32.gmra.mxu1 %vm160_vm0, %v3239_v21  ;;  %2529 = vmatmul.msk.f32.gmra.mxu3 %vm160_vm0, %v3244_v22  ;;  %5594 = vst [vmem:[#allocation16_spill] sm:$0xff] %v3392_v58  ;;  %v76_v62 = vld [vmem:[%s5498_s3 + $0x48] sm:$0xff]  ;;  %v75_v0 = vld [vmem:[%s5498_s3 + $0x40] sm:$0xff]  ;;  %v2433_v4 = vld [vmem:[%s5500_s5 + $0x10] sm:$0xff] }
  0x1c   :  { %102 = vperm.xlu0 %2748, %v67_v23   ;;  %252 = vperm.xlu1 %2749, %v79_v24   ;;  %v2431_v1 = vld [vmem:[%s5500_s5] sm:$0xff]  ;;  %v2432_v3 = vld [vmem:[%s5500_s5 + $0x8] sm:$0xff]  ;;  %v2434_v5 = vld [vmem:[%s5500_s5 + $0x18] sm:$0xff] }
  0x1d   :  { %137 = vperm.xlu2 %2750, %v74_v25   ;;  %905 = vmatpush.msrb.mxu0 %v888_v38  ;;  %v2459_v6 = vld [vmem:[%s5501_s6] sm:$0xff]  ;;  %v2460_v8 = vld [vmem:[%s5501_s6 + $0x8] sm:$0xff]  ;;  %v2461_v10 = vld [vmem:[%s5501_s6 + $0x10] sm:$0xff] }
  0x1e   :  { %607 = vmatpush.msrb.mxu2 %v588_v39  ;;  %v2462_v16 = vld [vmem:[%s5501_s6 + $0x18] sm:$0xff]  ;;  %v1188_v27 = vld [vmem:[#allocation2 + $0x70] sm:$0xff]  ;;  %v1187_v29 = vld [vmem:[#allocation2 + $0x68] sm:$0xff] }
  0x1f   :  { %906 = vmatpush.msrb.mxu0 %v887_v40  ;;  %v1189_v25 = vld [vmem:[#allocation2 + $0x78] sm:$0xff]  ;;  %v1487_v28 = vld [vmem:[#allocation2 + $0x90] sm:$0xff]  ;;  %v1486_v31 = vld [vmem:[#allocation2 + $0x88] sm:$0xff] }
  0x20   :  { %v1488_v26 = vld [vmem:[#allocation2 + $0x98] sm:$0xff]  ;;  %1202 = vmatpush.msra.mxu2 %v1189_v25 }
  0x21   :  { %1501 = vmatpush.msra.mxu0 %v1488_v26 }
  0x22   :  { %2512 = vmatmul.msk.f32.gmra.mxu0 %vm160_vm0, %v3266_v30  ;;  %2518 = vmatmul.msk.f32.gmra.mxu2 %vm160_vm0, %v3271_v32 }
  0x23   :  { %2524 = vmatmul.msk.f32.gmra.mxu1 %vm160_vm0, %v3276_v33  ;;  %2530 = vmatmul.msk.f32.gmra.mxu3 %vm160_vm0, %v3281_v34 }
  0x24   :  { %287 = vperm.xlu0 %2748, %v86_v35   ;;  %132 = vperm.xlu1 %2749, %v73_v36   ;;  %v1186_v35 = vld [vmem:[#allocation2 + $0x60] sm:$0xff] }
  0x25   :  { %282 = vperm.xlu2 %2750, %v85_v37   ;;  %1203 = vmatpush.msra.mxu2 %v1188_v27  ;;  %v1485_v36 = vld [vmem:[#allocation2 + $0x80] sm:$0xff] }
  0x26   :  { %1502 = vmatpush.msra.mxu0 %v1487_v28 }
  0x27   :  { %1204 = vmatpush.msra.mxu2 %v1187_v29 }
  0x28   :  { %1503 = vmatpush.msra.mxu0 %v1486_v31 }
  0x29   :  { %1205 = vmatpush.msra.mxu2 %v1186_v35 }
  0x2a   :  { %2513 = vmatmul.msk.f32.gmra.mxu0 %vm160_vm0, %v3303_v41  ;;  %2519 = vmatmul.msk.f32.gmra.mxu2 %vm160_vm0, %v3308_v42 }
  0x2b   :  { %2525 = vmatmul.msk.f32.gmra.mxu1 %vm160_vm0, %v3313_v43  ;;  %2531 = vmatmul.msk.f32.gmra.mxu3 %vm160_vm0, %v3318_v44 }
  0x2c   :  { %127 = vperm.xlu0 %2748, %v72_v45   ;;  %277 = vperm.xlu1 %2749, %v84_v46  }
  0x2d   :  { %122 = vperm.xlu2 %2750, %v71_v47   ;;  %1504 = vmatpush.msra.mxu0 %v1485_v36 }
  0x32   :  { %2514 = vmatmul.msk.f32.gmra.mxu0 %vm160_vm0, %v3340_v48  ;;  %2520 = vmatmul.msk.f32.gmra.mxu2 %vm160_vm0, %v3345_v49 }
  0x33   :  { %2526 = vmatmul.msk.f32.gmra.mxu1 %vm160_vm0, %v3350_v50  ;;  %2532 = vmatmul.msk.f32.gmra.mxu3 %vm160_vm0, %v3355_v51 }
  0x34   :  { %272 = vperm.xlu0 %2748, %v83_v52   ;;  %307 = vperm.xlu1 %2749, %v90_v53  }
  0x35   :  { %157 = vperm.xlu2 %2750, %v78_v54  }
  0x3a   :  { %2515 = vmatmul.msk.f32.gmra.mxu0 %vm160_vm0, %v3377_v55  ;;  %2521 = vmatmul.msk.f32.gmra.mxu2 %vm160_vm0, %v3382_v56 }
  0x3b   :  { %2527 = vmatmul.msk.f32.gmra.mxu1 %vm160_vm0, %v3387_v57  ;;  %2533 = vmatmul.msk.f32.gmra.mxu3 %vm160_vm0, %v3392_v58 }
  0x3c   :  { %302 = vperm.xlu0 %2748, %v89_v59   ;;  %152 = vperm.xlu1 %2749, %v77_v60  }
  0x3d   :  { %297 = vperm.xlu2 %2750, %v88_v61  }
  0x42   :  { %2574 = vmatmul.msk.f32.vlgmr.msrb.gmra.mxu0 %vm160_vm0, %v3189_v12  ;;  %2542 = vmatmul.msk.f32.vlgmr.msrb.gmra.mxu2 %vm160_vm0, %v3189_v12 }
  0x44   :  { %147 = vperm.xlu0 %2748, %v76_v62   ;;  %292 = vperm.xlu1 %2749, %v87_v63  }
  0x45   :  { %142 = vperm.xlu2 %2750, %v75_v0  }
  0x4a   :  { %2575 = vmatmul.msk.f32.gmra.mxu0 %vm160_vm0, %v3229_v19  ;;  %2543 = vmatmul.msk.f32.gmra.mxu2 %vm160_vm0, %v3229_v19 }
  0x4c   :  { %2437 = vperm.xlu0 %2748, %v2431_v1   ;;  %2442 = vperm.xlu1 %2749, %v2432_v3  }
  0x4d   :  { %2447 = vperm.xlu2 %2750, %v2433_v4  }
  0x52   :  { %2576 = vmatmul.msk.f32.gmra.mxu0 %vm160_vm0, %v3266_v30  ;;  %2544 = vmatmul.msk.f32.gmra.mxu2 %vm160_vm0, %v3266_v30 }
  0x54   :  { %2452 = vperm.xlu0 %2748, %v2434_v5   ;;  %2465 = vperm.xlu1 %2749, %v2459_v6  }
  0x55   :  { %2470 = vperm.xlu2 %2750, %v2460_v8  }
  0x5a   :  { %2577 = vmatmul.msk.f32.gmra.mxu0 %vm160_vm0, %v3303_v41  ;;  %2545 = vmatmul.msk.f32.gmra.mxu2 %vm160_vm0, %v3303_v41 }
  0x5c   :  { %2475 = vperm.xlu0 %2748, %v2461_v10   ;;  %2480 = vperm.xlu1 %2749, %v2462_v16  }
  0x62   :  { %2578 = vmatmul.msk.f32.gmra.mxu0 %vm160_vm0, %v3340_v48  ;;  %2546 = vmatmul.msk.f32.gmra.mxu2 %vm160_vm0, %v3340_v48 }
  0x65   :  { %v3468_v17 = vpop.permute.xlu2 %107 }
  0x66   :  { %5595 = vst [vmem:[#allocation17_spill] sm:$0xff] %v3468_v17 }
  0x6a   :  { %2579 = vmatmul.msk.f32.gmra.mxu0 %vm160_vm0, %v3377_v55  ;;  %2547 = vmatmul.msk.f32.gmra.mxu2 %vm160_vm0, %v3377_v55 }
  0x6f   :  { %v3476_v18 = vpop.permute.xlu2 %257 }
  0x70   :  { %5596 = vst [vmem:[#allocation18_spill] sm:$0xff] %v3476_v18 }
  0x72   :  { %2580 = vmatmul.msk.f32.gmra.mxu0 %vm160_vm0, %v3195_v13  ;;  %2548 = vmatmul.msk.f32.gmra.mxu2 %vm160_vm0, %v3195_v13 }
  0x77   :  { %v3488_v37 = vpop.permute.xlu2 %137 }
  0x78   :  { %5599 = vst [vmem:[#allocation21_spill] sm:$0xff] %v3488_v37 }
  0x7a   :  { %2581 = vmatmul.msk.f32.gmra.mxu0 %vm160_vm0, %v3234_v20  ;;  %2549 = vmatmul.msk.f32.gmra.mxu2 %vm160_vm0, %v3234_v20 }
  0x7c   :  { %v3480_v23 = vpop.permute.xlu0 %117 }
  0x7d   :  { %5597 = vst [vmem:[#allocation19_spill] sm:$0xff] %v3480_v23  ;;  %v3482_v24 = vpop.permute.xlu1 %112 }
  0x7e   :  { %5598 = vst [vmem:[#allocation20_spill] sm:$0xff] %v3482_v24 }
  0x7f   :  { %v3498_v40 = vpop.permute.xlu2 %282 }
  0x80   :  { %5602 = vst [vmem:[#allocation24_spill] sm:$0xff] %v3498_v40 }
  0x82   :  { %2582 = vmatmul.msk.f32.gmra.mxu0 %vm160_vm0, %v3271_v32  ;;  %2550 = vmatmul.msk.f32.gmra.mxu2 %vm160_vm0, %v3271_v32 }
  0x86   :  { %v3490_v38 = vpop.permute.xlu0 %267  ;;  %v3492_v39 = vpop.permute.xlu1 %262 }
  0x87   :  { %5600 = vst [vmem:[#allocation22_spill] sm:$0xff] %v3490_v38  ;;  %v3513_v1 = vpop.permute.xlu2 %122 }
  0x88   :  { %5601 = vst [vmem:[#allocation23_spill] sm:$0xff] %v3492_v39 }
  0x89   :  { %5606 = vst [vmem:[#allocation28_spill] sm:$0xff] %v3513_v1 }
  0x8a   :  { %2583 = vmatmul.msk.f32.gmra.mxu0 %vm160_vm0, %v3308_v42  ;;  %2551 = vmatmul.msk.f32.gmra.mxu2 %vm160_vm0, %v3308_v42 }
  0x8e   :  { %v3500_v45 = vpop.permute.xlu1 %252  ;;  %v3502_v52 = vpop.permute.xlu0 %102 }
  0x8f   :  { %5603 = vst [vmem:[#allocation25_spill] sm:$0xff] %v3500_v45  ;;  %v214_v46 = vpop.f32.mrf.mxu0 }
  0x90   :  { %v363_v47 = vpop.f32.mrf.mxu1  ;;  %5604 = vst [vmem:[#allocation26_spill] sm:$0xff] %v3502_v52  ;;  %v215_v53 = vadd.f32 %v214_v46, %v3502_v52 }
  0x91   :  { %v364_v54 = vadd.f32 %v363_v47, %v3500_v45 }
  0x92   :  { %2584 = vmatmul.msk.f32.gmra.mxu0 %vm160_vm0, %v3345_v49  ;;  %2552 = vmatmul.msk.f32.gmra.mxu2 %vm160_vm0, %v3345_v49 }
  0x93   :  { %v399_v59 = vadd.f32 %v364_v54, %v215_v53  ;;  %v3530_v54 = vpop.permute.xlu2 %157 }
  0x94   :  { %5608 = vst [vmem:[#allocation30_spill] sm:$0xff] %v3530_v54 }
  0x95   :  { %v232_v60 = vpop.f32.mrf.mxu2  ;;  %v2534_v6 = vmul.f32 -1.442695, %v399_v59 }
  0x96   :  { %v3510_v61 = vpop.permute.xlu1 %132  ;;  %v381_v63 = vpop.f32.mrf.mxu3 }
  0x97   :  { %5605 = vst [vmem:[#allocation27_spill] sm:$0xff] %v3510_v61  ;;  %v233_v62 = vadd.f32 %v232_v60, %v3510_v61  ;;  %v217_v0 = vpop.f32.mrf.mxu0  ;;  %v382_v3 = vadd.f32 %v381_v63, %v3498_v40  ;;  %v3522_v16 = vpop.permute.xlu0 %287  ;;  %2751 = vpow2.f32 %v2534_v6 }
  0x98   :  { %v218_v4 = vadd.f32 %v217_v0, %v3468_v17  ;;  %v366_v5 = vpop.f32.mrf.mxu1  ;;  %5607 = vst [vmem:[#allocation29_spill] sm:$0xff] %v3522_v16 }
  0x99   :  { %v367_v8 = vadd.f32 %v366_v5, %v3476_v18  ;;  %v405_v10 = vadd.f32 %v382_v3, %v233_v62 }
  0x9a   :  { %2585 = vmatmul.msk.f32.gmra.mxu0 %vm160_vm0, %v3382_v56  ;;  %2553 = vmatmul.msk.f32.gmra.mxu2 %vm160_vm0, %v3382_v56 }
  0x9b   :  { %v400_v25 = vadd.f32 %v367_v8, %v218_v4  ;;  %v2540_v28 = vmul.f32 -1.442695, %v405_v10 }
  0x9d   :  { %v2535_v26 = vmul.f32 -1.442695, %v400_v25  ;;  %v235_v27 = vpop.f32.mrf.mxu2  ;;  %v2752_v60 = vpop.eup %2751 }
  0x9e   :  { %v236_v29 = vadd.f32 %v235_v27, %v3488_v37  ;;  %v384_v31 = vpop.f32.mrf.mxu3  ;;  %v3536_v5 = vadd.f32 1.0, %v2752_v60  ;;  %v3538_v6 = vpop.permute.xlu1 %277 }
  0x9f   :  { %v220_v35 = vpop.f32.mrf.mxu0  ;;  %2753 = vpow2.f32 %v2535_v26  ;;  %v385_v36 = vadd.f32 %v384_v31, %v3522_v16  ;;  %v3534_v0 = vpop.permute.xlu0 %127  ;;  %5610 = vst [vmem:[#allocation32_spill] sm:$0xff] %v3538_v6 }
  0xa0   :  { %v221_v46 = vadd.f32 %v220_v35, %v3482_v24  ;;  %v369_v47 = vpop.f32.mrf.mxu1  ;;  %2755 = vpow2.f32 %v2540_v28  ;;  %5609 = vst [vmem:[#allocation31_spill] sm:$0xff] %v3534_v0  ;;  %vm444_vm2 = vweird.f32 %v3536_v5 }
  0xa1   :  { %v370_v53 = vadd.f32 %v369_v47, %v3492_v39  ;;  %v406_v59 = vadd.f32 %v385_v36, %v236_v29  ;;  %v3554_v47 = vpop.permute.xlu2 %297 }
  0xa2   :  { %2638 = vmatmul.msk.f32.vlgmr.msra.gmra.mxu0 %vm160_vm0, %v3189_v12  ;;  %2606 = vmatmul.msk.f32.vlgmr.msra.gmra.mxu2 %vm160_vm0, %v3189_v12  ;;  %5611 = vst [vmem:[#allocation33_spill] sm:$0xff] %v3554_v47 }
  0xa3   :  { %v401_v62 = vadd.f32 %v370_v53, %v221_v46  ;;  %v2541_v63 = vmul.f32 -1.442695, %v406_v59 }
  0xa5   :  { %v2536_v3 = vmul.f32 -1.442695, %v401_v62  ;;  %v2754_v4 = vpop.eup %2753  ;;  %2757 = vpow2.f32 %v2541_v63  ;;  %v238_v29 = vpop.f32.mrf.mxu2 }
  0xa6   :  { %v3540_v8 = vadd.f32 1.0, %v2754_v4  ;;  %v3542_v10 = vpop.f32.mrf.mxu3  ;;  %v2756_v26 = vpop.eup %2755 }
  0xa7   :  { %v223_v25 = vpop.f32.mrf.mxu0  ;;  %2759 = vpow2.f32 %v2536_v3  ;;  %v3552_v35 = vadd.f32 1.0, %v2756_v26  ;;  %v3563_v3 = vpop.permute.xlu0 %272 }
  0xa8   :  { %v224_v27 = vadd.f32 %v223_v25, %v3480_v23  ;;  %v372_v28 = vpop.f32.mrf.mxu1  ;;  %2761 = vrcp.f32 %v3540_v8  ;;  %5612 = vst [vmem:[#allocation34_spill] sm:$0xff] %v3563_v3  ;;  %v3567_v26 = vpop.permute.xlu1 %307  ;;  %vm459_vm3 = vweird.f32 %v3540_v8  ;;  %v465_v45 = vand.u32 2147483648, %v3540_v8 }
  0xa9   :  { %v373_v31 = vadd.f32 %v372_v28, %v3490_v38  ;;  %2763 = vrcp.f32 %v3536_v5  ;;  %v3588_v61 = vpop.permute.xlu2 %142  ;;  %v540_v38 = vand.u32 2147483648, %v3552_v35  ;;  %vm534_vm11 = vweird.f32 %v3552_v35 }
  0xaa   :  { %2639 = vmatmul.msk.f32.gmra.mxu0 %vm160_vm0, %v3229_v19  ;;  %2607 = vmatmul.msk.f32.gmra.mxu2 %vm160_vm0, %v3229_v19  ;;  %2765 = vrcp.f32 %v3552_v35  ;;  %5613 = vst [vmem:[#allocation35_spill] sm:$0xff] %v3588_v61  ;;  %v3594_v39 = vadd.f32 %v238_v29, %v3588_v61 }
  0xab   :  { %v402_v36 = vadd.f32 %v373_v31, %v224_v27  ;;  %v2758_v46 = vpop.eup %2757 }
  0xac   :  { %v3556_v60 = vadd.f32 1.0, %v2758_v46 }
  0xad   :  { %v2537_v53 = vmul.f32 -1.442695, %v402_v36  ;;  %v2760_v59 = vpop.eup %2759  ;;  %v3584_v16 = vpop.f32.mrf.mxu2 }
  0xae   :  { %v3558_v62 = vpop.eup %2761  ;;  %v3561_v63 = vadd.f32 1.0, %v2760_v59  ;;  %v3570_v28 = vpop.f32.mrf.mxu3 }
  0xaf   :  { %v226_v4 = vpop.f32.mrf.mxu0  ;;  %v3565_v25 = vpop.eup %2763  ;;  %2767 = vpow2.f32 %v2537_v53  ;;  %v455_v46 = vmul.f32 %v3558_v62, %v3540_v8  ;;  %v450_v53 = vand.u32 2147483648, %v3536_v5  ;;  %vm460_vm5 = vweird.f32 %v3558_v62 }
  0xb0   :  { %v375_v27 = vpop.f32.mrf.mxu1  ;;  %2769 = vrcp.f32 %v3561_v63  ;;  %v227_v31 = vadd.f32 %v226_v4, %v3513_v1  ;;  %v440_v59 = vmul.f32 %v3565_v25, %v3536_v5  ;;  %vm445_vm1 = vweird.f32 %v3565_v25  ;;  %v3628_v22 = vpop.permute.xlu0 %302  ;;  %vm3643_vm9 = vmor %vm459_vm3, %vm460_vm5 }
  0xb1   :  { %v376_v36 = vadd.f32 %v375_v27, %v3563_v3  ;;  %2771 = vrcp.f32 %v3556_v60  ;;  %v3586_v27 = vpop.eup %2765  ;;  %v456_v23 = vsub.f32 1.0, %v455_v46  ;;  %v3591_v3 = vor.u32 1.1754944e-38, %v450_v53  ;;  %v3612_v53 = vpop.permute.xlu1 %152  ;;  %5615 = vst [vmem:[#allocation37_spill] sm:$0xff] %v3628_v22  ;;  %vm3666_vm12 = vmor %vm444_vm2, %vm445_vm1 }
  0xb2   :  { %2640 = vmatmul.msk.f32.gmra.mxu0 %vm160_vm0, %v3266_v30  ;;  %2608 = vmatmul.msk.f32.gmra.mxu2 %vm160_vm0, %v3266_v30  ;;  %v441_v24 = vsub.f32 1.0, %v440_v59  ;;  %v530_v29 = vmul.f32 %v3586_v27, %v3552_v35  ;;  %5614 = vst [vmem:[#allocation36_spill] sm:$0xff] %v3612_v53  ;;  %v463_v46 = vand.u32 2147483647, %v3540_v8  ;;  %v478_v58 = vand.u32 2147483647, %v3561_v63 }
  0xb3   :  { %v403_v4 = vadd.f32 %v376_v36, %v227_v31  ;;  %v457_v59 = vmul.f32 %v3558_v62, %v456_v23  ;;  %vm474_vm6 = vweird.f32 %v3561_v63  ;;  %vm535_vm14 = vweird.f32 %v3586_v27 }
  0xb4   :  { %v531_v34 = vsub.f32 1.0, %v530_v29  ;;  %vm479_vm8 = vcmp.eq.f32.partialorder %v478_v58, 8.507059e+37  ;;  %vm3647_vm10 = vcmp.eq.f32.partialorder %v463_v46, 8.507059e+37 }
  0xb5   :  { %v2538_v37 = vmul.f32 -1.442695, %v403_v4  ;;  %v2768_v40 = vpop.eup %2767 }
  0xb6   :  { %v2770_v1 = vpop.eup %2769  ;;  %v3596_v17 = vadd.f32 1.0, %v2768_v40 }
  0xb7   :  { %2773 = vpow2.f32 %v2538_v37  ;;  %v229_v31 = vpop.f32.mrf.mxu0  ;;  %v3598_v36 = vpop.eup %2771  ;;  %v470_v4 = vmul.f32 %v2770_v1, %v3561_v63  ;;  %vm475_vm4 = vweird.f32 %v2770_v1 }
  0xb8   :  { %v378_v18 = vpop.f32.mrf.mxu1  ;;  %2775 = vrcp.f32 %v3596_v17  ;;  %v230_v40 = vadd.f32 %v229_v31, %v3534_v0  ;;  %v393_v31 = vpop.f32.mrf.mxu3  ;;  %v545_v52 = vmul.f32 %v3598_v36, %v3556_v60  ;;  %vm476_vm7 = vmor %vm474_vm6, %vm475_vm4  ;;  %vm550_vm1 = vweird.f32 %v3598_v36 }
  0xb9   :  { %v379_v37 = vadd.f32 %v378_v18, %v3538_v6  ;;  %v471_v61 = vsub.f32 1.0, %v470_v4  ;;  %v442_v18 = vmul.f32 %v3565_v25, %v441_v24  ;;  %v480_v6 = vand.u32 2147483648, %v3561_v63  ;;  %v244_v4 = vpop.f32.mrf.mxu2 }
  0xba   :  { %2641 = vmatmul.msk.f32.gmra.mxu0 %vm160_vm0, %v3303_v41  ;;  %2609 = vmatmul.msk.f32.gmra.mxu2 %vm160_vm0, %v3303_v41  ;;  %v3626_v24 = vor.u32 1.1754944e-38, %v540_v38  ;;  %v546_v30 = vsub.f32 1.0, %v545_v52  ;;  %v466_v52 = vor.u32 1.1754944e-38, %v465_v45  ;;  %v493_v63 = vand.u32 2147483647, %v3596_v17 }
  0xbb   :  { %v404_v0 = vadd.f32 %v379_v37, %v230_v40  ;;  %v472_v23 = vmul.f32 %v2770_v1, %v471_v61  ;;  %v458_v40 = vadd.f32 %v3558_v62, %v457_v59  ;;  %v481_v15 = vor.u32 1.1754944e-38, %v480_v6 }
  0xbc   :  { %v3635_v57 = vadd.f32 %v3565_v25, %v442_v18  ;;  %v547_v46 = vmul.f32 %v3598_v36, %v546_v30  ;;  %v391_v59 = vadd.f32 %v3570_v28, %v3554_v47  ;;  %v3685_v18 = vpop.permute.xlu1 %292  ;;  %v245_v30 = vadd.f32 %v244_v4, %v3612_v53 }
  0xbd   :  { %v2774_v51 = vpop.eup %2773  ;;  %v2539_v44 = vmul.f32 -1.442695, %v404_v0  ;;  %v473_v41 = vadd.f32 %v2770_v1, %v472_v23  ;;  %v462_v58 = vsel %vm3643_vm9, %v3558_v62, %v458_v40  ;;  %v495_v62 = vand.u32 2147483648, %v3596_v17  ;;  %5625 = vst [vmem:[#allocation38_spill] sm:$0xff] %v3685_v18 }
  0xbe   :  { %v3631_v37 = vadd.f32 1.0, %v2774_v51  ;;  %v2776_v61 = vpop.eup %2775  ;;  %v447_v29 = vsel %vm3666_vm12, %v3565_v25, %v3635_v57  ;;  %v467_v40 = vsel %vm3647_vm10, %v466_v52, %v462_v58  ;;  %v5626_v57 = vand.u32 2147483647, %v3552_v35 }
  0xbf   :  { %2777 = vpow2.f32 %v2539_v44  ;;  %v477_v38 = vsel %vm476_vm7, %v2770_v1, %v473_v41  ;;  %v485_v0 = vmul.f32 %v2776_v61, %v3596_v17  ;;  %v532_v41 = vmul.f32 %v3586_v27, %v531_v34  ;;  %vm3724_vm7 = vmor %vm534_vm11, %vm535_vm14 }
  0xc0   :  { %2779 = vrcp.f32 %v3631_v37  ;;  %v482_v6 = vsel %vm479_vm8, %v481_v15, %v477_v38  ;;  %v394_v1 = vadd.f32 %v393_v31, %v3628_v22  ;;  %v5622_v34 = vand.u32 2147483647, %v3536_v5  ;;  %v396_v38 = vpop.f32.mrf.mxu3 }
  0xc1   :  { %v486_v8 = vsub.f32 1.0, %v485_v0  ;;  %vm490_vm15 = vweird.f32 %v2776_v61  ;;  %v533_v0 = vadd.f32 %v3586_v27, %v532_v41  ;;  %vm3694_vm2 = vcmp.eq.f32.partialorder %v5626_v57, 8.507059e+37  ;;  %v247_v4 = vpop.f32.mrf.mxu2 }
  0xc2   :  { %2642 = vmatmul.msk.f32.gmra.mxu0 %vm160_vm0, %v3340_v48  ;;  %2610 = vmatmul.msk.f32.gmra.mxu2 %vm160_vm0, %v3340_v48  ;;  %vm3672_vm13 = vcmp.eq.f32.partialorder %v5622_v34, 8.507059e+37  ;;  %v561_v5 = vmul.f32 %v482_v6, %v394_v1  ;;  %vm489_vm3 = vweird.f32 %v3596_v17  ;;  %vm494_vm4 = vcmp.eq.f32.partialorder %v493_v63, 8.507059e+37  ;;  %v3708_v1 = vpop.permute.xlu0 %147 }
  0xc3   :  { %v487_v31 = vmul.f32 %v2776_v61, %v486_v8  ;;  %vm491_vm5 = vmor %vm489_vm3, %vm490_vm15  ;;  %v496_v44 = vor.u32 1.1754944e-38, %v495_v62  ;;  %v548_v52 = vadd.f32 %v3598_v36, %v547_v46  ;;  %v388_v41 = vadd.f32 %v3542_v10, %v3685_v18  ;;  %5629 = vst [vmem:[#allocation39_spill] sm:$0xff] %v3708_v1 }
  0xc4   :  { %v565_v8 = vadd.f32 %v561_v5, %v245_v30  ;;  %v397_v15 = vadd.f32 %v396_v38, %v3567_v26  ;;  %v553_v34 = vand.u32 2147483647, %v3556_v60  ;;  %v555_v62 = vand.u32 2147483648, %v3556_v60 }
  0xc5   :  { %v2778_v23 = vpop.eup %2777  ;;  %v488_v6 = vadd.f32 %v2776_v61, %v487_v31  ;;  %v560_v46 = vmul.f32 %v467_v40, %v391_v59  ;;  %v248_v31 = vadd.f32 %v247_v4, %v3530_v54  ;;  %vm549_vm6 = vweird.f32 %v3556_v60 }
  0xc6   :  { %v3698_v28 = vpop.eup %2779  ;;  %v3700_v51 = vadd.f32 1.0, %v2778_v23  ;;  %vm3730_vm8 = vmor %vm549_vm6, %vm550_vm1  ;;  %v537_v5 = vsel %vm3724_vm7, %v3586_v27, %v533_v0  ;;  %v242_v60 = vadd.f32 %v3584_v16, %v3708_v1  ;;  %v452_v35 = vsel %vm3672_vm13, %v3591_v3, %v447_v29 }
  0xc7   :  { %v500_v58 = vmul.f32 %v3698_v28, %v3631_v37  ;;  %v492_v17 = vsel %vm491_vm5, %v2776_v61, %v488_v6  ;;  %v552_v38 = vsel %vm3730_vm8, %v3598_v36, %v548_v52  ;;  %v559_v57 = vmul.f32 %v452_v35, %v388_v41 }
  0xc8   :  { %2781 = vrcp.f32 %v3700_v51  ;;  %v497_v63 = vsel %vm494_vm4, %v496_v44, %v492_v17  ;;  %vm554_vm9 = vcmp.eq.f32.partialorder %v553_v34, 8.507059e+37  ;;  %v556_v6 = vor.u32 1.1754944e-38, %v555_v62 }
  0xc9   :  { %v501_v10 = vsub.f32 1.0, %v500_v58  ;;  %v562_v23 = vmul.f32 %v497_v63, %v397_v15  ;;  %2783 = vtanh.f32 %v565_v8  ;;  %vm505_vm10 = vweird.f32 %v3698_v28 }
  0xca   :  { %2643 = vmatmul.msk.f32.gmra.mxu0 %vm160_vm0, %v3377_v55  ;;  %2611 = vmatmul.msk.f32.gmra.mxu2 %vm160_vm0, %v3377_v55  ;;  %v542_v3 = vsel %vm3694_vm2, %v3626_v24, %v537_v5  ;;  %v564_v45 = vadd.f32 %v560_v46, %v242_v60  ;;  %v510_v29 = vand.u32 2147483648, %v3631_v37  ;;  %v557_v0 = vsel %vm554_vm9, %v556_v6, %v552_v38 }
  0xcb   :  { %v502_v40 = vmul.f32 %v3698_v28, %v501_v10  ;;  %v566_v30 = vadd.f32 %v562_v23, %v248_v31  ;;  %vm504_vm11 = vweird.f32 %v3631_v37  ;;  %v508_v36 = vand.u32 2147483647, %v3631_v37 }
  0xcc   :  { %vm3755_vm12 = vmor %vm504_vm11, %vm505_vm10  ;;  %v563_v52 = vadd.f32 %v559_v57, %v3594_v39  ;;  %v573_v24 = vsub.f32 1.0, %v542_v3  ;;  %v574_v37 = vsub.f32 1.0, %v557_v0  ;;  %v525_v8 = vand.u32 2147483648, %v3700_v51 }
  0xcd   :  { %v503_v27 = vadd.f32 %v3698_v28, %v502_v40  ;;  %2785 = vtanh.f32 %v566_v30  ;;  %v511_v15 = vor.u32 1.1754944e-38, %v510_v29  ;;  %v523_v39 = vand.u32 2147483647, %v3700_v51  ;;  %v2086_v30 = vld [vmem:[#allocation2 + $0xd8] sm:$0xff] }
  0xce   :  { %v2782_v16 = vpop.eup %2781  ;;  %2787 = vtanh.f32 %v564_v45  ;;  %vm509_vm14 = vcmp.eq.f32.partialorder %v508_v36, 8.507059e+37  ;;  %v582_v34 = vmul.f32 %v557_v0, %v3164_v2  ;;  %vm519_vm15 = vweird.f32 %v3700_v51  ;;  %2099 = vmatpush.msrb.mxu0 %v2086_v30  ;;  %v2085_v45 = vld [vmem:[#allocation2 + $0xd0] sm:$0xff]  ;;  %v1785_v0 = vld [vmem:[#allocation2 + $0xa8] sm:$0xff]  ;;  %v3802_v36 = vpop.f32.mrf.mxu0 }
  0xcf   :  { %v515_v4 = vmul.f32 %v2782_v16, %v3700_v51  ;;  %v507_v41 = vsel %vm3755_vm12, %v3698_v28, %v503_v27  ;;  %v2784_v58 = vpop.eup %2783  ;;  %vm520_vm13 = vweird.f32 %v2782_v16  ;;  %2789 = vtanh.f32 %v563_v52 }
  0xd0   :  { %v512_v62 = vsel %vm509_vm14, %v511_v15, %v507_v41  ;;  %v577_v10 = vmul.f32 %v2784_v58, %v573_v24  ;;  %v581_v31 = vmul.f32 %v542_v3, %v3177_v7  ;;  %vm521_vm1 = vmor %vm519_vm15, %vm520_vm13  ;;  %v526_v23 = vor.u32 1.1754944e-38, %v525_v8  ;;  %v1787_v7 = vld [vmem:[#allocation2 + $0xb8] sm:$0xff]  ;;  %v1786_v3 = vld [vmem:[#allocation2 + $0xb0] sm:$0xff]  ;;  %2100 = vmatpush.msrb.mxu0 %v2085_v45 }
  0xd1   :  { %v516_v25 = vsub.f32 1.0, %v515_v4  ;;  %vm524_vm2 = vcmp.eq.f32.partialorder %v523_v39, 8.507059e+37  ;;  %v571_v5 = vsub.f32 1.0, %v512_v62  ;;  %1800 = vmatpush.msrb.mxu2 %v1787_v7  ;;  %v2084_v4 = vld [vmem:[#allocation2 + $0xc8] sm:$0xff]  ;;  %v5637_v41 = vld [vmem:[#allocation10_spill] sm:$0xff] }
  0xd2   :  { %2644 = vmatmul.msk.f32.gmra.mxu0 %vm160_vm0, %v3195_v13  ;;  %2612 = vmatmul.msk.f32.gmra.mxu2 %vm160_vm0, %v3195_v13  ;;  %v3775_v2 = vadd.f32 %v581_v31, %v577_v10  ;;  %v5640_v8 = vld [vmem:[#allocation9_spill] sm:$0xff]  ;;  %v3035_v10 = vld [vmem:[%s5496_s1 + $0x30] sm:$0xff] }
  0xd3   :  { %v517_v17 = vmul.f32 %v2782_v16, %v516_v25  ;;  %v2786_v63 = vpop.eup %2785  ;;  %1801 = vmatpush.msrb.mxu2 %v1786_v3  ;;  %2101 = vmatpush.msrb.mxu0 %v2084_v4  ;;  %v5636_v25 = vld [vmem:[#allocation15_spill] sm:$0xff] }
  0xd4   :  { %v578_v28 = vmul.f32 %v2786_v63, %v574_v37  ;;  %v2788_v60 = vpop.eup %2787  ;;  %v5639_v37 = vld [vmem:[#allocation12_spill] sm:$0xff]  ;;  %v5654_v4 = vld [vmem:[#allocation23_spill] sm:$0xff] }
  0xd5   :  { %v518_v46 = vadd.f32 %v2782_v16, %v517_v17  ;;  %v2790_v51 = vpop.eup %2789  ;;  %1802 = vmatpush.msrb.mxu2 %v1785_v0  ;;  %v5641_v17 = vld [vmem:[#allocation11_spill] sm:$0xff] }
  0xd6   :  { %v3772_v61 = vadd.f32 %v582_v34, %v578_v28  ;;  %v575_v6 = vmul.f32 %v2790_v51, %v571_v5  ;;  %v3812_v44 = vpop.f32.mrf.mxu0  ;;  %v5642_v34 = vld [vmem:[#allocation13_spill] sm:$0xff]  ;;  %v5651_v51 = vld [vmem:[#allocation26_spill] sm:$0xff] }
  0xd7   :  { %v522_v59 = vsel %vm521_vm1, %v2782_v16, %v518_v46  ;;  %v579_v16 = vmul.f32 %v512_v62, %v3183_v11  ;;  %v2083_v11 = vld [vmem:[#allocation2 + $0xc0] sm:$0xff] }
  0xd8   :  { %v527_v35 = vsel %vm524_vm2, %v526_v23, %v522_v59  ;;  %657 = vmatpush.msrb.mxu3 %v3772_v61  ;;  %2102 = vmatpush.msrb.mxu0 %v2083_v11 }
  0xd9   :  { %v572_v40 = vsub.f32 1.0, %v527_v35  ;;  %v580_v57 = vmul.f32 %v527_v35, %v3179_v9  ;;  %v3787_v29 = vadd.f32 %v579_v16, %v575_v6  ;;  %v1784_v9 = vld [vmem:[#allocation2 + $0xa0] sm:$0xff]  ;;  %v5650_v35 = vld [vmem:[#allocation25_spill] sm:$0xff] }
  0xda   :  { %2645 = vmatmul.msk.f32.gmra.mxu0 %vm160_vm0, %v3234_v20  ;;  %2613 = vmatmul.msk.f32.gmra.mxu2 %vm160_vm0, %v3234_v20  ;;  %v5653_v16 = vld [vmem:[#allocation17_spill] sm:$0xff] }
  0xdb   :  { %658 = vmatpush.msrb.mxu3 %v3775_v2  ;;  %v576_v38 = vmul.f32 %v2788_v60, %v572_v40  ;;  %1803 = vmatpush.msrb.mxu2 %v1784_v9  ;;  %v5655_v9 = vld [vmem:[#allocation20_spill] sm:$0xff] }
  0xdd   :  { %v3783_v27 = vadd.f32 %v580_v57, %v576_v38  ;;  %v5652_v57 = vld [vmem:[#allocation18_spill] sm:$0xff] }
  0xdf   :  { %659 = vmatpush.msrb.mxu3 %v3783_v27 }
  0xe1   :  { %660 = vmatpush.msrb.mxu3 %v3787_v29 }
  0xe2   :  { %2646 = vmatmul.msk.f32.gmra.mxu0 %vm160_vm0, %v3271_v32  ;;  %2554 = vmatmul.msk.f32.vlgmr.msrb.gmra.mxu3 %vm160_vm0, %v3200_v14  ;;  %v3804_v14 = vpop.f32.mrf.mxu2 }
  0xe3   :  { %2614 = vmatmul.msk.f32.gmra.mxu2 %vm160_vm0, %v3271_v32  ;;  %v610_v7 = vadd.f32 %v3804_v14, %v5651_v51 }
  0xea   :  { %2647 = vmatmul.msk.f32.gmra.mxu0 %vm160_vm0, %v3308_v42  ;;  %2555 = vmatmul.msk.f32.gmra.mxu3 %vm160_vm0, %v3239_v21  ;;  %v3814_v52 = vpop.f32.mrf.mxu2  ;;  %v3822_v21 = vpop.f32.mrf.mxu0 }
  0xeb   :  { %2615 = vmatmul.msk.f32.gmra.mxu2 %vm160_vm0, %v3308_v42  ;;  %v613_v3 = vadd.f32 %v3814_v52, %v5653_v16 }
  0xf2   :  { %2648 = vmatmul.msk.f32.gmra.mxu0 %vm160_vm0, %v3345_v49  ;;  %2556 = vmatmul.msk.f32.gmra.mxu3 %vm160_vm0, %v3276_v33  ;;  %v3824_v24 = vpop.f32.mrf.mxu2  ;;  %v3832_v33 = vpop.f32.mrf.mxu0 }
  0xf3   :  { %2616 = vmatmul.msk.f32.gmra.mxu2 %vm160_vm0, %v3345_v49  ;;  %v616_v11 = vadd.f32 %v3824_v24, %v5655_v9  ;;  %v5659_v24 = vld [vmem:[#allocation19_spill] sm:$0xff] }
  0xfa   :  { %2649 = vmatmul.msk.f32.gmra.mxu0 %vm160_vm0, %v3382_v56  ;;  %2557 = vmatmul.msk.f32.gmra.mxu3 %vm160_vm0, %v3313_v43  ;;  %v3836_v43 = vpop.f32.mrf.mxu2 }
  0xfb   :  { %2617 = vmatmul.msk.f32.gmra.mxu2 %vm160_vm0, %v3382_v56 }
 0x102   :  { %2702 = vmatmul.msk.f32.vlgmr.msrb.gmra.mxu0 %vm160_vm0, %v3189_v12  ;;  %2558 = vmatmul.msk.f32.gmra.mxu3 %vm160_vm0, %v3350_v50  ;;  %v5638_v50 = vld [vmem:[#allocation8_spill] sm:$0xff]  ;;  %v621_v58 = vpop.f32.mrf.mxu2 }
 0x103   :  { %2670 = vmatmul.msk.f32.vlgmr.msrb.gmra.mxu2 %vm160_vm0, %v3189_v12  ;;  %v3848_v12 = vpop.f32.mrf.mxu0 }
 0x10a   :  { %2703 = vmatmul.msk.f32.gmra.mxu0 %vm160_vm0, %v3229_v19  ;;  %2559 = vmatmul.msk.f32.gmra.mxu3 %vm160_vm0, %v5636_v25  ;;  %v3858_v15 = vpop.f32.mrf.mxu2 }
 0x10b   :  { %2671 = vmatmul.msk.f32.gmra.mxu2 %vm160_vm0, %v3229_v19  ;;  %v3856_v19 = vpop.f32.mrf.mxu0 }
 0x112   :  { %2704 = vmatmul.msk.f32.gmra.mxu0 %vm160_vm0, %v5637_v41  ;;  %2560 = vmatmul.msk.f32.gmra.mxu3 %vm160_vm0, %v5638_v50  ;;  %v3868_v63 = vpop.f32.mrf.mxu2 }
 0x113   :  { %2672 = vmatmul.msk.f32.gmra.mxu2 %vm160_vm0, %v5637_v41  ;;  %v3866_v39 = vpop.f32.mrf.mxu0 }
 0x11a   :  { %2705 = vmatmul.msk.f32.gmra.mxu0 %vm160_vm0, %v5639_v37  ;;  %2561 = vmatmul.msk.f32.gmra.mxu3 %vm160_vm0, %v5640_v8  ;;  %v3880_v28 = vpop.f32.mrf.mxu2  ;;  %v5656_v8 = vld [vmem:[#allocation28_spill] sm:$0xff] }
 0x11b   :  { %2673 = vmatmul.msk.f32.gmra.mxu2 %vm160_vm0, %v5639_v37  ;;  %v3876_v62 = vpop.f32.mrf.mxu0 }
 0x11c   :  { %5643 = vst [vmem:[#allocation15_spill] sm:$0xff] %v3876_v62 }
 0x122   :  { %2706 = vmatmul.msk.f32.gmra.mxu0 %vm160_vm0, %v3340_v48  ;;  %2562 = vmatmul.msk.f32.gmra.mxu3 %vm160_vm0, %v5641_v17  ;;  %v3896_v46 = vpop.f32.mrf.mxu2  ;;  %v622_v17 = vadd.f32 %v621_v58, %v5656_v8 }
 0x123   :  { %2674 = vmatmul.msk.f32.gmra.mxu2 %vm160_vm0, %v3340_v48  ;;  %v5644_v48 = vld [vmem:[#allocation14_spill] sm:$0xff] }
 0x12a   :  { %2707 = vmatmul.msk.f32.gmra.mxu0 %vm160_vm0, %v3377_v55  ;;  %2563 = vmatmul.msk.f32.gmra.mxu3 %vm160_vm0, %v5642_v34  ;;  %v3904_v23 = vpop.f32.mrf.mxu2  ;;  %v5657_v34 = vld [vmem:[#allocation34_spill] sm:$0xff] }
 0x12b   :  { %2675 = vmatmul.msk.f32.gmra.mxu2 %vm160_vm0, %v3377_v55  ;;  %v5645_v55 = vld [vmem:[#allocation16_spill] sm:$0xff] }
 0x132   :  { %2708 = vmatmul.msk.f32.gmra.mxu0 %vm160_vm0, %v3195_v13  ;;  %2564 = vmatmul.msk.f32.gmra.mxu3 %vm160_vm0, %v5644_v48  ;;  %v3894_v13 = vpop.f32.mrf.mxu0  ;;  %v3912_v59 = vpop.f32.mrf.mxu2 }
 0x133   :  { %2676 = vmatmul.msk.f32.gmra.mxu2 %vm160_vm0, %v3035_v10  ;;  %5646 = vst [vmem:[#allocation10_spill] sm:$0xff] %v3894_v13 }
 0x13a   :  { %2709 = vmatmul.msk.f32.gmra.mxu0 %vm160_vm0, %v3234_v20  ;;  %2565 = vmatmul.msk.f32.gmra.mxu3 %vm160_vm0, %v5645_v55  ;;  %v3902_v31 = vpop.f32.mrf.mxu0  ;;  %v3922_v5 = vpop.f32.mrf.mxu2  ;;  %v5658_v55 = vld [vmem:[#allocation22_spill] sm:$0xff] }
 0x13b   :  { %2677 = vmatmul.msk.f32.gmra.mxu2 %vm160_vm0, %v3234_v20  ;;  %5647 = vst [vmem:[#allocation8_spill] sm:$0xff] %v3902_v31 }
 0x142   :  { %2710 = vmatmul.msk.f32.gmra.mxu0 %vm160_vm0, %v3271_v32  ;;  %v3910_v20 = vpop.f32.mrf.mxu0 }
 0x143   :  { %2678 = vmatmul.msk.f32.gmra.mxu2 %vm160_vm0, %v3271_v32  ;;  %5648 = vst [vmem:[#allocation12_spill] sm:$0xff] %v3910_v20 }
 0x14a   :  { %2711 = vmatmul.msk.f32.gmra.mxu0 %vm160_vm0, %v3308_v42  ;;  %v3918_v32 = vpop.f32.mrf.mxu0 }
 0x14b   :  { %2679 = vmatmul.msk.f32.gmra.mxu2 %vm160_vm0, %v3308_v42  ;;  %5649 = vst [vmem:[#allocation9_spill] sm:$0xff] %v3918_v32 }
 0x152   :  { %2712 = vmatmul.msk.f32.gmra.mxu0 %vm160_vm0, %v3345_v49 }
 0x153   :  { %2680 = vmatmul.msk.f32.gmra.mxu2 %vm160_vm0, %v3345_v49 }
 0x15a   :  { %2713 = vmatmul.msk.f32.gmra.mxu0 %vm160_vm0, %v3382_v56 }
 0x15b   :  { %2681 = vmatmul.msk.f32.gmra.mxu2 %vm160_vm0, %v3382_v56 }
 0x165   :  { %v662_v42 = vpop.f32.mrf.mxu3 }
 0x166   :  { %v663_v40 = vadd.f32 %v662_v42, %v5650_v35 }
 0x168   :  { %v698_v30 = vadd.f32 %v663_v40, %v610_v7  ;;  %v619_v7 = vadd.f32 %v3836_v43, %v5659_v24 }
 0x16a   :  { %v2566_v49 = vmul.f32 -1.442695, %v698_v30 }
 0x16c   :  { %2791 = vpow2.f32 %v2566_v49 }
 0x16d   :  { %v665_v60 = vpop.f32.mrf.mxu3 }
 0x16e   :  { %v666_v6 = vadd.f32 %v665_v60, %v5652_v57 }
 0x170   :  { %v699_v45 = vadd.f32 %v666_v6, %v613_v3  ;;  %v5661_v3 = vld [vmem:[#allocation32_spill] sm:$0xff] }
 0x172   :  { %v2567_v25 = vmul.f32 -1.442695, %v699_v45  ;;  %v2792_v41 = vpop.eup %2791 }
 0x173   :  { %v3935_v14 = vadd.f32 1.0, %v2792_v41 }
 0x174   :  { %2793 = vpow2.f32 %v2567_v25 }
 0x175   :  { %v668_v38 = vpop.f32.mrf.mxu3  ;;  %2795 = vrcp.f32 %v3935_v14  ;;  %vm743_vm4 = vweird.f32 %v3935_v14  ;;  %v749_v20 = vand.u32 2147483648, %v3935_v14 }
 0x176   :  { %v669_v56 = vadd.f32 %v668_v38, %v5654_v4  ;;  %v5660_v38 = vld [vmem:[#allocation31_spill] sm:$0xff] }
 0x177   :  { %v625_v49 = vadd.f32 %v3858_v15, %v5660_v38 }
 0x178   :  { %v700_v50 = vadd.f32 %v669_v56, %v616_v11 }
 0x17a   :  { %v2568_v52 = vmul.f32 -1.442695, %v700_v50  ;;  %v2794_v40 = vpop.eup %2793 }
 0x17b   :  { %v3945_v58 = vadd.f32 1.0, %v2794_v40  ;;  %v2796_v56 = vpop.eup %2795 }
 0x17c   :  { %2797 = vpow2.f32 %v2568_v52  ;;  %v739_v43 = vmul.f32 %v2796_v56, %v3935_v14  ;;  %vm744_vm3 = vweird.f32 %v2796_v56 }
 0x17d   :  { %v671_v0 = vpop.f32.mrf.mxu3  ;;  %vm3979_vm5 = vmor %vm743_vm4, %vm744_vm3  ;;  %vm758_vm9 = vweird.f32 %v3945_v58 }
 0x17e   :  { %v672_v42 = vadd.f32 %v671_v0, %v5658_v55 }
 0x180   :  { %v701_v6 = vadd.f32 %v672_v42, %v619_v7 }
 0x182   :  { %v2798_v25 = vpop.eup %2797  ;;  %v2569_v41 = vmul.f32 -1.442695, %v701_v6 }
 0x185   :  { %v674_v37 = vpop.f32.mrf.mxu3 }
 0x186   :  { %v675_v48 = vadd.f32 %v674_v37, %v5657_v34 }
 0x188   :  { %v702_v10 = vadd.f32 %v675_v48, %v622_v17  ;;  %v3952_v17 = vadd.f32 1.0, %v2798_v25  ;;  %v5662_v48 = vld [vmem:[#allocation27_spill] sm:$0xff] }
 0x189   :  { %v628_v52 = vadd.f32 %v3868_v63, %v5662_v48 }
 0x18a   :  { %v2570_v60 = vmul.f32 -1.442695, %v702_v10  ;;  %v5663_v10 = vld [vmem:[#allocation24_spill] sm:$0xff]  ;;  %vm773_vm2 = vweird.f32 %v3952_v17 }
 0x18c   :  { %2799 = vpow2.f32 %v2570_v60  ;;  %v740_v60 = vsub.f32 1.0, %v739_v43 }
 0x18d   :  { %v677_v30 = vpop.f32.mrf.mxu3  ;;  %2801 = vrcp.f32 %v3945_v58 }
 0x18e   :  { %v678_v45 = vadd.f32 %v677_v30, %v5661_v3  ;;  %v741_v6 = vmul.f32 %v2796_v56, %v740_v60 }
 0x190   :  { %v703_v11 = vadd.f32 %v678_v45, %v625_v49 }
 0x192   :  { %v2800_v0 = vpop.eup %2799  ;;  %v2571_v50 = vmul.f32 -1.442695, %v703_v11 }
 0x193   :  { %v3950_v37 = vadd.f32 1.0, %v2800_v0  ;;  %v3958_v40 = vpop.eup %2801 }
 0x194   :  { %2803 = vpow2.f32 %v2571_v50  ;;  %v754_v25 = vmul.f32 %v3958_v40, %v3945_v58  ;;  %v5664_v50 = vld [vmem:[#allocation21_spill] sm:$0xff]  ;;  %vm759_vm7 = vweird.f32 %v3958_v40 }
 0x195   :  { %2805 = vrcp.f32 %v3950_v37  ;;  %v680_v15 = vpop.f32.mrf.mxu3  ;;  %v631_v43 = vadd.f32 %v3880_v28, %v5664_v50  ;;  %v747_v28 = vand.u32 2147483647, %v3935_v14  ;;  %v750_v14 = vor.u32 1.1754944e-38, %v749_v20  ;;  %v5668_v20 = vld [vmem:[#allocation35_spill] sm:$0xff]  ;;  %vm4009_vm10 = vmor %vm758_vm9, %vm759_vm7 }
 0x196   :  { %2807 = vpow2.f32 %v2569_v41  ;;  %v681_v42 = vadd.f32 %v680_v15, %v5663_v10  ;;  %v5665_v15 = vld [vmem:[#allocation29_spill] sm:$0xff]  ;;  %vm803_vm11 = vweird.f32 %v3950_v37 }
 0x197   :  { %2809 = vrcp.f32 %v3952_v17  ;;  %vm748_vm6 = vcmp.eq.f32.partialorder %v747_v28, 8.507059e+37  ;;  %v809_v28 = vand.u32 2147483648, %v3950_v37 }
 0x198   :  { %v704_v7 = vadd.f32 %v681_v42, %v628_v52  ;;  %v742_v42 = vadd.f32 %v2796_v56, %v741_v6 }
 0x19a   :  { %v2804_v30 = vpop.eup %2803  ;;  %v2572_v49 = vmul.f32 -1.442695, %v704_v7  ;;  %v746_v13 = vsel %vm3979_vm5, %v2796_v56, %v742_v42 }
 0x19b   :  { %v3961_v45 = vpop.eup %2805  ;;  %v3963_v11 = vadd.f32 1.0, %v2804_v30  ;;  %v755_v30 = vsub.f32 1.0, %v754_v25  ;;  %v751_v42 = vsel %vm748_vm6, %v750_v14, %v746_v13  ;;  %v637_v14 = vadd.f32 %v3904_v23, %v3708_v1 }
 0x19c   :  { %v2808_v63 = vpop.eup %2807  ;;  %2811 = vpow2.f32 %v2572_v49  ;;  %v799_v0 = vmul.f32 %v3961_v45, %v3950_v37  ;;  %vm804_vm8 = vweird.f32 %v3961_v45 }
 0x19d   :  { %2813 = vrcp.f32 %v3963_v11  ;;  %v683_v41 = vpop.f32.mrf.mxu3  ;;  %v3973_v60 = vpop.eup %2809  ;;  %v3975_v7 = vadd.f32 1.0, %v2808_v63  ;;  %vm4022_vm12 = vmor %vm803_vm11, %vm804_vm8  ;;  %vm818_vm4 = vweird.f32 %v3963_v11 }
 0x19e   :  { %v684_v52 = vadd.f32 %v683_v41, %v5665_v15  ;;  %v800_v32 = vsub.f32 1.0, %v799_v0  ;;  %v769_v25 = vmul.f32 %v3973_v60, %v3952_v17  ;;  %vm774_vm15 = vweird.f32 %v3973_v60 }
 0x19f   :  { %2815 = vrcp.f32 %v3975_v7  ;;  %vm4049_vm3 = vmor %vm773_vm2, %vm774_vm15  ;;  %vm788_vm11 = vweird.f32 %v3975_v7 }
 0x1a0   :  { %v705_v49 = vadd.f32 %v684_v52, %v631_v43  ;;  %v756_v43 = vmul.f32 %v3958_v40, %v755_v30  ;;  %v801_v52 = vmul.f32 %v3961_v45, %v800_v32 }
 0x1a2   :  { %v2812_v41 = vpop.eup %2811  ;;  %v2573_v6 = vmul.f32 -1.442695, %v705_v49  ;;  %v757_v15 = vadd.f32 %v3958_v40, %v756_v43  ;;  %v802_v32 = vadd.f32 %v3961_v45, %v801_v52  ;;  %v764_v43 = vand.u32 2147483648, %v3945_v58 }
 0x1a3   :  { %v3988_v63 = vpop.eup %2813  ;;  %v3991_v0 = vadd.f32 1.0, %v2812_v41  ;;  %v770_v41 = vsub.f32 1.0, %v769_v25  ;;  %v762_v25 = vand.u32 2147483647, %v3945_v58  ;;  %v807_v52 = vand.u32 2147483647, %v3950_v37 }
 0x1a4   :  { %2817 = vpow2.f32 %v2573_v6  ;;  %v814_v49 = vmul.f32 %v3988_v63, %v3963_v11  ;;  %v634_v6 = vadd.f32 %v3896_v46, %v5668_v20  ;;  %v761_v37 = vsel %vm4009_vm10, %v3958_v40, %v757_v15 }
 0x1a5   :  { %2819 = vrcp.f32 %v3991_v0  ;;  %v686_v31 = vpop.f32.mrf.mxu3  ;;  %vm763_vm13 = vcmp.eq.f32.partialorder %v762_v25, 8.507059e+37  ;;  %v765_v13 = vor.u32 1.1754944e-38, %v764_v43  ;;  %vm808_vm14 = vcmp.eq.f32.partialorder %v807_v52, 8.507059e+37 }
 0x1a6   :  { %v687_v56 = vadd.f32 %v686_v31, %v3685_v18  ;;  %v815_v30 = vsub.f32 1.0, %v814_v49  ;;  %v4007_v31 = vpop.eup %2815  ;;  %vm819_vm1 = vweird.f32 %v3988_v63  ;;  %v824_v25 = vand.u32 2147483648, %v3963_v11 }
 0x1a7   :  { %v784_v23 = vmul.f32 %v4007_v31, %v3975_v7  ;;  %v779_v52 = vand.u32 2147483648, %v3952_v17  ;;  %vm4060_vm5 = vmor %vm818_vm4, %vm819_vm1  ;;  %vm789_vm9 = vweird.f32 %v4007_v31  ;;  %vm833_vm10 = vweird.f32 %v3991_v0 }
 0x1a8   :  { %v858_v62 = vmul.f32 %v751_v42, %v687_v56  ;;  %v771_v56 = vmul.f32 %v3973_v60, %v770_v41  ;;  %v816_v20 = vmul.f32 %v3988_v63, %v815_v30  ;;  %v766_v30 = vsel %vm763_vm13, %v765_v13, %v761_v37  ;;  %vm4093_vm13 = vmor %vm788_vm11, %vm789_vm9 }
 0x1a9   :  { %v785_v42 = vsub.f32 1.0, %v784_v23  ;;  %v777_v23 = vand.u32 2147483647, %v3952_v17 }
 0x1aa   :  { %v2818_v46 = vpop.eup %2817  ;;  %v862_v49 = vadd.f32 %v858_v62, %v634_v6  ;;  %v806_v62 = vsel %vm4022_vm12, %v3961_v45, %v802_v32  ;;  %v810_v6 = vor.u32 1.1754944e-38, %v809_v28  ;;  %v772_v15 = vadd.f32 %v3973_v60, %v771_v56 }
 0x1ab   :  { %v4026_v18 = vpop.eup %2819  ;;  %v4028_v58 = vadd.f32 1.0, %v2818_v46  ;;  %v822_v56 = vand.u32 2147483647, %v3963_v11  ;;  %vm778_vm7 = vcmp.eq.f32.partialorder %v777_v23, 8.507059e+37  ;;  %v792_v23 = vand.u32 2147483647, %v3975_v7 }
 0x1ac   :  { %2821 = vtanh.f32 %v862_v49  ;;  %v829_v41 = vmul.f32 %v4026_v18, %v3991_v0  ;;  %v811_v45 = vsel %vm808_vm14, %v810_v6, %v806_v62  ;;  %v817_v49 = vadd.f32 %v3988_v63, %v816_v20 }
 0x1ad   :  { %2823 = vrcp.f32 %v4028_v58  ;;  %v689_v46 = vpop.f32.mrf.mxu3  ;;  %v870_v37 = vsub.f32 1.0, %v811_v45  ;;  %vm823_vm6 = vcmp.eq.f32.partialorder %v822_v56, 8.507059e+37  ;;  %vm834_vm8 = vweird.f32 %v4026_v18 }
 0x1ae   :  { %v690_v40 = vadd.f32 %v689_v46, %v3554_v47  ;;  %v830_v32 = vsub.f32 1.0, %v829_v41  ;;  %v776_v41 = vsel %vm4049_vm3, %v3973_v60, %v772_v15  ;;  %v821_v11 = vsel %vm4060_vm5, %v3988_v63, %v817_v49  ;;  %vm4089_vm12 = vmor %vm833_vm10, %vm834_vm8 }
 0x1af   :  { %v786_v60 = vmul.f32 %v4007_v31, %v785_v42  ;;  %v825_v15 = vor.u32 1.1754944e-38, %v824_v25  ;;  %v794_v56 = vand.u32 2147483648, %v3975_v7  ;;  %vm793_vm15 = vcmp.eq.f32.partialorder %v792_v23, 8.507059e+37 }
 0x1b0   :  { %v859_v28 = vmul.f32 %v766_v30, %v690_v40  ;;  %v831_v13 = vmul.f32 %v4026_v18, %v830_v32  ;;  %v640_v32 = vadd.f32 %v3912_v59, %v3612_v53  ;;  %v837_v59 = vand.u32 2147483647, %v3991_v0 }
 0x1b1   :  { %v826_v49 = vsel %vm823_vm6, %v825_v15, %v821_v11  ;;  %v787_v25 = vadd.f32 %v4007_v31, %v786_v60  ;;  %v795_v15 = vor.u32 1.1754944e-38, %v794_v56  ;;  %vm848_vm2 = vweird.f32 %v4028_v58 }
 0x1b2   :  { %v2822_v20 = vpop.eup %2821  ;;  %v863_v62 = vadd.f32 %v859_v28, %v637_v14  ;;  %v878_v14 = vmul.f32 %v811_v45, %v3787_v29  ;;  %v780_v28 = vor.u32 1.1754944e-38, %v779_v52  ;;  %v832_v42 = vadd.f32 %v4026_v18, %v831_v13  ;;  %v4150_v13 = vld [vmem:[%s5497_s2 + $0x18] sm:$0xff] }
 0x1b3   :  { %v4064_v46 = vpop.eup %2823  ;;  %v874_v40 = vmul.f32 %v2822_v20, %v870_v37  ;;  %v839_v52 = vand.u32 2147483648, %v3991_v0  ;;  %v871_v20 = vsub.f32 1.0, %v826_v49  ;;  %v791_v7 = vsel %vm4093_vm13, %v4007_v31, %v787_v25 }
 0x1b4   :  { %2825 = vtanh.f32 %v863_v62  ;;  %v844_v17 = vmul.f32 %v4064_v46, %v4028_v58  ;;  %v781_v29 = vsel %vm778_vm7, %v780_v28, %v776_v41  ;;  %v836_v0 = vsel %vm4089_vm12, %v4026_v18, %v832_v42 }
 0x1b5   :  { %v692_v30 = vpop.f32.mrf.mxu3  ;;  %v4074_v43 = vadd.f32 %v878_v14, %v874_v40  ;;  %v879_v14 = vmul.f32 %v826_v49, %v3783_v27  ;;  %v840_v60 = vor.u32 1.1754944e-38, %v839_v52  ;;  %vm838_vm14 = vcmp.eq.f32.partialorder %v837_v59, 8.507059e+37 }
 0x1b6   :  { %v693_v63 = vadd.f32 %v692_v30, %v3628_v22  ;;  %v845_v45 = vsub.f32 1.0, %v844_v17  ;;  %vm849_vm1 = vweird.f32 %v4064_v46  ;;  %v643_v27 = vadd.f32 %v3922_v5, %v3530_v54 }
 0x1b7   :  { %v854_v31 = vand.u32 2147483648, %v4028_v58  ;;  %vm850_vm3 = vmor %vm848_vm2, %vm849_vm1 }
 0x1b8   :  { %v860_v37 = vmul.f32 %v781_v29, %v693_v63  ;;  %v846_v11 = vmul.f32 %v4064_v46, %v845_v45  ;;  %v796_v63 = vsel %vm793_vm15, %v795_v15, %v791_v7  ;;  %v852_v29 = vand.u32 2147483647, %v4028_v58  ;;  %v4185_v7 = vld [vmem:[%s5497_s2 + $0x40] sm:$0xff]  ;;  %v4206_v15 = vld [vmem:[%s5497_s2 + $0x58] sm:$0xff] }
 0x1b9   :  { %v855_v59 = vor.u32 1.1754944e-38, %v854_v31  ;;  %v909_v31 = vadd.f32 %v3802_v36, %v5651_v51  ;;  %v5696_v51 = vld [vmem:[#allocation38_spill] sm:$0xff] }
 0x1ba   :  { %v2826_v62 = vpop.eup %2825  ;;  %v864_v41 = vadd.f32 %v860_v37, %v640_v32  ;;  %v841_v32 = vsel %vm838_vm14, %v840_v60, %v836_v0  ;;  %v847_v18 = vadd.f32 %v4064_v46, %v846_v11  ;;  %vm853_vm4 = vcmp.eq.f32.partialorder %v852_v29, 8.507059e+37  ;;  %v4157_v11 = vld [vmem:[%s5497_s2 + $0x20] sm:$0xff]  ;;  %v4164_v0 = vld [vmem:[%s5497_s2 + $0x28] sm:$0xff] }
 0x1bb   :  { %v875_v40 = vmul.f32 %v2826_v62, %v871_v20  ;;  %v872_v45 = vsub.f32 1.0, %v841_v32  ;;  %v880_v56 = vmul.f32 %v841_v32, %v3775_v2  ;;  %v4129_v2 = vld [vmem:[%s5497_s2] sm:$0xff]  ;;  %v4192_v60 = vld [vmem:[%s5497_s2 + $0x48] sm:$0xff] }
 0x1bc   :  { %2827 = vtanh.f32 %v864_v41  ;;  %v851_v25 = vsel %vm850_vm3, %v4064_v46, %v847_v18  ;;  %v4143_v46 = vld [vmem:[%s5497_s2 + $0x10] sm:$0xff] }
 0x1bd   :  { %v695_v17 = vpop.f32.mrf.mxu3  ;;  %v4105_v30 = vadd.f32 %v879_v14, %v875_v40  ;;  %v856_v20 = vsel %vm853_vm4, %v855_v59, %v851_v25  ;;  %v4171_v40 = vld [vmem:[%s5497_s2 + $0x30] sm:$0xff]  ;;  %v4178_v14 = vld [vmem:[%s5497_s2 + $0x38] sm:$0xff] }
 0x1be   :  { %v696_v28 = vadd.f32 %v695_v17, %v3567_v26  ;;  %v873_v62 = vsub.f32 1.0, %v856_v20  ;;  %v881_v58 = vmul.f32 %v856_v20, %v3772_v61  ;;  %v4136_v61 = vld [vmem:[%s5497_s2 + $0x8] sm:$0xff]  ;;  %v4199_v17 = vld [vmem:[%s5497_s2 + $0x50] sm:$0xff]  ;;  %v918_v20 = vadd.f32 %v3832_v33, %v5659_v24 }
 0x1c0   :  { %v861_v49 = vmul.f32 %v796_v63, %v696_v28 }
 0x1c2   :  { %v2828_v42 = vpop.eup %2827  ;;  %v865_v37 = vadd.f32 %v861_v49, %v643_v27 }
 0x1c3   :  { %v876_v52 = vmul.f32 %v2828_v42, %v872_v45  ;;  %v912_v45 = vadd.f32 %v3812_v44, %v5653_v16  ;;  %v915_v42 = vadd.f32 %v3822_v21, %v5655_v9 }
 0x1c4   :  { %2829 = vtanh.f32 %v865_v37 }
 0x1c5   :  { %v4117_v5 = vadd.f32 %v880_v56, %v876_v52 }
 0x1ca   :  { %v2830_v41 = vpop.eup %2829 }
 0x1cb   :  { %v877_v23 = vmul.f32 %v2830_v41, %v873_v62 }
 0x1cd   :  { %v4120_v6 = vadd.f32 %v881_v58, %v877_v23 }
 0x1cf   :  { %956 = vmatpush.msrb.mxu1 %v4120_v6 }
 0x1d1   :  { %957 = vmatpush.msrb.mxu1 %v4117_v5 }
 0x1d3   :  { %958 = vmatpush.msrb.mxu1 %v4105_v30 }
 0x1d5   :  { %959 = vmatpush.msrb.mxu1 %v4074_v43 }
 0x1d6   :  { %2586 = vmatmul.msk.f32.vlgmr.msrb.gmra.mxu1 %vm160_vm0, %v4129_v2 }
 0x1de   :  { %2587 = vmatmul.msk.f32.gmra.mxu1 %vm160_vm0, %v4136_v61 }
 0x1e6   :  { %2588 = vmatmul.msk.f32.gmra.mxu1 %vm160_vm0, %v4143_v46 }
 0x1ee   :  { %2589 = vmatmul.msk.f32.gmra.mxu1 %vm160_vm0, %v4150_v13 }
 0x1f6   :  { %2590 = vmatmul.msk.f32.gmra.mxu1 %vm160_vm0, %v4157_v11 }
 0x1fe   :  { %2591 = vmatmul.msk.f32.gmra.mxu1 %vm160_vm0, %v4164_v0 }
 0x206   :  { %2592 = vmatmul.msk.f32.gmra.mxu1 %vm160_vm0, %v4171_v40 }
 0x20e   :  { %2593 = vmatmul.msk.f32.gmra.mxu1 %vm160_vm0, %v4178_v14 }
 0x216   :  { %2594 = vmatmul.msk.f32.gmra.mxu1 %vm160_vm0, %v4185_v7 }
 0x21e   :  { %2595 = vmatmul.msk.f32.gmra.mxu1 %vm160_vm0, %v4192_v60 }
 0x226   :  { %2596 = vmatmul.msk.f32.gmra.mxu1 %vm160_vm0, %v4199_v17 }
 0x22e   :  { %2597 = vmatmul.msk.f32.gmra.mxu1 %vm160_vm0, %v4206_v15 }
 0x253   :  { %v961_v28 = vpop.f32.mrf.mxu1 }
 0x254   :  { %v962_v27 = vadd.f32 %v961_v28, %v5650_v35 }
 0x256   :  { %v997_v37 = vadd.f32 %v962_v27, %v909_v31  ;;  %v924_v27 = vadd.f32 %v3856_v19, %v5660_v38  ;;  %v927_v31 = vadd.f32 %v3866_v39, %v5662_v48 }
 0x258   :  { %v2598_v62 = vmul.f32 -1.442695, %v997_v37 }
 0x25a   :  { %2831 = vpow2.f32 %v2598_v62 }
 0x25b   :  { %v964_v32 = vpop.f32.mrf.mxu1 }
 0x25c   :  { %v965_v49 = vadd.f32 %v964_v32, %v5652_v57 }
 0x25e   :  { %v998_v52 = vadd.f32 %v965_v49, %v912_v45 }
 0x260   :  { %v2599_v41 = vmul.f32 -1.442695, %v998_v52  ;;  %v2832_v28 = vpop.eup %2831 }
 0x262   :  { %2833 = vpow2.f32 %v2599_v41  ;;  %v5681_v41 = vld [vmem:[#allocation15_spill] sm:$0xff] }
 0x263   :  { %v967_v63 = vpop.f32.mrf.mxu1 }
 0x264   :  { %v968_v29 = vadd.f32 %v967_v63, %v5654_v4 }
 0x266   :  { %v999_v56 = vadd.f32 %v968_v29, %v915_v42  ;;  %v4230_v29 = vadd.f32 1.0, %v2832_v28 }
 0x268   :  { %v2600_v36 = vmul.f32 -1.442695, %v999_v56  ;;  %v2834_v63 = vpop.eup %2833  ;;  %v1046_v48 = vand.u32 2147483647, %v4230_v29  ;;  %vm1042_vm6 = vweird.f32 %v4230_v29 }
 0x269   :  { %v4233_v37 = vadd.f32 1.0, %v2834_v63 }
 0x26a   :  { %2835 = vpow2.f32 %v2600_v36  ;;  %v930_v36 = vadd.f32 %v5681_v41, %v5664_v50  ;;  %vm4316_vm10 = vcmp.eq.f32.partialorder %v1046_v48, 8.507059e+37 }
 0x26b   :  { %v970_v18 = vpop.f32.mrf.mxu1  ;;  %vm1057_vm8 = vweird.f32 %v4233_v37 }
 0x26c   :  { %v971_v59 = vadd.f32 %v970_v18, %v5658_v55  ;;  %v921_v18 = vadd.f32 %v3848_v12, %v5656_v8 }
 0x26e   :  { %v1000_v23 = vadd.f32 %v971_v59, %v918_v20 }
 0x270   :  { %v2601_v44 = vmul.f32 -1.442695, %v1000_v23  ;;  %v2836_v33 = vpop.eup %2835  ;;  %v5682_v23 = vld [vmem:[#allocation29_spill] sm:$0xff] }
 0x271   :  { %v4235_v52 = vadd.f32 1.0, %v2836_v33 }
 0x272   :  { %2837 = vpow2.f32 %v2601_v44 }
 0x273   :  { %v973_v25 = vpop.f32.mrf.mxu1  ;;  %2839 = vrcp.f32 %v4230_v29  ;;  %vm1072_vm12 = vweird.f32 %v4235_v52 }
 0x274   :  { %v974_v21 = vadd.f32 %v973_v25, %v5657_v34  ;;  %2841 = vrcp.f32 %v4233_v37 }
 0x275   :  { %2843 = vrcp.f32 %v4235_v52 }
 0x276   :  { %v1001_v45 = vadd.f32 %v974_v21, %v921_v18 }
 0x278   :  { %v2838_v12 = vpop.eup %2837  ;;  %v2602_v59 = vmul.f32 -1.442695, %v1001_v45 }
 0x279   :  { %v4240_v39 = vadd.f32 1.0, %v2838_v12  ;;  %v4245_v44 = vpop.eup %2839 }
 0x27a   :  { %v4248_v28 = vpop.eup %2841  ;;  %v1038_v12 = vmul.f32 %v4245_v44, %v4230_v29  ;;  %vm1043_vm7 = vweird.f32 %v4245_v44 }
 0x27b   :  { %v976_v58 = vpop.f32.mrf.mxu1  ;;  %vm1058_vm5 = vweird.f32 %v4248_v28  ;;  %vm1087_vm15 = vweird.f32 %v4240_v39  ;;  %vm4356_vm1 = vmor %vm1042_vm6, %vm1043_vm7 }
 0x27c   :  { %v977_v32 = vadd.f32 %v976_v58, %v5661_v3  ;;  %vm4322_vm11 = vmor %vm1057_vm8, %vm1058_vm5  ;;  %v1076_v3 = vand.u32 2147483647, %v4235_v52 }
 0x27e   :  { %v1002_v25 = vadd.f32 %v977_v32, %v924_v27  ;;  %v4250_v32 = vpop.eup %2843  ;;  %v1053_v27 = vmul.f32 %v4248_v28, %v4233_v37  ;;  %vm1077_vm3 = vcmp.eq.f32.partialorder %v1076_v3, 8.507059e+37 }
 0x27f   :  { %vm1073_vm9 = vweird.f32 %v4250_v32 }
 0x280   :  { %v2603_v20 = vmul.f32 -1.442695, %v1002_v25  ;;  %v1068_v25 = vmul.f32 %v4250_v32, %v4235_v52  ;;  %vm4336_vm13 = vmor %vm1072_vm12, %vm1073_vm9 }
 0x282   :  { %v1069_v41 = vsub.f32 1.0, %v1068_v25 }
 0x283   :  { %v979_v49 = vpop.f32.mrf.mxu1 }
 0x284   :  { %v980_v42 = vadd.f32 %v979_v49, %v5663_v10  ;;  %v1070_v25 = vmul.f32 %v4250_v32, %v1069_v41 }
 0x286   :  { %v1003_v56 = vadd.f32 %v980_v42, %v927_v31 }
 0x288   :  { %v2604_v19 = vmul.f32 -1.442695, %v1003_v56 }
 0x28a   :  { %2845 = vpow2.f32 %v2604_v19  ;;  %v1054_v19 = vsub.f32 1.0, %v1053_v27  ;;  %v5683_v27 = vld [vmem:[#allocation35_spill] sm:$0xff] }
 0x28b   :  { %v982_v62 = vpop.f32.mrf.mxu1  ;;  %2847 = vpow2.f32 %v2602_v59 }
 0x28c   :  { %v983_v58 = vadd.f32 %v982_v62, %v5682_v23  ;;  %2849 = vpow2.f32 %v2603_v20 }
 0x28d   :  { %2851 = vrcp.f32 %v4240_v39 }
 0x28e   :  { %v1004_v21 = vadd.f32 %v983_v58, %v930_v36  ;;  %v1039_v58 = vsub.f32 1.0, %v1038_v12  ;;  %v5686_v12 = vld [vmem:[#allocation12_spill] sm:$0xff] }
 0x28f   :  { %v4289_v10 = vadd.f32 %v5686_v12, %v3612_v53 }
 0x290   :  { %v2605_v63 = vmul.f32 -1.442695, %v1004_v21  ;;  %v2846_v18 = vpop.eup %2845  ;;  %v1055_v21 = vmul.f32 %v4248_v28, %v1054_v19  ;;  %v1040_v19 = vmul.f32 %v4245_v44, %v1039_v58 }
 0x291   :  { %v2848_v33 = vpop.eup %2847  ;;  %v4258_v42 = vadd.f32 1.0, %v2846_v18 }
 0x292   :  { %2853 = vpow2.f32 %v2605_v63  ;;  %v2850_v49 = vpop.eup %2849  ;;  %v4262_v56 = vadd.f32 1.0, %v2848_v33  ;;  %v1048_v63 = vand.u32 2147483648, %v4230_v29  ;;  %v1056_v41 = vadd.f32 %v4248_v28, %v1055_v21 }
 0x293   :  { %v4254_v31 = vpop.f32.mrf.mxu1  ;;  %v4256_v45 = vpop.eup %2851  ;;  %v4266_v59 = vadd.f32 1.0, %v2850_v49  ;;  %2855 = vrcp.f32 %v4258_v42  ;;  %v5684_v49 = vld [vmem:[#allocation10_spill] sm:$0xff]  ;;  %v1071_v21 = vadd.f32 %v4250_v32, %v1070_v25  ;;  %vm1132_vm12 = vweird.f32 %v4258_v42 }
 0x294   :  { %v1083_v20 = vmul.f32 %v4256_v45, %v4240_v39  ;;  %2857 = vrcp.f32 %v4262_v56  ;;  %v4280_v23 = vadd.f32 %v5684_v49, %v5683_v27  ;;  %v1049_v58 = vor.u32 1.1754944e-38, %v1048_v63 }
 0x295   :  { %2859 = vrcp.f32 %v4266_v59  ;;  %v1041_v27 = vadd.f32 %v4245_v44, %v1040_v19  ;;  %v1060_v48 = vsel %vm4322_vm11, %v4248_v28, %v1056_v41  ;;  %vm1088_vm14 = vweird.f32 %v4256_v45 }
 0x296   :  { %v1084_v33 = vsub.f32 1.0, %v1083_v20  ;;  %v5687_v20 = vld [vmem:[#allocation9_spill] sm:$0xff]  ;;  %v1093_v41 = vand.u32 2147483648, %v4240_v39  ;;  %vm1089_vm4 = vmor %vm1087_vm15, %vm1088_vm14  ;;  %vm1117_vm6 = vweird.f32 %v4266_v59  ;;  %vm1102_vm9 = vweird.f32 %v4262_v56 }
 0x297   :  { %v4297_v49 = vadd.f32 %v5687_v20, %v3530_v54  ;;  %v1061_v20 = vand.u32 2147483647, %v4233_v37  ;;  %v1045_v55 = vsel %vm4356_vm1, %v4245_v44, %v1041_v27 }
 0x298   :  { %v2854_v62 = vpop.eup %2853  ;;  %v1085_v12 = vmul.f32 %v4256_v45, %v1084_v33  ;;  %v1063_v33 = vand.u32 2147483648, %v4233_v37  ;;  %v1050_v27 = vsel %vm4316_vm10, %v1049_v58, %v1045_v55  ;;  %v1106_v55 = vand.u32 2147483647, %v4262_v56 }
 0x299   :  { %v4272_v36 = vadd.f32 1.0, %v2854_v62  ;;  %v5685_v62 = vld [vmem:[#allocation8_spill] sm:$0xff]  ;;  %v4293_v38 = vpop.eup %2855  ;;  %vm1062_vm2 = vcmp.eq.f32.partialorder %v1061_v20, 8.507059e+37 }
 0x29a   :  { %v4285_v50 = vadd.f32 %v5685_v62, %v3708_v1  ;;  %v1078_v62 = vand.u32 2147483648, %v4235_v52  ;;  %v4302_v1 = vpop.eup %2857  ;;  %v1128_v25 = vmul.f32 %v4293_v38, %v4258_v42  ;;  %v1086_v37 = vadd.f32 %v4256_v45, %v1085_v12 }
 0x29b   :  { %2861 = vrcp.f32 %v4272_v36  ;;  %v988_v18 = vpop.f32.mrf.mxu1  ;;  %v4307_v53 = vpop.eup %2859  ;;  %v1098_v16 = vmul.f32 %v4302_v1, %v4262_v56  ;;  %v1075_v52 = vsel %vm4336_vm13, %v4250_v32, %v1071_v21  ;;  %v1064_v32 = vor.u32 1.1754944e-38, %v1063_v33 }
 0x29c   :  { %v1079_v34 = vor.u32 1.1754944e-38, %v1078_v62  ;;  %v1113_v9 = vmul.f32 %v4307_v53, %v4266_v59  ;;  %v989_v63 = vadd.f32 %v988_v18, %v3554_v47  ;;  %v1090_v21 = vsel %vm1089_vm4, %v4256_v45, %v1086_v37 }
 0x29d   :  { %v1099_v4 = vsub.f32 1.0, %v1098_v16  ;;  %v986_v18 = vadd.f32 %v4254_v31, %v5696_v51  ;;  %v1094_v47 = vor.u32 1.1754944e-38, %v1093_v41  ;;  %vm1103_vm7 = vweird.f32 %v4302_v1 }
 0x29e   :  { %v1080_v29 = vsel %vm1077_vm3, %v1079_v34, %v1075_v52  ;;  %vm1118_vm8 = vweird.f32 %v4307_v53  ;;  %v1121_v31 = vand.u32 2147483647, %v4266_v59  ;;  %vm1133_vm10 = vweird.f32 %v4293_v38  ;;  %vm1104_vm4 = vmor %vm1102_vm9, %vm1103_vm7 }
 0x29f   :  { %v1100_v45 = vmul.f32 %v4302_v1, %v1099_v4  ;;  %v1153_v4 = vand.u32 2147483648, %v4272_v36  ;;  %v1138_v37 = vand.u32 2147483648, %v4258_v42  ;;  %vm1147_vm13 = vweird.f32 %v4272_v36  ;;  %vm4393_vm14 = vmor %vm1132_vm12, %vm1133_vm10 }
 0x2a0   :  { %v1123_v12 = vand.u32 2147483648, %v4266_v59  ;;  %vm1119_vm1 = vmor %vm1117_vm6, %vm1118_vm8  ;;  %vm1107_vm6 = vcmp.eq.f32.partialorder %v1106_v55, 8.507059e+37 }
 0x2a1   :  { %v4313_v54 = vpop.eup %2861 }
 0x2a2   :  { %v1143_v19 = vmul.f32 %v4313_v54, %v4272_v36  ;;  %vm1148_vm11 = vweird.f32 %v4313_v54 }
 0x2a3   :  { %v991_v24 = vpop.f32.mrf.mxu1  ;;  %vm4401_vm15 = vmor %vm1147_vm13, %vm1148_vm11 }
 0x2a4   :  { %v992_v28 = vadd.f32 %v991_v24, %v3628_v22  ;;  %v1144_v62 = vsub.f32 1.0, %v1143_v19  ;;  %v1091_v24 = vand.u32 2147483647, %v4240_v39  ;;  %v1129_v22 = vsub.f32 1.0, %v1128_v25 }
 0x2a5   :  { %v1114_v19 = vsub.f32 1.0, %v1113_v9  ;;  %v1065_v39 = vsel %vm1062_vm2, %v1064_v32, %v1060_v48 }
 0x2a6   :  { %v1159_v25 = vmul.f32 %v1080_v29, %v992_v28  ;;  %v1158_v57 = vmul.f32 %v1065_v39, %v989_v63  ;;  %vm1092_vm5 = vcmp.eq.f32.partialorder %v1091_v24, 8.507059e+37  ;;  %v1145_v44 = vmul.f32 %v4313_v54, %v1144_v62  ;;  %v5701_v62 = vld [vmem:[#allocation18_spill] sm:$0xff] }
 0x2a7   :  { %v1130_v3 = vmul.f32 %v4293_v38, %v1129_v22  ;;  %v1095_v34 = vsel %vm1092_vm5, %v1094_v47, %v1090_v21  ;;  %v1115_v9 = vmul.f32 %v4307_v53, %v1114_v19  ;;  %v1157_v22 = vmul.f32 %v1050_v27, %v986_v18 }
 0x2a8   :  { %v1163_v8 = vadd.f32 %v1159_v25, %v4289_v10  ;;  %v1162_v58 = vadd.f32 %v1158_v57, %v4285_v50  ;;  %v1146_v20 = vadd.f32 %v4313_v54, %v1145_v44  ;;  %v1151_v10 = vand.u32 2147483647, %v4272_v36 }
 0x2a9   :  { %v1131_v33 = vadd.f32 %v4293_v38, %v1130_v3  ;;  %v1136_v57 = vand.u32 2147483647, %v4258_v42  ;;  %v1116_v50 = vadd.f32 %v4307_v53, %v1115_v9  ;;  %v1161_v52 = vadd.f32 %v1157_v22, %v4280_v23 }
 0x2aa   :  { %2863 = vtanh.f32 %v1163_v8  ;;  %v1150_v36 = vsel %vm4401_vm15, %v4313_v54, %v1146_v20  ;;  %v1101_v23 = vadd.f32 %v4302_v1, %v1100_v45  ;;  %v1154_v63 = vor.u32 1.1754944e-38, %v1153_v4 }
 0x2ab   :  { %v994_v16 = vpop.f32.mrf.mxu1  ;;  %2865 = vtanh.f32 %v1162_v58  ;;  %v1135_v42 = vsel %vm4393_vm14, %v4293_v38, %v1131_v33  ;;  %v1108_v24 = vand.u32 2147483648, %v4262_v56  ;;  %vm1152_vm2 = vcmp.eq.f32.partialorder %v1151_v10, 8.507059e+37 }
 0x2ac   :  { %v995_v47 = vadd.f32 %v994_v16, %v3567_v26  ;;  %vm1137_vm3 = vcmp.eq.f32.partialorder %v1136_v57, 8.507059e+37  ;;  %v1120_v54 = vsel %vm1119_vm1, %v4307_v53, %v1116_v50  ;;  %v1155_v38 = vsel %vm1152_vm2, %v1154_v63, %v1150_v36  ;;  %v5702_v36 = vld [vmem:[#allocation26_spill] sm:$0xff] }
 0x2ad   :  { %v1124_v29 = vor.u32 1.1754944e-38, %v1123_v12  ;;  %vm1122_vm5 = vcmp.eq.f32.partialorder %v1121_v31, 8.507059e+37  ;;  %v1105_v59 = vsel %vm1104_vm4, %v4302_v1, %v1101_v23  ;;  %v1109_v18 = vor.u32 1.1754944e-38, %v1108_v24  ;;  %v5703_v23 = vld [vmem:[#allocation23_spill] sm:$0xff] }
 0x2ae   :  { %v1160_v48 = vmul.f32 %v1095_v34, %v995_v47  ;;  %v1172_v25 = vsub.f32 1.0, %v1155_v38  ;;  %v1180_v34 = vmul.f32 %v1155_v38, %v4120_v6 }
 0x2af   :  { %v1125_v19 = vsel %vm1122_vm5, %v1124_v29, %v1120_v54  ;;  %v1110_v3 = vsel %vm1107_vm6, %v1109_v18, %v1105_v59  ;;  %v5705_v54 = vld [vmem:[#allocation20_spill] sm:$0xff] }
 0x2b0   :  { %v1164_v41 = vadd.f32 %v1160_v48, %v4297_v49  ;;  %v1139_v49 = vor.u32 1.1754944e-38, %v1138_v37  ;;  %v2864_v21 = vpop.eup %2863  ;;  %v1170_v9 = vsub.f32 1.0, %v1125_v19  ;;  %v1169_v22 = vsub.f32 1.0, %v1110_v3 }
 0x2b1   :  { %v2866_v39 = vpop.eup %2865  ;;  %v1178_v47 = vmul.f32 %v1125_v19, %v4105_v30  ;;  %v1177_v6 = vmul.f32 %v1110_v3, %v4074_v43  ;;  %v1207_v43 = vpop.f32.mrf.mxu2  ;;  %v5706_v19 = vld [vmem:[#allocation22_spill] sm:$0xff] }
 0x2b2   :  { %2867 = vtanh.f32 %v1164_v41  ;;  %v1140_v32 = vsel %vm1137_vm3, %v1139_v49, %v1135_v42  ;;  %v1174_v1 = vmul.f32 %v2866_v39, %v1170_v9  ;;  %v1208_v42 = vadd.f32 %v1207_v43, %v5702_v36  ;;  %v5704_v49 = vld [vmem:[#allocation17_spill] sm:$0xff]  ;;  %v5707_v39 = vld [vmem:[#allocation19_spill] sm:$0xff] }
 0x2b3   :  { %2869 = vtanh.f32 %v1161_v52  ;;  %v1171_v53 = vsub.f32 1.0, %v1140_v32  ;;  %v1179_v31 = vmul.f32 %v1140_v32, %v4117_v5 }
 0x2b4   :  { %v4434_v20 = vadd.f32 %v1178_v47, %v1174_v1 }
 0x2b5   :  { %v1175_v16 = vmul.f32 %v2864_v21, %v1171_v53 }
 0x2b7   :  { %v4430_v8 = vadd.f32 %v1179_v31, %v1175_v16 }
 0x2b8   :  { %v2868_v44 = vpop.eup %2867 }
 0x2b9   :  { %v1176_v27 = vmul.f32 %v2868_v44, %v1172_v25  ;;  %v2870_v45 = vpop.eup %2869  ;;  %v1210_v30 = vpop.f32.mrf.mxu2 }
 0x2ba   :  { %v1173_v58 = vmul.f32 %v2870_v45, %v1169_v22  ;;  %v1211_v24 = vadd.f32 %v1210_v30, %v5704_v49  ;;  %v5708_v45 = vld [vmem:[#allocation34_spill] sm:$0xff]  ;;  %v5709_v22 = vld [vmem:[#allocation32_spill] sm:$0xff] }
 0x2bb   :  { %v4426_v56 = vadd.f32 %v1180_v34, %v1176_v27 }
 0x2bc   :  { %v4438_v33 = vadd.f32 %v1177_v6, %v1173_v58  ;;  %v5710_v6 = vld [vmem:[#allocation28_spill] sm:$0xff] }
 0x2bd   :  { %1255 = vmatpush.msra.mxu3 %v4426_v56 }
 0x2bf   :  { %1256 = vmatpush.msra.mxu3 %v4430_v8 }
 0x2c1   :  { %1257 = vmatpush.msra.mxu3 %v4434_v20  ;;  %v1213_v5 = vpop.f32.mrf.mxu2 }
 0x2c2   :  { %v1214_v55 = vadd.f32 %v1213_v5, %v5705_v54  ;;  %v5711_v5 = vld [vmem:[#allocation31_spill] sm:$0xff] }
 0x2c3   :  { %1258 = vmatpush.msra.mxu3 %v4438_v33 }
 0x2c4   :  { %2618 = vmatmul.msk.f32.vlgmr.msra.gmra.mxu3 %vm160_vm0, %v4129_v2 }
 0x2c9   :  { %v1216_v48 = vpop.f32.mrf.mxu2 }
 0x2ca   :  { %v1217_v25 = vadd.f32 %v1216_v48, %v5707_v39 }
 0x2cc   :  { %2619 = vmatmul.msk.f32.gmra.mxu3 %vm160_vm0, %v4136_v61 }
 0x2d1   :  { %v1219_v37 = vpop.f32.mrf.mxu2 }
 0x2d2   :  { %v1220_v43 = vadd.f32 %v1219_v37, %v5710_v6 }
 0x2d4   :  { %2620 = vmatmul.msk.f32.gmra.mxu3 %vm160_vm0, %v4143_v46 }
 0x2d9   :  { %v1222_v28 = vpop.f32.mrf.mxu2 }
 0x2da   :  { %v1223_v48 = vadd.f32 %v1222_v28, %v5711_v5  ;;  %v5719_v5 = vld [vmem:[#allocation30_spill] sm:$0xff] }
 0x2dc   :  { %2621 = vmatmul.msk.f32.gmra.mxu3 %vm160_vm0, %v4150_v13 }
 0x2e1   :  { %v1225_v50 = vpop.f32.mrf.mxu2 }
 0x2e4   :  { %2622 = vmatmul.msk.f32.gmra.mxu3 %vm160_vm0, %v4157_v11 }
 0x2e9   :  { %v1228_v38 = vpop.f32.mrf.mxu2 }
 0x2ec   :  { %2623 = vmatmul.msk.f32.gmra.mxu3 %vm160_vm0, %v4164_v0 }
 0x2f1   :  { %v4473_v16 = vpop.f32.mrf.mxu2 }
 0x2f4   :  { %2624 = vmatmul.msk.f32.gmra.mxu3 %vm160_vm0, %v4171_v40 }
 0x2fc   :  { %2625 = vmatmul.msk.f32.gmra.mxu3 %vm160_vm0, %v4178_v14 }
 0x304   :  { %2626 = vmatmul.msk.f32.gmra.mxu3 %vm160_vm0, %v4185_v7 }
 0x30c   :  { %2627 = vmatmul.msk.f32.gmra.mxu3 %vm160_vm0, %v4192_v60 }
 0x314   :  { %2628 = vmatmul.msk.f32.gmra.mxu3 %vm160_vm0, %v4199_v17 }
 0x31c   :  { %2629 = vmatmul.msk.f32.gmra.mxu3 %vm160_vm0, %v4206_v15 }
 0x347   :  { %v1260_v4 = vpop.f32.mrf.mxu3 }
 0x348   :  { %v1261_v41 = vadd.f32 %v1260_v4, %v5650_v35 }
 0x34a   :  { %v1296_v32 = vadd.f32 %v1261_v41, %v1208_v42 }
 0x34c   :  { %v2630_v53 = vmul.f32 -1.442695, %v1296_v32 }
 0x34e   :  { %2871 = vpow2.f32 %v2630_v53 }
 0x34f   :  { %v1263_v10 = vpop.f32.mrf.mxu3 }
 0x350   :  { %v1264_v12 = vadd.f32 %v1263_v10, %v5701_v62  ;;  %v5712_v10 = vld [vmem:[#allocation27_spill] sm:$0xff] }
 0x352   :  { %v1297_v59 = vadd.f32 %v1264_v12, %v1211_v24  ;;  %v5713_v12 = vld [vmem:[#allocation24_spill] sm:$0xff] }
 0x354   :  { %v2631_v44 = vmul.f32 -1.442695, %v1297_v59  ;;  %v2872_v1 = vpop.eup %2871  ;;  %v1234_v59 = vpop.f32.mrf.mxu2 }
 0x356   :  { %2873 = vpow2.f32 %v2631_v44  ;;  %v5715_v44 = vld [vmem:[#allocation29_spill] sm:$0xff] }
 0x357   :  { %v1266_v57 = vpop.f32.mrf.mxu3 }
 0x358   :  { %v1267_v63 = vadd.f32 %v1266_v57, %v5703_v23  ;;  %v1226_v57 = vadd.f32 %v1225_v50, %v5712_v10 }
 0x35a   :  { %v1298_v21 = vadd.f32 %v1267_v63, %v1214_v55 }
 0x35c   :  { %v2632_v3 = vmul.f32 -1.442695, %v1298_v21  ;;  %v2874_v58 = vpop.eup %2873 }
 0x35d   :  { %v4483_v63 = vadd.f32 1.0, %v2874_v58  ;;  %v1237_v58 = vpop.f32.mrf.mxu2 }
 0x35e   :  { %2875 = vpow2.f32 %v2632_v3 }
 0x35f   :  { %v1269_v52 = vpop.f32.mrf.mxu3  ;;  %vm1356_vm10 = vweird.f32 %v4483_v63 }
 0x360   :  { %v1270_v18 = vadd.f32 %v1269_v52, %v5706_v19  ;;  %v4480_v52 = vadd.f32 1.0, %v2872_v1 }
 0x362   :  { %v1299_v27 = vadd.f32 %v1270_v18, %v1217_v25  ;;  %v5714_v25 = vld [vmem:[#allocation21_spill] sm:$0xff]  ;;  %vm1341_vm8 = vweird.f32 %v4480_v52 }
 0x363   :  { %v1229_v53 = vadd.f32 %v1228_v38, %v5714_v25 }
 0x364   :  { %v2633_v9 = vmul.f32 -1.442695, %v1299_v27  ;;  %v2876_v30 = vpop.eup %2875 }
 0x365   :  { %v4485_v55 = vadd.f32 1.0, %v2876_v30 }
 0x366   :  { %2877 = vpow2.f32 %v2633_v9 }
 0x367   :  { %v1272_v29 = vpop.f32.mrf.mxu3  ;;  %2879 = vrcp.f32 %v4480_v52  ;;  %vm1371_vm14 = vweird.f32 %v4485_v55 }
 0x368   :  { %v1273_v31 = vadd.f32 %v1272_v29, %v5708_v45  ;;  %2881 = vrcp.f32 %v4483_v63 }
 0x369   :  { %2883 = vrcp.f32 %v4485_v55 }
 0x36a   :  { %v1300_v41 = vadd.f32 %v1273_v31, %v1220_v43 }
 0x36c   :  { %v2878_v29 = vpop.eup %2877  ;;  %v2634_v37 = vmul.f32 -1.442695, %v1300_v41 }
 0x36d   :  { %v4490_v21 = vadd.f32 1.0, %v2878_v29  ;;  %v4494_v27 = vpop.eup %2879 }
 0x36e   :  { %v4497_v9 = vpop.eup %2881  ;;  %vm1342_vm9 = vweird.f32 %v4494_v27 }
 0x36f   :  { %v1275_v34 = vpop.f32.mrf.mxu3  ;;  %v4499_v31 = vpop.eup %2883  ;;  %v1352_v38 = vmul.f32 %v4497_v9, %v4483_v63  ;;  %vm1357_vm7 = vweird.f32 %v4497_v9  ;;  %vm1386_vm2 = vweird.f32 %v4490_v21  ;;  %vm4604_vm3 = vmor %vm1341_vm8, %vm1342_vm9 }
 0x370   :  { %v1276_v47 = vadd.f32 %v1275_v34, %v5709_v22  ;;  %v1367_v41 = vmul.f32 %v4499_v31, %v4485_v55  ;;  %vm1372_vm11 = vweird.f32 %v4499_v31  ;;  %vm4570_vm13 = vmor %vm1356_vm10, %vm1357_vm7 }
 0x371   :  { %v1353_v29 = vsub.f32 1.0, %v1352_v38  ;;  %v5716_v38 = vld [vmem:[#allocation35_spill] sm:$0xff]  ;;  %vm4588_vm15 = vmor %vm1371_vm14, %vm1372_vm11 }
 0x372   :  { %v1301_v24 = vadd.f32 %v1276_v47, %v1223_v48 }
 0x374   :  { %v2635_v50 = vmul.f32 -1.442695, %v1301_v24  ;;  %v1337_v24 = vmul.f32 %v4494_v27, %v4480_v52 }
 0x377   :  { %v1278_v4 = vpop.f32.mrf.mxu3 }
 0x378   :  { %v1279_v42 = vadd.f32 %v1278_v4, %v5713_v12  ;;  %v1345_v12 = vand.u32 2147483647, %v4480_v52 }
 0x37a   :  { %v1302_v32 = vadd.f32 %v1279_v42, %v1226_v57  ;;  %vm4564_vm12 = vcmp.eq.f32.partialorder %v1345_v12, 8.507059e+37 }
 0x37c   :  { %v2636_v28 = vmul.f32 -1.442695, %v1302_v32 }
 0x37e   :  { %2885 = vpow2.f32 %v2636_v28 }
 0x37f   :  { %v1281_v18 = vpop.f32.mrf.mxu3  ;;  %2887 = vpow2.f32 %v2634_v37 }
 0x380   :  { %v1282_v3 = vadd.f32 %v1281_v18, %v5715_v44  ;;  %2889 = vpow2.f32 %v2635_v50  ;;  %v1368_v50 = vsub.f32 1.0, %v1367_v41 }
 0x381   :  { %2891 = vrcp.f32 %v4490_v21 }
 0x382   :  { %v1303_v34 = vadd.f32 %v1282_v3, %v1229_v53  ;;  %v1338_v53 = vsub.f32 1.0, %v1337_v24  ;;  %v1354_v3 = vmul.f32 %v4497_v9, %v1353_v29  ;;  %v1369_v41 = vmul.f32 %v4499_v31, %v1368_v50  ;;  %v5718_v24 = vld [vmem:[#allocation36_spill] sm:$0xff] }
 0x383   :  { %v4536_v25 = vadd.f32 %v1237_v58, %v5718_v24  ;;  %v1377_v50 = vand.u32 2147483648, %v4485_v55 }
 0x384   :  { %v2637_v1 = vmul.f32 -1.442695, %v1303_v34  ;;  %v2886_v47 = vpop.eup %2885  ;;  %v1240_v34 = vpop.f32.mrf.mxu2  ;;  %v1339_v29 = vmul.f32 %v4494_v27, %v1338_v53 }
 0x385   :  { %v2888_v43 = vpop.eup %2887  ;;  %v4507_v57 = vadd.f32 1.0, %v2886_v47  ;;  %v1378_v22 = vor.u32 1.1754944e-38, %v1377_v50  ;;  %v1392_v50 = vand.u32 2147483648, %v4490_v21 }
 0x386   :  { %2893 = vpow2.f32 %v2637_v1  ;;  %v2890_v30 = vpop.eup %2889  ;;  %v4511_v42 = vadd.f32 1.0, %v2888_v43  ;;  %v1347_v1 = vand.u32 2147483648, %v4480_v52 }
 0x387   :  { %v4503_v48 = vpop.f32.mrf.mxu3  ;;  %v4505_v4 = vpop.eup %2891  ;;  %v4515_v32 = vadd.f32 1.0, %v2890_v30  ;;  %2895 = vrcp.f32 %v4507_v57  ;;  %v4529_v30 = vadd.f32 %v4473_v16, %v5716_v38  ;;  %v1355_v16 = vadd.f32 %v4497_v9, %v1354_v3 }
 0x388   :  { %v1382_v37 = vmul.f32 %v4505_v4, %v4490_v21  ;;  %2897 = vrcp.f32 %v4511_v42  ;;  %v1348_v58 = vor.u32 1.1754944e-38, %v1347_v1  ;;  %v1370_v3 = vadd.f32 %v4499_v31, %v1369_v41 }
 0x389   :  { %2899 = vrcp.f32 %v4515_v32  ;;  %v1340_v38 = vadd.f32 %v4494_v27, %v1339_v29  ;;  %v1362_v41 = vand.u32 2147483648, %v4483_v63  ;;  %v1359_v12 = vsel %vm4570_vm13, %v4497_v9, %v1355_v16  ;;  %v5726_v9 = vld [vmem:[#allocation37_spill] sm:$0xff] }
 0x38a   :  { %v1383_v43 = vsub.f32 1.0, %v1382_v37  ;;  %v4543_v37 = vadd.f32 %v1240_v34, %v5719_v5  ;;  %v1360_v34 = vand.u32 2147483647, %v4483_v63  ;;  %v1375_v29 = vand.u32 2147483647, %v4485_v55 }
 0x38b   :  { %vm1387_vm1 = vweird.f32 %v4505_v4  ;;  %v1374_v16 = vsel %vm4588_vm15, %v4499_v31, %v1370_v3  ;;  %v1344_v31 = vsel %vm4604_vm3, %v4494_v27, %v1340_v38  ;;  %v1363_v3 = vor.u32 1.1754944e-38, %v1362_v41 }
 0x38c   :  { %v2894_v28 = vpop.eup %2893  ;;  %v1384_v53 = vmul.f32 %v4505_v4, %v1383_v43  ;;  %vm1361_vm4 = vcmp.eq.f32.partialorder %v1360_v34, 8.507059e+37  ;;  %vm1376_vm5 = vcmp.eq.f32.partialorder %v1375_v29, 8.507059e+37  ;;  %vm1388_vm6 = vmor %vm1386_vm2, %vm1387_vm1  ;;  %v1285_v62 = vadd.f32 %v4503_v48, %v5696_v51  ;;  %v5737_v29 = vld [vmem:[#allocation17_spill] sm:$0xff] }
 0x38d   :  { %v4521_v18 = vadd.f32 1.0, %v2894_v28  ;;  %v5717_v28 = vld [vmem:[#allocation39_spill] sm:$0xff]  ;;  %v4540_v10 = vpop.eup %2895  ;;  %v1349_v38 = vsel %vm4564_vm12, %v1348_v58, %v1344_v31  ;;  %vm1416_vm8 = vweird.f32 %v4515_v32  ;;  %vm1401_vm11 = vweird.f32 %v4511_v42 }
 0x38e   :  { %v4533_v44 = vadd.f32 %v1234_v59, %v5717_v28  ;;  %v4548_v59 = vpop.eup %2897  ;;  %v1427_v28 = vmul.f32 %v4540_v10, %v4507_v57  ;;  %v1385_v54 = vadd.f32 %v4505_v4, %v1384_v53  ;;  %v5729_v53 = vld [vmem:[#allocation33_spill] sm:$0xff]  ;;  %v1456_v48 = vmul.f32 %v1349_v38, %v1285_v62 }
 0x38f   :  { %2901 = vrcp.f32 %v4521_v18  ;;  %v1287_v47 = vpop.f32.mrf.mxu3  ;;  %v4553_v24 = vpop.eup %2899  ;;  %v1397_v45 = vmul.f32 %v4548_v59, %v4511_v42  ;;  %vm1402_vm9 = vweird.f32 %v4548_v59  ;;  %vm1432_vm12 = vweird.f32 %v4540_v10 }
 0x390   :  { %v1412_v39 = vmul.f32 %v4553_v24, %v4515_v32  ;;  %v1288_v23 = vadd.f32 %v1287_v47, %v5729_v53  ;;  %v1389_v52 = vsel %vm1388_vm6, %v4505_v4, %v1385_v54  ;;  %v1364_v47 = vsel %vm1361_vm4, %v1363_v3, %v1359_v12  ;;  %vm1403_vm6 = vmor %vm1401_vm11, %vm1402_vm9 }
 0x391   :  { %v1398_v36 = vsub.f32 1.0, %v1397_v45  ;;  %vm1417_vm10 = vweird.f32 %v4553_v24  ;;  %vm1431_vm14 = vweird.f32 %v4507_v57  ;;  %v1437_v62 = vand.u32 2147483648, %v4507_v57 }
 0x392   :  { %v1413_v63 = vsub.f32 1.0, %v1412_v39  ;;  %vm1446_vm15 = vweird.f32 %v4521_v18  ;;  %vm4639_vm1 = vmor %vm1431_vm14, %vm1432_vm12  ;;  %v1405_v31 = vand.u32 2147483647, %v4511_v42 }
 0x393   :  { %v1399_v45 = vmul.f32 %v4548_v59, %v1398_v36  ;;  %v1452_v36 = vand.u32 2147483648, %v4521_v18  ;;  %vm1418_vm3 = vmor %vm1416_vm8, %vm1417_vm10 }
 0x394   :  { %v1414_v39 = vmul.f32 %v4553_v24, %v1413_v63  ;;  %vm1406_vm8 = vcmp.eq.f32.partialorder %v1405_v31, 8.507059e+37 }
 0x395   :  { %v4559_v5 = vpop.eup %2901 }
 0x396   :  { %v1442_v6 = vmul.f32 %v4559_v5, %v4521_v18  ;;  %vm1447_vm13 = vweird.f32 %v4559_v5 }
 0x397   :  { %v1290_v19 = vpop.f32.mrf.mxu3  ;;  %vm4647_vm2 = vmor %vm1446_vm15, %vm1447_vm13 }
 0x398   :  { %v1291_v55 = vadd.f32 %v1290_v19, %v5726_v9  ;;  %v1443_v43 = vsub.f32 1.0, %v1442_v6  ;;  %v1390_v19 = vand.u32 2147483647, %v4490_v21  ;;  %v1428_v9 = vsub.f32 1.0, %v1427_v28 }
 0x399   :  { %v1379_v6 = vsel %vm1376_vm5, %v1378_v22, %v1374_v16  ;;  %v1393_v21 = vor.u32 1.1754944e-38, %v1392_v50  ;;  %v1457_v28 = vmul.f32 %v1364_v47, %v1288_v23  ;;  %v1420_v23 = vand.u32 2147483647, %v4515_v32 }
 0x39a   :  { %v1458_v53 = vmul.f32 %v1379_v6, %v1291_v55  ;;  %vm1391_vm7 = vcmp.eq.f32.partialorder %v1390_v19, 8.507059e+37  ;;  %v1444_v49 = vmul.f32 %v4559_v5, %v1443_v43  ;;  %v1429_v27 = vmul.f32 %v4540_v10, %v1428_v9 }
 0x39b   :  { %v1394_v22 = vsel %vm1391_vm7, %v1393_v21, %v1389_v52  ;;  %v1461_v34 = vadd.f32 %v1457_v28, %v4533_v44  ;;  %v1435_v44 = vand.u32 2147483647, %v4507_v57  ;;  %v1415_v9 = vadd.f32 %v4553_v24, %v1414_v39 }
 0x39c   :  { %v1462_v4 = vadd.f32 %v1458_v53, %v4536_v25  ;;  %v1445_v1 = vadd.f32 %v4559_v5, %v1444_v49  ;;  %v1430_v41 = vadd.f32 %v4540_v10, %v1429_v27  ;;  %v1450_v25 = vand.u32 2147483647, %v4521_v18 }
 0x39d   :  { %v1460_v55 = vadd.f32 %v1456_v48, %v4529_v30  ;;  %v1422_v43 = vand.u32 2147483648, %v4515_v32  ;;  %v1400_v30 = vadd.f32 %v4548_v59, %v1399_v45  ;;  %v1453_v53 = vor.u32 1.1754944e-38, %v1452_v36  ;;  %v5735_v36 = vld [vmem:[#allocation26_spill] sm:$0xff] }
 0x39e   :  { %2903 = vtanh.f32 %v1462_v4  ;;  %v1449_v18 = vsel %vm4647_vm2, %v4559_v5, %v1445_v1  ;;  %v1434_v57 = vsel %vm4639_vm1, %v4540_v10, %v1430_v41  ;;  %v1407_v19 = vand.u32 2147483648, %v4511_v42 }
 0x39f   :  { %v1293_v54 = vpop.f32.mrf.mxu3  ;;  %2905 = vtanh.f32 %v1461_v34  ;;  %vm1451_vm4 = vcmp.eq.f32.partialorder %v1450_v25, 8.507059e+37  ;;  %vm1436_vm5 = vcmp.eq.f32.partialorder %v1435_v44, 8.507059e+37  ;;  %v1419_v5 = vsel %vm1418_vm3, %v4553_v24, %v1415_v9  ;;  %v5738_v44 = vld [vmem:[#allocation20_spill] sm:$0xff] }
 0x3a0   :  { %v1294_v58 = vadd.f32 %v1293_v54, %v3567_v26  ;;  %v1454_v10 = vsel %vm1451_vm4, %v1453_v53, %v1449_v18  ;;  %v1423_v6 = vor.u32 1.1754944e-38, %v1422_v43  ;;  %vm1421_vm7 = vcmp.eq.f32.partialorder %v1420_v23, 8.507059e+37  ;;  %v5740_v53 = vld [vmem:[#allocation19_spill] sm:$0xff] }
 0x3a1   :  { %v1404_v32 = vsel %vm1403_vm6, %v4548_v59, %v1400_v30  ;;  %v1408_v47 = vor.u32 1.1754944e-38, %v1407_v19  ;;  %v1471_v28 = vsub.f32 1.0, %v1454_v10 }
 0x3a2   :  { %v1459_v12 = vmul.f32 %v1394_v22, %v1294_v58  ;;  %v1424_v63 = vsel %vm1421_vm7, %v1423_v6, %v1419_v5  ;;  %v1479_v22 = vmul.f32 %v1454_v10, %v4426_v56 }
 0x3a3   :  { %v1409_v27 = vsel %vm1406_vm8, %v1408_v47, %v1404_v32  ;;  %v1469_v39 = vsub.f32 1.0, %v1424_v63  ;;  %v1477_v58 = vmul.f32 %v1424_v63, %v4434_v20 }
 0x3a4   :  { %v1463_v16 = vadd.f32 %v1459_v12, %v4543_v37  ;;  %v1438_v37 = vor.u32 1.1754944e-38, %v1437_v62  ;;  %v2904_v52 = vpop.eup %2903  ;;  %v1468_v48 = vsub.f32 1.0, %v1409_v27  ;;  %v1476_v56 = vmul.f32 %v1409_v27, %v4438_v33  ;;  %v5736_v62 = vld [vmem:[#allocation23_spill] sm:$0xff] }
 0x3a5   :  { %v2906_v21 = vpop.eup %2905 }
 0x3a6   :  { %2907 = vtanh.f32 %v1463_v16  ;;  %v1439_v3 = vsel %vm1436_vm5, %v1438_v37, %v1434_v57  ;;  %v1473_v59 = vmul.f32 %v2906_v21, %v1469_v39  ;;  %v5739_v57 = vld [vmem:[#allocation22_spill] sm:$0xff]  ;;  %v5742_v21 = vld [vmem:[#allocation32_spill] sm:$0xff] }
 0x3a7   :  { %2909 = vtanh.f32 %v1460_v55  ;;  %v1470_v24 = vsub.f32 1.0, %v1439_v3  ;;  %v1478_v23 = vmul.f32 %v1439_v3, %v4430_v8 }
 0x3a8   :  { %v4680_v1 = vadd.f32 %v1477_v58, %v1473_v59  ;;  %v5746_v58 = vld [vmem:[#allocation24_spill] sm:$0xff] }
 0x3a9   :  { %v1474_v54 = vmul.f32 %v2904_v52, %v1470_v24  ;;  %v5741_v52 = vld [vmem:[#allocation34_spill] sm:$0xff] }
 0x3ab   :  { %v4676_v4 = vadd.f32 %v1478_v23, %v1474_v54 }
 0x3ac   :  { %v2908_v49 = vpop.eup %2907 }
 0x3ad   :  { %v1475_v38 = vmul.f32 %v2908_v49, %v1471_v28  ;;  %v2910_v45 = vpop.eup %2909  ;;  %v5743_v49 = vld [vmem:[#allocation28_spill] sm:$0xff] }
 0x3ae   :  { %v1472_v34 = vmul.f32 %v2910_v45, %v1468_v48  ;;  %v5745_v45 = vld [vmem:[#allocation27_spill] sm:$0xff] }
 0x3af   :  { %v4672_v42 = vadd.f32 %v1479_v22, %v1475_v38  ;;  %v5744_v22 = vld [vmem:[#allocation31_spill] sm:$0xff] }
 0x3b0   :  { %v4684_v41 = vadd.f32 %v1476_v56, %v1472_v34 }
 0x3b1   :  { %1554 = vmatpush.msra.mxu1 %v4672_v42 }
 0x3b3   :  { %1555 = vmatpush.msra.mxu1 %v4676_v4 }
 0x3b5   :  { %1556 = vmatpush.msra.mxu1 %v4680_v1 }
 0x3b7   :  { %1557 = vmatpush.msra.mxu1 %v4684_v41 }
 0x3b8   :  { %2650 = vmatmul.msk.f32.vlgmr.msra.gmra.mxu1 %vm160_vm0, %v4129_v2  ;;  %v1506_v2 = vpop.f32.mrf.mxu0 }
 0x3c0   :  { %2651 = vmatmul.msk.f32.gmra.mxu1 %vm160_vm0, %v4136_v61  ;;  %v1509_v61 = vpop.f32.mrf.mxu0 }
 0x3c8   :  { %2652 = vmatmul.msk.f32.gmra.mxu1 %vm160_vm0, %v4143_v46  ;;  %v1512_v46 = vpop.f32.mrf.mxu0 }
 0x3c9   :  { %v1513_v9 = vadd.f32 %v1512_v46, %v5738_v44 }
 0x3d0   :  { %2653 = vmatmul.msk.f32.gmra.mxu1 %vm160_vm0, %v4150_v13  ;;  %v1515_v13 = vpop.f32.mrf.mxu0 }
 0x3d1   :  { %v1516_v37 = vadd.f32 %v1515_v13, %v5740_v53 }
 0x3d8   :  { %2654 = vmatmul.msk.f32.gmra.mxu1 %vm160_vm0, %v4157_v11 }
 0x3e0   :  { %2655 = vmatmul.msk.f32.gmra.mxu1 %vm160_vm0, %v4164_v0  ;;  %v1518_v0 = vpop.f32.mrf.mxu0 }
 0x3e1   :  { %v1519_v27 = vadd.f32 %v1518_v0, %v5743_v49 }
 0x3e8   :  { %2656 = vmatmul.msk.f32.gmra.mxu1 %vm160_vm0, %v4171_v40 }
 0x3f0   :  { %2657 = vmatmul.msk.f32.gmra.mxu1 %vm160_vm0, %v4178_v14  ;;  %v1521_v14 = vpop.f32.mrf.mxu0 }
 0x3f1   :  { %v1522_v54 = vadd.f32 %v1521_v14, %v5744_v22 }
 0x3f8   :  { %2658 = vmatmul.msk.f32.gmra.mxu1 %vm160_vm0, %v4185_v7  ;;  %v1524_v20 = vpop.f32.mrf.mxu0 }
 0x3f9   :  { %v1525_v23 = vadd.f32 %v1524_v20, %v5745_v45 }
 0x400   :  { %2659 = vmatmul.msk.f32.gmra.mxu1 %vm160_vm0, %v4192_v60  ;;  %v5734_v60 = vld [vmem:[#allocation18_spill] sm:$0xff]  ;;  %v1527_v55 = vpop.f32.mrf.mxu0 }
 0x408   :  { %2660 = vmatmul.msk.f32.gmra.mxu1 %vm160_vm0, %v4199_v17  ;;  %v1507_v17 = vadd.f32 %v1506_v2, %v5735_v36  ;;  %v4719_v6 = vpop.f32.mrf.mxu0 }
 0x410   :  { %2661 = vmatmul.msk.f32.gmra.mxu1 %vm160_vm0, %v4206_v15  ;;  %v1510_v15 = vadd.f32 %v1509_v61, %v5737_v29 }
 0x435   :  { %v1559_v11 = vpop.f32.mrf.mxu1 }
 0x436   :  { %v1560_v33 = vadd.f32 %v1559_v11, %v5650_v35  ;;  %v1533_v11 = vpop.f32.mrf.mxu0 }
 0x438   :  { %v1595_v16 = vadd.f32 %v1560_v33, %v1507_v17 }
 0x43a   :  { %v2662_v19 = vmul.f32 -1.442695, %v1595_v16 }
 0x43c   :  { %2911 = vpow2.f32 %v2662_v19 }
 0x43d   :  { %v1562_v40 = vpop.f32.mrf.mxu1 }
 0x43e   :  { %v1563_v12 = vadd.f32 %v1562_v40, %v5734_v60 }
 0x440   :  { %v1596_v43 = vadd.f32 %v1563_v12, %v1510_v15  ;;  %v5748_v12 = vld [vmem:[#allocation29_spill] sm:$0xff] }
 0x442   :  { %v2663_v5 = vmul.f32 -1.442695, %v1596_v43  ;;  %v2912_v47 = vpop.eup %2911 }
 0x443   :  { %v4726_v59 = vadd.f32 1.0, %v2912_v47 }
 0x444   :  { %2913 = vpow2.f32 %v2663_v5 }
 0x445   :  { %v1565_v8 = vpop.f32.mrf.mxu1  ;;  %vm1640_vm10 = vweird.f32 %v4726_v59 }
 0x446   :  { %v1566_v25 = vadd.f32 %v1565_v8, %v5736_v62 }
 0x448   :  { %v1597_v18 = vadd.f32 %v1566_v25, %v1513_v9 }
 0x44a   :  { %v2664_v31 = vmul.f32 -1.442695, %v1597_v18  ;;  %v2914_v24 = vpop.eup %2913  ;;  %v1536_v18 = vpop.f32.mrf.mxu0 }
 0x44b   :  { %v4729_v56 = vadd.f32 1.0, %v2914_v24 }
 0x44c   :  { %2915 = vpow2.f32 %v2664_v31 }
 0x44d   :  { %v1568_v7 = vpop.f32.mrf.mxu1  ;;  %vm1655_vm12 = vweird.f32 %v4729_v56 }
 0x44e   :  { %v1569_v30 = vadd.f32 %v1568_v7, %v5739_v57  ;;  %v5747_v7 = vld [vmem:[#allocation21_spill] sm:$0xff] }
 0x44f   :  { %v1528_v33 = vadd.f32 %v1527_v55, %v5747_v7 }
 0x450   :  { %v1598_v10 = vadd.f32 %v1569_v30, %v1516_v37 }
 0x452   :  { %v2665_v32 = vmul.f32 -1.442695, %v1598_v10  ;;  %v2916_v38 = vpop.eup %2915 }
 0x453   :  { %v4731_v61 = vadd.f32 1.0, %v2916_v38 }
 0x454   :  { %2917 = vpow2.f32 %v2665_v32 }
 0x455   :  { %v1571_v50 = vpop.f32.mrf.mxu1  ;;  %2919 = vrcp.f32 %v4726_v59  ;;  %vm1670_vm1 = vweird.f32 %v4731_v61 }
 0x456   :  { %v1572_v63 = vadd.f32 %v1571_v50, %v5741_v52  ;;  %2921 = vrcp.f32 %v4729_v56 }
 0x457   :  { %2923 = vrcp.f32 %v4731_v61 }
 0x458   :  { %v1599_v48 = vadd.f32 %v1572_v63, %v1519_v27 }
 0x45a   :  { %v2918_v13 = vpop.eup %2917  ;;  %v2666_v0 = vmul.f32 -1.442695, %v1599_v48  ;;  %v1646_v48 = vand.u32 2147483648, %v4726_v59 }
 0x45b   :  { %v4736_v8 = vadd.f32 1.0, %v2918_v13  ;;  %v4740_v25 = vpop.eup %2919 }
 0x45c   :  { %v4743_v9 = vpop.eup %2921  ;;  %v1636_v32 = vmul.f32 %v4740_v25, %v4726_v59  ;;  %vm1641_vm11 = vweird.f32 %v4740_v25 }
 0x45d   :  { %v1574_v3 = vpop.f32.mrf.mxu1  ;;  %v4745_v16 = vpop.eup %2923  ;;  %v1651_v55 = vmul.f32 %v4743_v9, %v4729_v56  ;;  %vm1656_vm9 = vweird.f32 %v4743_v9  ;;  %vm1685_vm4 = vweird.f32 %v4736_v8  ;;  %vm4850_vm5 = vmor %vm1640_vm10, %vm1641_vm11 }
 0x45e   :  { %v1575_v28 = vadd.f32 %v1574_v3, %v5742_v21  ;;  %v1666_v10 = vmul.f32 %v4745_v16, %v4731_v61  ;;  %vm1671_vm13 = vweird.f32 %v4745_v16  ;;  %vm4816_vm15 = vmor %vm1655_vm12, %vm1656_vm9 }
 0x45f   :  { %v1652_v47 = vsub.f32 1.0, %v1651_v55  ;;  %v1676_v55 = vand.u32 2147483648, %v4731_v61  ;;  %vm4834_vm2 = vmor %vm1670_vm1, %vm1671_vm13 }
 0x460   :  { %v1600_v2 = vadd.f32 %v1575_v28, %v1522_v54  ;;  %v1667_v27 = vsub.f32 1.0, %v1666_v10  ;;  %v1637_v54 = vsub.f32 1.0, %v1636_v32  ;;  %v1659_v32 = vand.u32 2147483647, %v4729_v56 }
 0x462   :  { %v2667_v14 = vmul.f32 -1.442695, %v1600_v2  ;;  %vm1660_vm6 = vcmp.eq.f32.partialorder %v1659_v32, 8.507059e+37 }
 0x465   :  { %v1577_v39 = vpop.f32.mrf.mxu1 }
 0x466   :  { %v1578_v34 = vadd.f32 %v1577_v39, %v5746_v58  ;;  %v1653_v39 = vmul.f32 %v4743_v9, %v1652_v47 }
 0x468   :  { %v1601_v46 = vadd.f32 %v1578_v34, %v1525_v23  ;;  %v1539_v23 = vpop.f32.mrf.mxu0 }
 0x46a   :  { %v2668_v40 = vmul.f32 -1.442695, %v1601_v46  ;;  %v5749_v46 = vld [vmem:[#allocation35_spill] sm:$0xff] }
 0x46b   :  { %v4775_v13 = vadd.f32 %v4719_v6, %v5749_v46  ;;  %v1654_v6 = vadd.f32 %v4743_v9, %v1653_v39 }
 0x46c   :  { %2925 = vpow2.f32 %v2668_v40  ;;  %v5750_v40 = vld [vmem:[#allocation39_spill] sm:$0xff] }
 0x46d   :  { %v1580_v20 = vpop.f32.mrf.mxu1  ;;  %2927 = vpow2.f32 %v2666_v0  ;;  %v1668_v0 = vmul.f32 %v4745_v16, %v1667_v27 }
 0x46e   :  { %v1581_v17 = vadd.f32 %v1580_v20, %v5748_v12  ;;  %2929 = vpow2.f32 %v2667_v14  ;;  %v4779_v14 = vadd.f32 %v1533_v11, %v5750_v40  ;;  %v5751_v20 = vld [vmem:[#allocation36_spill] sm:$0xff] }
 0x46f   :  { %2931 = vrcp.f32 %v4736_v8  ;;  %v1669_v47 = vadd.f32 %v4745_v16, %v1668_v0  ;;  %v1674_v0 = vand.u32 2147483647, %v4731_v61 }
 0x470   :  { %v1602_v15 = vadd.f32 %v1581_v17, %v1528_v33  ;;  %v4782_v33 = vadd.f32 %v1536_v18, %v5751_v20  ;;  %v1638_v17 = vmul.f32 %v4740_v25, %v1637_v54  ;;  %v1647_v18 = vor.u32 1.1754944e-38, %v1646_v48 }
 0x471   :  { %vm1675_vm7 = vcmp.eq.f32.partialorder %v1674_v0, 8.507059e+37 }
 0x472   :  { %v2669_v50 = vmul.f32 -1.442695, %v1602_v15  ;;  %v2926_v43 = vpop.eup %2925  ;;  %v1644_v15 = vand.u32 2147483647, %v4726_v59  ;;  %v1639_v27 = vadd.f32 %v4740_v25, %v1638_v17  ;;  %v1677_v17 = vor.u32 1.1754944e-38, %v1676_v55 }
 0x473   :  { %v2928_v30 = vpop.eup %2927  ;;  %v4753_v31 = vadd.f32 1.0, %v2926_v43  ;;  %v5752_v43 = vld [vmem:[#allocation30_spill] sm:$0xff]  ;;  %v1691_v55 = vand.u32 2147483648, %v4736_v8 }
 0x474   :  { %2933 = vpow2.f32 %v2669_v50  ;;  %v2930_v37 = vpop.eup %2929  ;;  %v4757_v3 = vadd.f32 1.0, %v2928_v30  ;;  %v4789_v30 = vadd.f32 %v1539_v23, %v5752_v43  ;;  %vm4810_vm14 = vcmp.eq.f32.partialorder %v1644_v15, 8.507059e+37 }
 0x475   :  { %v4749_v19 = vpop.f32.mrf.mxu1  ;;  %v4751_v5 = vpop.eup %2931  ;;  %v4761_v63 = vadd.f32 1.0, %v2930_v37  ;;  %2935 = vrcp.f32 %v4753_v31  ;;  %v1661_v23 = vand.u32 2147483648, %v4729_v56  ;;  %vm1730_vm1 = vweird.f32 %v4753_v31 }
 0x476   :  { %v1681_v28 = vmul.f32 %v4751_v5, %v4736_v8  ;;  %2937 = vrcp.f32 %v4757_v3  ;;  %vm1686_vm3 = vweird.f32 %v4751_v5  ;;  %v1584_v58 = vadd.f32 %v4749_v19, %v5696_v51 }
 0x477   :  { %2939 = vrcp.f32 %v4761_v63  ;;  %vm1687_vm8 = vmor %vm1685_vm4, %vm1686_vm3  ;;  %vm1715_vm10 = vweird.f32 %v4761_v63  ;;  %vm1700_vm13 = vweird.f32 %v4757_v3 }
 0x478   :  { %v1682_v2 = vsub.f32 1.0, %v1681_v28 }
 0x47a   :  { %v2934_v24 = vpop.eup %2933  ;;  %v1683_v37 = vmul.f32 %v4751_v5, %v1682_v2  ;;  %v1658_v2 = vsel %vm4816_vm15, %v4743_v9, %v1654_v6  ;;  %v5759_v9 = vld [vmem:[#allocation37_spill] sm:$0xff]  ;;  %v1673_v6 = vsel %vm4834_vm2, %v4745_v16, %v1669_v47  ;;  %v1643_v16 = vsel %vm4850_vm5, %v4740_v25, %v1639_v27 }
 0x47b   :  { %v4767_v38 = vadd.f32 1.0, %v2934_v24  ;;  %v4786_v50 = vpop.eup %2935  ;;  %v1662_v47 = vor.u32 1.1754944e-38, %v1661_v23  ;;  %v1648_v32 = vsel %vm4810_vm14, %v1647_v18, %v1643_v16  ;;  %v1704_v16 = vand.u32 2147483647, %v4757_v3 }
 0x47c   :  { %v4794_v11 = vpop.eup %2937  ;;  %v1726_v24 = vmul.f32 %v4786_v50, %v4753_v31  ;;  %v1684_v40 = vadd.f32 %v4751_v5, %v1683_v37  ;;  %v5762_v37 = vld [vmem:[#allocation33_spill] sm:$0xff]  ;;  %vm1731_vm14 = vweird.f32 %v4786_v50 }
 0x47d   :  { %2941 = vrcp.f32 %v4767_v38  ;;  %v1586_v34 = vpop.f32.mrf.mxu1  ;;  %v4799_v10 = vpop.eup %2939  ;;  %v1696_v15 = vmul.f32 %v4794_v11, %v4757_v3  ;;  %vm1701_vm11 = vweird.f32 %v4794_v11  ;;  %vm1745_vm2 = vweird.f32 %v4767_v38  ;;  %vm4885_vm3 = vmor %vm1730_vm1, %vm1731_vm14 }
 0x47e   :  { %v1711_v43 = vmul.f32 %v4799_v10, %v4761_v63  ;;  %v1587_v12 = vadd.f32 %v1586_v34, %v5762_v37  ;;  %v1688_v59 = vsel %vm1687_vm8, %v4751_v5, %v1684_v40  ;;  %v1663_v34 = vsel %vm1660_vm6, %v1662_v47, %v1658_v2  ;;  %vm1702_vm8 = vmor %vm1700_vm13, %vm1701_vm11 }
 0x47f   :  { %v1697_v7 = vsub.f32 1.0, %v1696_v15  ;;  %vm1716_vm12 = vweird.f32 %v4799_v10  ;;  %v4985_v15 = vld [vmem:[%s5497_s2 + $0x38] sm:$0xff] }
 0x480   :  { %v1712_v56 = vsub.f32 1.0, %v1711_v43  ;;  %v1755_v43 = vmul.f32 %v1648_v32, %v1584_v58  ;;  %v1736_v58 = vand.u32 2147483648, %v4753_v31  ;;  %vm1717_vm5 = vmor %vm1715_vm10, %vm1716_vm12  ;;  %vm1705_vm10 = vcmp.eq.f32.partialorder %v1704_v16, 8.507059e+37 }
 0x481   :  { %v1698_v40 = vmul.f32 %v4794_v11, %v1697_v7  ;;  %v1751_v7 = vand.u32 2147483648, %v4767_v38 }
 0x482   :  { %v1713_v19 = vmul.f32 %v4799_v10, %v1712_v56 }
 0x483   :  { %v4805_v28 = vpop.eup %2941 }
 0x484   :  { %v1741_v48 = vmul.f32 %v4805_v28, %v4767_v38  ;;  %vm1746_vm15 = vweird.f32 %v4805_v28 }
 0x485   :  { %v1589_v20 = vpop.f32.mrf.mxu1  ;;  %vm4893_vm4 = vmor %vm1745_vm2, %vm1746_vm15 }
 0x486   :  { %v1590_v61 = vadd.f32 %v1589_v20, %v5759_v9  ;;  %v1742_v39 = vsub.f32 1.0, %v1741_v48  ;;  %v1689_v20 = vand.u32 2147483647, %v4736_v8  ;;  %v1727_v9 = vsub.f32 1.0, %v1726_v24 }
 0x487   :  { %v1678_v48 = vsel %vm1675_vm7, %v1677_v17, %v1673_v6  ;;  %v1692_v8 = vor.u32 1.1754944e-38, %v1691_v55  ;;  %v1756_v24 = vmul.f32 %v1663_v34, %v1587_v12  ;;  %v1719_v12 = vand.u32 2147483647, %v4761_v63  ;;  %v1805_v55 = vpop.f32.mrf.mxu2 }
 0x488   :  { %v1757_v37 = vmul.f32 %v1678_v48, %v1590_v61  ;;  %vm1690_vm9 = vcmp.eq.f32.partialorder %v1689_v20, 8.507059e+37  ;;  %v1743_v46 = vmul.f32 %v4805_v28, %v1742_v39  ;;  %v1728_v25 = vmul.f32 %v4786_v50, %v1727_v9 }
 0x489   :  { %v1693_v27 = vsel %vm1690_vm9, %v1692_v8, %v1688_v59  ;;  %v1760_v23 = vadd.f32 %v1756_v24, %v4779_v14  ;;  %v1734_v14 = vand.u32 2147483647, %v4753_v31  ;;  %v1714_v9 = vadd.f32 %v4799_v10, %v1713_v19 }
 0x48a   :  { %v1761_v54 = vadd.f32 %v1757_v37, %v4782_v33  ;;  %v1744_v2 = vadd.f32 %v4805_v28, %v1743_v46  ;;  %v1729_v0 = vadd.f32 %v4786_v50, %v1728_v25  ;;  %v1749_v33 = vand.u32 2147483647, %v4767_v38 }
 0x48b   :  { %v1759_v61 = vadd.f32 %v1755_v43, %v4775_v13  ;;  %v1721_v39 = vand.u32 2147483648, %v4761_v63  ;;  %v1699_v13 = vadd.f32 %v4794_v11, %v1698_v40  ;;  %v1752_v37 = vor.u32 1.1754944e-38, %v1751_v7  ;;  %v4964_v7 = vld [vmem:[%s5497_s2 + $0x20] sm:$0xff] }
 0x48c   :  { %2943 = vtanh.f32 %v1761_v54  ;;  %v1748_v38 = vsel %vm4893_vm4, %v4805_v28, %v1744_v2  ;;  %v1733_v31 = vsel %vm4885_vm3, %v4786_v50, %v1729_v0  ;;  %v1706_v20 = vand.u32 2147483648, %v4757_v3 }
 0x48d   :  { %v1592_v5 = vpop.f32.mrf.mxu1  ;;  %2945 = vtanh.f32 %v1760_v23  ;;  %vm1750_vm6 = vcmp.eq.f32.partialorder %v1749_v33, 8.507059e+37  ;;  %vm1735_vm7 = vcmp.eq.f32.partialorder %v1734_v14, 8.507059e+37  ;;  %v1718_v28 = vsel %vm1717_vm5, %v4799_v10, %v1714_v9  ;;  %v4978_v33 = vld [vmem:[%s5497_s2 + $0x30] sm:$0xff]  ;;  %v4992_v14 = vld [vmem:[%s5497_s2 + $0x40] sm:$0xff]  ;;  %v4999_v9 = vld [vmem:[%s5497_s2 + $0x48] sm:$0xff] }
 0x48e   :  { %v1593_v18 = vadd.f32 %v1592_v5, %v3567_v26  ;;  %v1753_v50 = vsel %vm1750_vm6, %v1752_v37, %v1748_v38  ;;  %v1722_v48 = vor.u32 1.1754944e-38, %v1721_v39  ;;  %vm1720_vm9 = vcmp.eq.f32.partialorder %v1719_v12, 8.507059e+37 }
 0x48f   :  { %v1703_v63 = vsel %vm1702_vm8, %v4794_v11, %v1699_v13  ;;  %v1707_v34 = vor.u32 1.1754944e-38, %v1706_v20  ;;  %v1770_v24 = vsub.f32 1.0, %v1753_v50  ;;  %v1808_v39 = vpop.f32.mrf.mxu2 }
 0x490   :  { %v1758_v17 = vmul.f32 %v1693_v27, %v1593_v18  ;;  %v1723_v56 = vsel %vm1720_vm9, %v1722_v48, %v1718_v28  ;;  %v1778_v27 = vmul.f32 %v1753_v50, %v4672_v42 }
 0x491   :  { %v1708_v25 = vsel %vm1705_vm10, %v1707_v34, %v1703_v63  ;;  %v1768_v19 = vsub.f32 1.0, %v1723_v56  ;;  %v1776_v18 = vmul.f32 %v1723_v56, %v4680_v1  ;;  %v4943_v1 = vld [vmem:[%s5497_s2 + $0x8] sm:$0xff]  ;;  %v1806_v63 = vadd.f32 %v1805_v55, %v5735_v36 }
 0x492   :  { %v1762_v6 = vadd.f32 %v1758_v17, %v4789_v30  ;;  %v1737_v30 = vor.u32 1.1754944e-38, %v1736_v58  ;;  %v2944_v59 = vpop.eup %2943  ;;  %v1767_v43 = vsub.f32 1.0, %v1708_v25  ;;  %v1775_v42 = vmul.f32 %v1708_v25, %v4684_v41  ;;  %v4950_v41 = vld [vmem:[%s5497_s2 + $0x10] sm:$0xff]  ;;  %v4957_v17 = vld [vmem:[%s5497_s2 + $0x18] sm:$0xff]  ;;  %v4971_v58 = vld [vmem:[%s5497_s2 + $0x28] sm:$0xff] }
 0x493   :  { %v2946_v8 = vpop.eup %2945  ;;  %v1809_v56 = vadd.f32 %v1808_v39, %v5737_v29 }
 0x494   :  { %2947 = vtanh.f32 %v1762_v6  ;;  %v1738_v47 = vsel %vm1735_vm7, %v1737_v30, %v1733_v31  ;;  %v1772_v11 = vmul.f32 %v2946_v8, %v1768_v19  ;;  %v5013_v6 = vld [vmem:[%s5497_s2 + $0x58] sm:$0xff] }
 0x495   :  { %2949 = vtanh.f32 %v1759_v61  ;;  %v1769_v10 = vsub.f32 1.0, %v1738_v47  ;;  %v1777_v12 = vmul.f32 %v1738_v47, %v4676_v4  ;;  %v4936_v4 = vld [vmem:[%s5497_s2] sm:$0xff]  ;;  %v5006_v61 = vld [vmem:[%s5497_s2 + $0x50] sm:$0xff]  ;;  %s3117_s2 = smov [#allocation5]  }
 0x496   :  { %v4926_v2 = vadd.f32 %v1776_v18, %v1772_v11  ;;  %s2495_s25 = sshll.u32 %s3117_s2, 4  ;;  %s2496_s25 = int_to_ptr.vmem [resolvable:$true] %s2495_s25 }
 0x497   :  { %v1773_v5 = vmul.f32 %v2944_v59, %v1769_v10  ;;  %v1811_v38 = vpop.f32.mrf.mxu2 }
 0x498   :  { %v1812_v34 = vadd.f32 %v1811_v38, %v5738_v44 }
 0x499   :  { %v4922_v54 = vadd.f32 %v1777_v12, %v1773_v5 }
 0x49a   :  { %v2948_v46 = vpop.eup %2947 }
 0x49b   :  { %v1774_v32 = vmul.f32 %v2948_v46, %v1770_v24  ;;  %v2950_v40 = vpop.eup %2949 }
 0x49c   :  { %v1771_v23 = vmul.f32 %v2950_v40, %v1767_v43 }
 0x49d   :  { %v4918_v3 = vadd.f32 %v1778_v27, %v1774_v32 }
 0x49e   :  { %v4930_v0 = vadd.f32 %v1775_v42, %v1771_v23 }
 0x49f   :  { %1853 = vmatpush.msrb.mxu3 %v4918_v3  ;;  %v1814_v31 = vpop.f32.mrf.mxu2 }
 0x4a0   :  { %v1815_v27 = vadd.f32 %v1814_v31, %v5740_v53 }
 0x4a1   :  { %1854 = vmatpush.msrb.mxu3 %v4922_v54 }
 0x4a3   :  { %1855 = vmatpush.msrb.mxu3 %v4926_v2 }
 0x4a5   :  { %1856 = vmatpush.msrb.mxu3 %v4930_v0 }
 0x4a6   :  { %2682 = vmatmul.msk.f32.vlgmr.msrb.gmra.mxu3 %vm160_vm0, %v4936_v4 }
 0x4a7   :  { %v1817_v37 = vpop.f32.mrf.mxu2 }
 0x4a8   :  { %v1818_v38 = vadd.f32 %v1817_v37, %v5743_v49 }
 0x4ae   :  { %2683 = vmatmul.msk.f32.gmra.mxu3 %vm160_vm0, %v4943_v1 }
 0x4af   :  { %v1820_v20 = vpop.f32.mrf.mxu2 }
 0x4b6   :  { %2684 = vmatmul.msk.f32.gmra.mxu3 %vm160_vm0, %v4950_v41 }
 0x4b7   :  { %v1823_v16 = vpop.f32.mrf.mxu2 }
 0x4be   :  { %2685 = vmatmul.msk.f32.gmra.mxu3 %vm160_vm0, %v4957_v17 }
 0x4bf   :  { %v1826_v8 = vpop.f32.mrf.mxu2 }
 0x4c6   :  { %2686 = vmatmul.msk.f32.gmra.mxu3 %vm160_vm0, %v4964_v7 }
 0x4c7   :  { %v5025_v43 = vpop.f32.mrf.mxu2 }
 0x4ce   :  { %2687 = vmatmul.msk.f32.gmra.mxu3 %vm160_vm0, %v4971_v58 }
 0x4d6   :  { %2688 = vmatmul.msk.f32.gmra.mxu3 %vm160_vm0, %v4978_v33 }
 0x4de   :  { %2689 = vmatmul.msk.f32.gmra.mxu3 %vm160_vm0, %v4985_v15 }
 0x4e6   :  { %2690 = vmatmul.msk.f32.gmra.mxu3 %vm160_vm0, %v4992_v14 }
 0x4ee   :  { %2691 = vmatmul.msk.f32.gmra.mxu3 %vm160_vm0, %v4999_v9 }
 0x4f6   :  { %2692 = vmatmul.msk.f32.gmra.mxu3 %vm160_vm0, %v5006_v61 }
 0x4fe   :  { %2693 = vmatmul.msk.f32.gmra.mxu3 %vm160_vm0, %v5013_v6 }
 0x529   :  { %v1858_v13 = vpop.f32.mrf.mxu3 }
 0x52a   :  { %v1859_v47 = vadd.f32 %v1858_v13, %v5650_v35  ;;  %v1821_v13 = vadd.f32 %v1820_v20, %v5744_v22 }
 0x52c   :  { %v1894_v24 = vadd.f32 %v1859_v47, %v1806_v63 }
 0x52e   :  { %v2694_v5 = vmul.f32 -1.442695, %v1894_v24 }
 0x530   :  { %2951 = vpow2.f32 %v2694_v5 }
 0x531   :  { %v1861_v30 = vpop.f32.mrf.mxu3 }
 0x532   :  { %v1862_v48 = vadd.f32 %v1861_v30, %v5734_v60 }
 0x534   :  { %v1895_v46 = vadd.f32 %v1862_v48, %v1809_v56  ;;  %v5767_v48 = vld [vmem:[#allocation24_spill] sm:$0xff] }
 0x536   :  { %v2695_v19 = vmul.f32 -1.442695, %v1895_v46  ;;  %v2952_v42 = vpop.eup %2951  ;;  %v1832_v46 = vpop.f32.mrf.mxu2 }
 0x538   :  { %2953 = vpow2.f32 %v2695_v19  ;;  %v5769_v19 = vld [vmem:[#allocation29_spill] sm:$0xff] }
 0x539   :  { %v1864_v28 = vpop.f32.mrf.mxu3 }
 0x53a   :  { %v1865_v59 = vadd.f32 %v1864_v28, %v5736_v62  ;;  %v1824_v28 = vadd.f32 %v1823_v16, %v5745_v45 }
 0x53c   :  { %v1896_v25 = vadd.f32 %v1865_v59, %v1812_v34 }
 0x53e   :  { %v2696_v40 = vmul.f32 -1.442695, %v1896_v25  ;;  %v2954_v39 = vpop.eup %2953 }
 0x53f   :  { %v5035_v59 = vadd.f32 1.0, %v2954_v39  ;;  %v1835_v39 = vpop.f32.mrf.mxu2 }
 0x540   :  { %2955 = vpow2.f32 %v2696_v40 }
 0x541   :  { %v1867_v50 = vpop.f32.mrf.mxu3  ;;  %vm1954_vm14 = vweird.f32 %v5035_v59 }
 0x542   :  { %v1868_v32 = vadd.f32 %v1867_v50, %v5739_v57  ;;  %v5032_v50 = vadd.f32 1.0, %v2952_v42 }
 0x544   :  { %v1897_v12 = vadd.f32 %v1868_v32, %v1815_v27  ;;  %v5768_v27 = vld [vmem:[#allocation21_spill] sm:$0xff]  ;;  %vm1939_vm12 = vweird.f32 %v5032_v50 }
 0x545   :  { %v1827_v5 = vadd.f32 %v1826_v8, %v5768_v27 }
 0x546   :  { %v2697_v18 = vmul.f32 -1.442695, %v1897_v12  ;;  %v2956_v31 = vpop.eup %2955 }
 0x547   :  { %v5037_v34 = vadd.f32 1.0, %v2956_v31 }
 0x548   :  { %2957 = vpow2.f32 %v2697_v18 }
 0x549   :  { %v1870_v10 = vpop.f32.mrf.mxu3  ;;  %2959 = vrcp.f32 %v5032_v50  ;;  %vm1969_vm3 = vweird.f32 %v5037_v34 }
 0x54a   :  { %v1871_v23 = vadd.f32 %v1870_v10, %v5741_v52  ;;  %2961 = vrcp.f32 %v5035_v59 }
 0x54b   :  { %2963 = vrcp.f32 %v5037_v34 }
 0x54c   :  { %v1898_v47 = vadd.f32 %v1871_v23, %v1818_v38 }
 0x54e   :  { %v2958_v10 = vpop.eup %2957  ;;  %v2698_v37 = vmul.f32 -1.442695, %v1898_v47 }
 0x54f   :  { %v5042_v25 = vadd.f32 1.0, %v2958_v10  ;;  %v5046_v12 = vpop.eup %2959 }
 0x550   :  { %v5049_v18 = vpop.eup %2961  ;;  %vm1940_vm13 = vweird.f32 %v5046_v12 }
 0x551   :  { %v1873_v11 = vpop.f32.mrf.mxu3  ;;  %v5051_v23 = vpop.eup %2963  ;;  %v1950_v8 = vmul.f32 %v5049_v18, %v5035_v59  ;;  %vm1955_vm11 = vweird.f32 %v5049_v18  ;;  %vm1984_vm6 = vweird.f32 %v5042_v25  ;;  %vm5156_vm7 = vmor %vm1939_vm12, %vm1940_vm13 }
 0x552   :  { %v1874_v55 = vadd.f32 %v1873_v11, %v5742_v21  ;;  %v1965_v47 = vmul.f32 %v5051_v23, %v5037_v34  ;;  %v5773_v21 = vld [vmem:[#allocation30_spill] sm:$0xff]  ;;  %vm1970_vm15 = vweird.f32 %v5051_v23  ;;  %vm5122_vm2 = vmor %vm1954_vm14, %vm1955_vm11 }
 0x553   :  { %v1951_v10 = vsub.f32 1.0, %v1950_v8  ;;  %v5770_v8 = vld [vmem:[#allocation35_spill] sm:$0xff]  ;;  %vm5140_vm4 = vmor %vm1969_vm3, %vm1970_vm15 }
 0x554   :  { %v1899_v56 = vadd.f32 %v1874_v55, %v1821_v13 }
 0x556   :  { %v2699_v16 = vmul.f32 -1.442695, %v1899_v56  ;;  %v1935_v56 = vmul.f32 %v5046_v12, %v5032_v50 }
 0x559   :  { %v1876_v30 = vpop.f32.mrf.mxu3 }
 0x55a   :  { %v1877_v63 = vadd.f32 %v1876_v30, %v5767_v48  ;;  %v1943_v48 = vand.u32 2147483647, %v5032_v50 }
 0x55c   :  { %v1900_v24 = vadd.f32 %v1877_v63, %v1824_v28  ;;  %vm5116_vm1 = vcmp.eq.f32.partialorder %v1943_v48, 8.507059e+37 }
 0x55e   :  { %v2700_v20 = vmul.f32 -1.442695, %v1900_v24 }
 0x560   :  { %2965 = vpow2.f32 %v2700_v20 }
 0x561   :  { %v1879_v32 = vpop.f32.mrf.mxu3  ;;  %2967 = vpow2.f32 %v2698_v37 }
 0x562   :  { %v1880_v40 = vadd.f32 %v1879_v32, %v5769_v19  ;;  %2969 = vpow2.f32 %v2699_v16  ;;  %v1966_v16 = vsub.f32 1.0, %v1965_v47 }
 0x563   :  { %2971 = vrcp.f32 %v5042_v25 }
 0x564   :  { %v1901_v11 = vadd.f32 %v1880_v40, %v1827_v5  ;;  %v1936_v5 = vsub.f32 1.0, %v1935_v56  ;;  %v1952_v40 = vmul.f32 %v5049_v18, %v1951_v10  ;;  %v1967_v47 = vmul.f32 %v5051_v23, %v1966_v16  ;;  %v5772_v56 = vld [vmem:[#allocation36_spill] sm:$0xff] }
 0x565   :  { %v5088_v27 = vadd.f32 %v1835_v39, %v5772_v56  ;;  %v1975_v16 = vand.u32 2147483648, %v5037_v34 }
 0x566   :  { %v2701_v42 = vmul.f32 -1.442695, %v1901_v11  ;;  %v2966_v55 = vpop.eup %2965  ;;  %v1838_v11 = vpop.f32.mrf.mxu2  ;;  %v1937_v10 = vmul.f32 %v5046_v12, %v1936_v5 }
 0x567   :  { %v2968_v38 = vpop.eup %2967  ;;  %v5059_v28 = vadd.f32 1.0, %v2966_v55  ;;  %v1976_v49 = vor.u32 1.1754944e-38, %v1975_v16  ;;  %v1990_v16 = vand.u32 2147483648, %v5042_v25 }
 0x568   :  { %2973 = vpow2.f32 %v2701_v42  ;;  %v2970_v31 = vpop.eup %2969  ;;  %v5063_v63 = vadd.f32 1.0, %v2968_v38  ;;  %v1945_v42 = vand.u32 2147483648, %v5032_v50 }
 0x569   :  { %v5055_v13 = vpop.f32.mrf.mxu3  ;;  %v5057_v30 = vpop.eup %2971  ;;  %v5067_v24 = vadd.f32 1.0, %v2970_v31  ;;  %2975 = vrcp.f32 %v5059_v28  ;;  %v5081_v31 = vadd.f32 %v5025_v43, %v5770_v8  ;;  %v1953_v43 = vadd.f32 %v5049_v18, %v1952_v40 }
 0x56a   :  { %v1980_v37 = vmul.f32 %v5057_v30, %v5042_v25  ;;  %2977 = vrcp.f32 %v5063_v63  ;;  %v1946_v39 = vor.u32 1.1754944e-38, %v1945_v42  ;;  %v1968_v40 = vadd.f32 %v5051_v23, %v1967_v47 }
 0x56b   :  { %2979 = vrcp.f32 %v5067_v24  ;;  %v1938_v8 = vadd.f32 %v5046_v12, %v1937_v10  ;;  %v1960_v47 = vand.u32 2147483648, %v5035_v59  ;;  %v1957_v48 = vsel %vm5122_vm2, %v5049_v18, %v1953_v43  ;;  %v5780_v18 = vld [vmem:[#allocation37_spill] sm:$0xff] }
 0x56c   :  { %v1981_v38 = vsub.f32 1.0, %v1980_v37  ;;  %v5095_v37 = vadd.f32 %v1838_v11, %v5773_v21  ;;  %v1958_v11 = vand.u32 2147483647, %v5035_v59  ;;  %v1973_v10 = vand.u32 2147483647, %v5037_v34 }
 0x56d   :  { %vm1985_vm5 = vweird.f32 %v5057_v30  ;;  %v1972_v43 = vsel %vm5140_vm4, %v5051_v23, %v1968_v40  ;;  %v1942_v23 = vsel %vm5156_vm7, %v5046_v12, %v1938_v8  ;;  %v1961_v40 = vor.u32 1.1754944e-38, %v1960_v47 }
 0x56e   :  { %v2974_v20 = vpop.eup %2973  ;;  %v1982_v5 = vmul.f32 %v5057_v30, %v1981_v38  ;;  %vm1959_vm8 = vcmp.eq.f32.partialorder %v1958_v11, 8.507059e+37  ;;  %vm1974_vm9 = vcmp.eq.f32.partialorder %v1973_v10, 8.507059e+37  ;;  %vm1986_vm10 = vmor %vm1984_vm6, %vm1985_vm5  ;;  %v1883_v60 = vadd.f32 %v5055_v13, %v5696_v51 }
 0x56f   :  { %v5073_v32 = vadd.f32 1.0, %v2974_v20  ;;  %v5771_v20 = vld [vmem:[#allocation39_spill] sm:$0xff]  ;;  %v5092_v45 = vpop.eup %2975  ;;  %v1947_v8 = vsel %vm5116_vm1, %v1946_v39, %v1942_v23  ;;  %vm2014_vm12 = vweird.f32 %v5067_v24  ;;  %vm1999_vm15 = vweird.f32 %v5063_v63 }
 0x570   :  { %v5085_v19 = vadd.f32 %v1832_v46, %v5771_v20  ;;  %v5100_v46 = vpop.eup %2977  ;;  %v2025_v20 = vmul.f32 %v5092_v45, %v5059_v28  ;;  %v1983_v44 = vadd.f32 %v5057_v30, %v1982_v5  ;;  %v5783_v5 = vld [vmem:[#allocation33_spill] sm:$0xff]  ;;  %v2054_v13 = vmul.f32 %v1947_v8, %v1883_v60 }
 0x571   :  { %2981 = vrcp.f32 %v5073_v32  ;;  %v1885_v55 = vpop.f32.mrf.mxu3  ;;  %v5105_v56 = vpop.eup %2979  ;;  %v1995_v52 = vmul.f32 %v5100_v46, %v5063_v63  ;;  %vm2000_vm13 = vweird.f32 %v5100_v46  ;;  %vm2030_vm1 = vweird.f32 %v5092_v45 }
 0x572   :  { %v2010_v53 = vmul.f32 %v5105_v56, %v5067_v24  ;;  %v1886_v29 = vadd.f32 %v1885_v55, %v5783_v5  ;;  %v1987_v50 = vsel %vm1986_vm10, %v5057_v30, %v1983_v44  ;;  %v1962_v55 = vsel %vm1959_vm8, %v1961_v40, %v1957_v48  ;;  %vm2001_vm10 = vmor %vm1999_vm15, %vm2000_vm13 }
 0x573   :  { %v1996_v36 = vsub.f32 1.0, %v1995_v52  ;;  %vm2015_vm14 = vweird.f32 %v5105_v56  ;;  %vm2029_vm3 = vweird.f32 %v5059_v28  ;;  %v2035_v60 = vand.u32 2147483648, %v5059_v28 }
 0x574   :  { %v2011_v59 = vsub.f32 1.0, %v2010_v53  ;;  %vm2044_vm4 = vweird.f32 %v5073_v32  ;;  %vm5191_vm5 = vmor %vm2029_vm3, %vm2030_vm1  ;;  %v2003_v23 = vand.u32 2147483647, %v5063_v63 }
 0x575   :  { %v1997_v52 = vmul.f32 %v5100_v46, %v1996_v36  ;;  %v2050_v36 = vand.u32 2147483648, %v5073_v32  ;;  %vm2016_vm7 = vmor %vm2014_vm12, %vm2015_vm14 }
 0x576   :  { %v2012_v53 = vmul.f32 %v5105_v56, %v2011_v59  ;;  %vm2004_vm12 = vcmp.eq.f32.partialorder %v2003_v23, 8.507059e+37 }
 0x577   :  { %v5111_v21 = vpop.eup %2981 }
 0x578   :  { %v2040_v22 = vmul.f32 %v5111_v21, %v5073_v32  ;;  %vm2045_vm2 = vweird.f32 %v5111_v21 }
 0x579   :  { %v1888_v57 = vpop.f32.mrf.mxu3  ;;  %vm5199_vm6 = vmor %vm2044_vm4, %vm2045_vm2 }
 0x57a   :  { %v1889_v34 = vadd.f32 %v1888_v57, %v5780_v18  ;;  %v2041_v38 = vsub.f32 1.0, %v2040_v22  ;;  %v1988_v57 = vand.u32 2147483647, %v5042_v25  ;;  %v2026_v18 = vsub.f32 1.0, %v2025_v20 }
 0x57b   :  { %v1977_v22 = vsel %vm1974_vm9, %v1976_v49, %v1972_v43  ;;  %v1991_v25 = vor.u32 1.1754944e-38, %v1990_v16  ;;  %v2055_v20 = vmul.f32 %v1962_v55, %v1886_v29  ;;  %v2018_v29 = vand.u32 2147483647, %v5067_v24 }
 0x57c   :  { %v2056_v5 = vmul.f32 %v1977_v22, %v1889_v34  ;;  %vm1989_vm11 = vcmp.eq.f32.partialorder %v1988_v57, 8.507059e+37  ;;  %v2042_v62 = vmul.f32 %v5111_v21, %v2041_v38  ;;  %v2027_v12 = vmul.f32 %v5092_v45, %v2026_v18 }
 0x57d   :  { %v1992_v49 = vsel %vm1989_vm11, %v1991_v25, %v1987_v50  ;;  %v2059_v11 = vadd.f32 %v2055_v20, %v5085_v19  ;;  %v2033_v19 = vand.u32 2147483647, %v5059_v28  ;;  %v2013_v18 = vadd.f32 %v5105_v56, %v2012_v53 }
 0x57e   :  { %v2060_v30 = vadd.f32 %v2056_v5, %v5088_v27  ;;  %v2043_v42 = vadd.f32 %v5111_v21, %v2042_v62  ;;  %v2028_v47 = vadd.f32 %v5092_v45, %v2027_v12  ;;  %v2048_v27 = vand.u32 2147483647, %v5073_v32 }
 0x57f   :  { %v2058_v34 = vadd.f32 %v2054_v13, %v5081_v31  ;;  %v2020_v38 = vand.u32 2147483648, %v5067_v24  ;;  %v1998_v31 = vadd.f32 %v5100_v46, %v1997_v52  ;;  %v2051_v5 = vor.u32 1.1754944e-38, %v2050_v36 }
 0x580   :  { %2983 = vtanh.f32 %v2060_v30  ;;  %v2047_v32 = vsel %vm5199_vm6, %v5111_v21, %v2043_v42  ;;  %v2032_v28 = vsel %vm5191_vm5, %v5092_v45, %v2028_v47  ;;  %v2005_v57 = vand.u32 2147483648, %v5063_v63 }
 0x581   :  { %v1891_v44 = vpop.f32.mrf.mxu3  ;;  %2985 = vtanh.f32 %v2059_v11  ;;  %vm2049_vm8 = vcmp.eq.f32.partialorder %v2048_v27, 8.507059e+37  ;;  %vm2034_vm9 = vcmp.eq.f32.partialorder %v2033_v19, 8.507059e+37  ;;  %v2017_v21 = vsel %vm2016_vm7, %v5105_v56, %v2013_v18 }
 0x582   :  { %v1892_v39 = vadd.f32 %v1891_v44, %v3567_v26  ;;  %v2052_v45 = vsel %vm2049_vm8, %v2051_v5, %v2047_v32  ;;  %v2021_v22 = vor.u32 1.1754944e-38, %v2020_v38  ;;  %vm2019_vm11 = vcmp.eq.f32.partialorder %v2018_v29, 8.507059e+37  ;;  %v5792_v38 = vld [vmem:[#allocation20_spill] sm:$0xff]  ;;  %v5793_v5 = vld [vmem:[#allocation22_spill] sm:$0xff] }
 0x583   :  { %v2002_v24 = vsel %vm2001_vm10, %v5100_v46, %v1998_v31  ;;  %v2006_v55 = vor.u32 1.1754944e-38, %v2005_v57  ;;  %v2069_v20 = vsub.f32 1.0, %v2052_v45 }
 0x584   :  { %v2057_v48 = vmul.f32 %v1992_v49, %v1892_v39  ;;  %v2022_v59 = vsel %vm2019_vm11, %v2021_v22, %v2017_v21  ;;  %v2077_v49 = vmul.f32 %v2052_v45, %v4918_v3  ;;  %v5794_v21 = vld [vmem:[#allocation19_spill] sm:$0xff]  ;;  %v5795_v45 = vld [vmem:[#allocation34_spill] sm:$0xff] }
 0x585   :  { %v2007_v12 = vsel %vm2004_vm12, %v2006_v55, %v2002_v24  ;;  %v2067_v53 = vsub.f32 1.0, %v2022_v59  ;;  %v2075_v39 = vmul.f32 %v2022_v59, %v4926_v2 }
 0x586   :  { %v2061_v43 = vadd.f32 %v2057_v48, %v5095_v37  ;;  %v2036_v37 = vor.u32 1.1754944e-38, %v2035_v60  ;;  %v2984_v50 = vpop.eup %2983  ;;  %v2066_v13 = vsub.f32 1.0, %v2007_v12  ;;  %v2074_v3 = vmul.f32 %v2007_v12, %v4930_v0  ;;  %v5789_v48 = vld [vmem:[#allocation26_spill] sm:$0xff]  ;;  %v5790_v60 = vld [vmem:[#allocation17_spill] sm:$0xff] }
 0x587   :  { %v2986_v25 = vpop.eup %2985 }
 0x588   :  { %2987 = vtanh.f32 %v2061_v43  ;;  %v2037_v40 = vsel %vm2034_vm9, %v2036_v37, %v2032_v28  ;;  %v2071_v46 = vmul.f32 %v2986_v25, %v2067_v53 }
 0x589   :  { %2989 = vtanh.f32 %v2058_v34  ;;  %v2068_v56 = vsub.f32 1.0, %v2037_v40  ;;  %v2076_v29 = vmul.f32 %v2037_v40, %v4922_v54  ;;  %v2104_v54 = vpop.f32.mrf.mxu0  ;;  %v5791_v34 = vld [vmem:[#allocation23_spill] sm:$0xff] }
 0x58a   :  { %v5232_v42 = vadd.f32 %v2075_v39, %v2071_v46  ;;  %v2105_v36 = vadd.f32 %v2104_v54, %v5789_v48 }
 0x58b   :  { %v2072_v44 = vmul.f32 %v2984_v50, %v2068_v56  ;;  %v5796_v50 = vld [vmem:[#allocation28_spill] sm:$0xff] }
 0x58d   :  { %v5228_v30 = vadd.f32 %v2076_v29, %v2072_v44 }
 0x58e   :  { %v2988_v62 = vpop.eup %2987 }
 0x58f   :  { %v2073_v8 = vmul.f32 %v2988_v62, %v2069_v20  ;;  %v2990_v52 = vpop.eup %2989  ;;  %v5797_v20 = vld [vmem:[#allocation31_spill] sm:$0xff] }
 0x590   :  { %v2070_v11 = vmul.f32 %v2990_v52, %v2066_v13 }
 0x591   :  { %v5224_v63 = vadd.f32 %v2077_v49, %v2073_v8  ;;  %v2107_v2 = vpop.f32.mrf.mxu0  ;;  %v5798_v8 = vld [vmem:[#allocation32_spill] sm:$0xff] }
 0x592   :  { %v5236_v47 = vadd.f32 %v2074_v3, %v2070_v11  ;;  %v5799_v3 = vld [vmem:[#allocation27_spill] sm:$0xff] }
 0x593   :  { %2152 = vmatpush.msrb.mxu1 %v5224_v63 }
 0x595   :  { %2153 = vmatpush.msrb.mxu1 %v5228_v30 }
 0x597   :  { %2154 = vmatpush.msrb.mxu1 %v5232_v42 }
 0x599   :  { %2155 = vmatpush.msrb.mxu1 %v5236_v47  ;;  %v2110_v0 = vpop.f32.mrf.mxu0 }
 0x59a   :  { %2714 = vmatmul.msk.f32.vlgmr.msrb.gmra.mxu1 %vm160_vm0, %v4936_v4  ;;  %v2111_v32 = vadd.f32 %v2110_v0, %v5792_v38  ;;  %v5800_v0 = vld [vmem:[#allocation24_spill] sm:$0xff] }
 0x5a1   :  { %v2113_v4 = vpop.f32.mrf.mxu0 }
 0x5a2   :  { %2715 = vmatmul.msk.f32.gmra.mxu1 %vm160_vm0, %v4943_v1  ;;  %v2114_v23 = vadd.f32 %v2113_v4, %v5794_v21 }
 0x5a9   :  { %v2116_v1 = vpop.f32.mrf.mxu0 }
 0x5aa   :  { %2716 = vmatmul.msk.f32.gmra.mxu1 %vm160_vm0, %v4950_v41  ;;  %v2117_v59 = vadd.f32 %v2116_v1, %v5796_v50 }
 0x5b2   :  { %2717 = vmatmul.msk.f32.gmra.mxu1 %vm160_vm0, %v4957_v17  ;;  %v2119_v17 = vpop.f32.mrf.mxu0 }
 0x5b3   :  { %v2120_v56 = vadd.f32 %v2119_v17, %v5797_v20 }
 0x5ba   :  { %2718 = vmatmul.msk.f32.gmra.mxu1 %vm160_vm0, %v4964_v7 }
 0x5c2   :  { %2719 = vmatmul.msk.f32.gmra.mxu1 %vm160_vm0, %v4971_v58  ;;  %v2122_v58 = vpop.f32.mrf.mxu0 }
 0x5c3   :  { %v2123_v54 = vadd.f32 %v2122_v58, %v5799_v3 }
 0x5ca   :  { %2720 = vmatmul.msk.f32.gmra.mxu1 %vm160_vm0, %v4978_v33 }
 0x5d2   :  { %2721 = vmatmul.msk.f32.gmra.mxu1 %vm160_vm0, %v4985_v15 }
 0x5da   :  { %2722 = vmatmul.msk.f32.gmra.mxu1 %vm160_vm0, %v4992_v14  ;;  %v5788_v14 = vld [vmem:[#allocation18_spill] sm:$0xff] }
 0x5e2   :  { %2723 = vmatmul.msk.f32.gmra.mxu1 %vm160_vm0, %v4999_v9 }
 0x5ea   :  { %2724 = vmatmul.msk.f32.gmra.mxu1 %vm160_vm0, %v5006_v61  ;;  %v2108_v61 = vadd.f32 %v2107_v2, %v5790_v60  ;;  %v5801_v60 = vld [vmem:[#allocation21_spill] sm:$0xff] }
 0x5f2   :  { %2725 = vmatmul.msk.f32.gmra.mxu1 %vm160_vm0, %v5013_v6  ;;  %v2125_v6 = vpop.f32.mrf.mxu0 }
 0x617   :  { %v2157_v41 = vpop.f32.mrf.mxu1 }
 0x618   :  { %v2158_v15 = vadd.f32 %v2157_v41, %v5650_v35  ;;  %v5269_v35 = vpop.f32.mrf.mxu0 }
 0x61a   :  { %v2193_v27 = vadd.f32 %v2158_v15, %v2105_v36 }
 0x61c   :  { %v2726_v18 = vmul.f32 -1.442695, %v2193_v27 }
 0x61e   :  { %2991 = vpow2.f32 %v2726_v18 }
 0x61f   :  { %v2160_v7 = vpop.f32.mrf.mxu1 }
 0x620   :  { %v2161_v9 = vadd.f32 %v2160_v7, %v5788_v14  ;;  %v2131_v29 = vpop.f32.mrf.mxu0 }
 0x622   :  { %v2194_v19 = vadd.f32 %v2161_v9, %v2108_v61  ;;  %v2126_v61 = vadd.f32 %v2125_v6, %v5801_v60 }
 0x624   :  { %v2727_v16 = vmul.f32 -1.442695, %v2194_v19  ;;  %v2992_v22 = vpop.eup %2991 }
 0x625   :  { %v5276_v62 = vadd.f32 1.0, %v2992_v22 }
 0x626   :  { %2993 = vpow2.f32 %v2727_v16 }
 0x627   :  { %v2163_v33 = vpop.f32.mrf.mxu1  ;;  %v2244_v22 = vand.u32 2147483648, %v5276_v62  ;;  %vm2238_vm13 = vweird.f32 %v5276_v62 }
 0x628   :  { %v2164_v43 = vadd.f32 %v2163_v33, %v5791_v34  ;;  %v2134_v9 = vpop.f32.mrf.mxu0 }
 0x62a   :  { %v2195_v28 = vadd.f32 %v2164_v43, %v2111_v32 }
 0x62c   :  { %v2728_v57 = vmul.f32 -1.442695, %v2195_v28  ;;  %v2994_v24 = vpop.eup %2993 }
 0x62d   :  { %v5279_v44 = vadd.f32 1.0, %v2994_v24 }
 0x62e   :  { %2995 = vpow2.f32 %v2728_v57 }
 0x62f   :  { %v2166_v10 = vpop.f32.mrf.mxu1  ;;  %2997 = vrcp.f32 %v5276_v62  ;;  %v2259_v20 = vand.u32 2147483648, %v5279_v44  ;;  %vm2253_vm2 = vweird.f32 %v5279_v44 }
 0x630   :  { %v2167_v37 = vadd.f32 %v2166_v10, %v5793_v5  ;;  %2999 = vrcp.f32 %v5279_v44  ;;  %v5802_v10 = vld [vmem:[#allocation29_spill] sm:$0xff]  ;;  %v2137_v21 = vpop.f32.mrf.mxu0 }
 0x632   :  { %v2196_v55 = vadd.f32 %v2167_v37, %v2114_v23  ;;  %v2242_v23 = vand.u32 2147483647, %v5276_v62 }
 0x634   :  { %v2729_v53 = vmul.f32 -1.442695, %v2196_v55  ;;  %v2996_v39 = vpop.eup %2995  ;;  %vm5339_vm14 = vcmp.eq.f32.partialorder %v2242_v23, 8.507059e+37 }
 0x635   :  { %v5284_v2 = vadd.f32 1.0, %v2996_v39  ;;  %v5287_v1 = vpop.eup %2997 }
 0x636   :  { %3001 = vpow2.f32 %v2729_v53  ;;  %v5289_v17 = vpop.eup %2999  ;;  %v2234_v58 = vmul.f32 %v5287_v1, %v5276_v62  ;;  %vm2239_vm0 = vweird.f32 %v5287_v1 }
 0x637   :  { %v2169_v31 = vpop.f32.mrf.mxu1  ;;  %v2249_v18 = vmul.f32 %v5289_v17, %v5279_v44  ;;  %vm2254_vm15 = vweird.f32 %v5289_v17  ;;  %vm5355_vm1 = vmor %vm2238_vm13, %vm2239_vm0  ;;  %vm2268_vm6 = vweird.f32 %v5284_v2 }
 0x638   :  { %v2170_v40 = vadd.f32 %v2169_v31, %v5795_v45  ;;  %v2235_v38 = vsub.f32 1.0, %v2234_v58  ;;  %vm5372_vm3 = vmor %vm2253_vm2, %vm2254_vm15 }
 0x639   :  { %v2250_v6 = vsub.f32 1.0, %v2249_v18 }
 0x63a   :  { %v2197_v12 = vadd.f32 %v2170_v40, %v2117_v59  ;;  %v2236_v37 = vmul.f32 %v5287_v1, %v2235_v38  ;;  %v5803_v59 = vld [vmem:[#allocation35_spill] sm:$0xff] }
 0x63b   :  { %v2251_v45 = vmul.f32 %v5289_v17, %v2250_v6  ;;  %v5324_v55 = vadd.f32 %v5269_v35, %v5803_v59 }
 0x63c   :  { %v2730_v46 = vmul.f32 -1.442695, %v2197_v12  ;;  %v3002_v7 = vpop.eup %3001  ;;  %v5804_v12 = vld [vmem:[#allocation39_spill] sm:$0xff] }
 0x63d   :  { %v5294_v48 = vadd.f32 1.0, %v3002_v7  ;;  %v2252_v39 = vadd.f32 %v5289_v17, %v2251_v45  ;;  %v2257_v7 = vand.u32 2147483647, %v5279_v44 }
 0x63f   :  { %v2172_v25 = vpop.f32.mrf.mxu1  ;;  %v2256_v60 = vsel %vm5372_vm3, %v5289_v17, %v2252_v39  ;;  %vm2258_vm5 = vcmp.eq.f32.partialorder %v2257_v7, 8.507059e+37  ;;  %v2287_v23 = vand.u32 2147483647, %v5294_v48  ;;  %vm2283_vm9 = vweird.f32 %v5294_v48 }
 0x640   :  { %v2173_v49 = vadd.f32 %v2172_v25, %v5798_v8  ;;  %v2237_v25 = vadd.f32 %v5287_v1, %v2236_v37  ;;  %v2132_v8 = vadd.f32 %v2131_v29, %v5804_v12 }
 0x641   :  { %vm5418_vm12 = vcmp.eq.f32.partialorder %v2287_v23, 8.507059e+37 }
 0x642   :  { %v2198_v52 = vadd.f32 %v2173_v49, %v2120_v56  ;;  %v5805_v49 = vld [vmem:[#allocation36_spill] sm:$0xff] }
 0x643   :  { %v5333_v53 = vadd.f32 %v2134_v9, %v5805_v49 }
 0x644   :  { %v2731_v13 = vmul.f32 -1.442695, %v2198_v52  ;;  %v5806_v52 = vld [vmem:[#allocation30_spill] sm:$0xff] }
 0x646   :  { %3003 = vpow2.f32 %v2731_v13  ;;  %v5818_v13 = vld [vmem:[#allocation37_spill] sm:$0xff] }
 0x647   :  { %v2175_v11 = vpop.f32.mrf.mxu1  ;;  %3005 = vpow2.f32 %v2730_v46  ;;  %v5336_v46 = vadd.f32 %v2137_v21, %v5806_v52 }
 0x648   :  { %v2176_v4 = vadd.f32 %v2175_v11, %v5800_v0  ;;  %3007 = vrcp.f32 %v5284_v2  ;;  %v2245_v0 = vor.u32 1.1754944e-38, %v2244_v22 }
 0x64a   :  { %v2199_v41 = vadd.f32 %v2176_v4, %v2123_v54 }
 0x64c   :  { %v2732_v33 = vmul.f32 -1.442695, %v2199_v41  ;;  %v3004_v15 = vpop.eup %3003  ;;  %v2241_v41 = vsel %vm5355_vm1, %v5287_v1, %v2237_v25  ;;  %v2272_v1 = vand.u32 2147483647, %v5284_v2 }
 0x64d   :  { %v3006_v14 = vpop.eup %3005  ;;  %v5297_v27 = vadd.f32 1.0, %v3004_v15  ;;  %v2246_v38 = vsel %vm5339_vm14, %v2245_v0, %v2241_v41 }
 0x64e   :  { %3009 = vpow2.f32 %v2732_v33  ;;  %v5302_v34 = vadd.f32 1.0, %v3006_v14  ;;  %v5304_v43 = vpop.eup %3007  ;;  %v2260_v33 = vor.u32 1.1754944e-38, %v2259_v20  ;;  %vm5389_vm7 = vcmp.eq.f32.partialorder %v2272_v1, 8.507059e+37 }
 0x64f   :  { %v2178_v36 = vpop.f32.mrf.mxu1  ;;  %3011 = vrcp.f32 %v5294_v48  ;;  %v2264_v5 = vmul.f32 %v5304_v43, %v5284_v2  ;;  %vm2269_vm4 = vweird.f32 %v5304_v43  ;;  %vm2313_vm14 = vweird.f32 %v5297_v27 }
 0x650   :  { %v2179_v19 = vadd.f32 %v2178_v36, %v5802_v10  ;;  %3013 = vrcp.f32 %v5297_v27  ;;  %v5813_v36 = vld [vmem:[#allocation33_spill] sm:$0xff]  ;;  %v2261_v6 = vsel %vm2258_vm5, %v2260_v33, %v2256_v60  ;;  %vm5393_vm8 = vmor %vm2268_vm6, %vm2269_vm4  ;;  %vm2298_vm10 = vweird.f32 %v5302_v34 }
 0x651   :  { %3015 = vrcp.f32 %v5302_v34  ;;  %v2265_v24 = vsub.f32 1.0, %v2264_v5  ;;  %v2304_v12 = vand.u32 2147483648, %v5302_v34  ;;  %v2302_v52 = vand.u32 2147483647, %v5302_v34 }
 0x652   :  { %v2200_v16 = vadd.f32 %v2179_v19, %v2126_v61  ;;  %v2274_v61 = vand.u32 2147483648, %v5284_v2 }
 0x653   :  { %v2266_v4 = vmul.f32 %v5304_v43, %v2265_v24  ;;  %v2305_v60 = vor.u32 1.1754944e-38, %v2304_v12  ;;  %vm2303_vm6 = vcmp.eq.f32.partialorder %v2302_v52, 8.507059e+37 }
 0x654   :  { %v3010_v32 = vpop.eup %3009  ;;  %v2733_v28 = vmul.f32 -1.442695, %v2200_v16 }
 0x655   :  { %v5309_v31 = vadd.f32 1.0, %v3010_v32  ;;  %v5317_v40 = vpop.eup %3011  ;;  %v2267_v16 = vadd.f32 %v5304_v43, %v2266_v4  ;;  %v2289_v32 = vand.u32 2147483648, %v5294_v48 }
 0x656   :  { %3017 = vpow2.f32 %v2733_v28  ;;  %v5320_v50 = vpop.eup %3013  ;;  %v2279_v29 = vmul.f32 %v5317_v40, %v5294_v48  ;;  %vm2284_vm11 = vweird.f32 %v5317_v40 }
 0x657   :  { %3019 = vrcp.f32 %v5309_v31  ;;  %v2181_v57 = vpop.f32.mrf.mxu1  ;;  %v5329_v56 = vpop.eup %3015  ;;  %v2309_v3 = vmul.f32 %v5320_v50, %v5297_v27  ;;  %v2271_v24 = vsel %vm5393_vm8, %v5304_v43, %v2267_v16  ;;  %v2290_v25 = vor.u32 1.1754944e-38, %v2289_v32  ;;  %vm5436_vm1 = vmor %vm2283_vm9, %vm2284_vm11 }
 0x658   :  { %v2294_v15 = vmul.f32 %v5329_v56, %v5302_v34  ;;  %v2280_v10 = vsub.f32 1.0, %v2279_v29  ;;  %v2182_v18 = vadd.f32 %v2181_v57, %v5696_v51  ;;  %v2275_v57 = vor.u32 1.1754944e-38, %v2274_v61 }
 0x659   :  { %v2310_v19 = vsub.f32 1.0, %v2309_v3  ;;  %vm2314_vm0 = vweird.f32 %v5320_v50  ;;  %vm2299_vm13 = vweird.f32 %v5329_v56  ;;  %vm2328_vm3 = vweird.f32 %v5309_v31 }
 0x65a   :  { %v2295_v28 = vsub.f32 1.0, %v2294_v15  ;;  %v2281_v21 = vmul.f32 %v5317_v40, %v2280_v10  ;;  %v2353_v22 = vmul.f32 %v2246_v38, %v2182_v18  ;;  %v2276_v29 = vsel %vm5389_vm7, %v2275_v57, %v2271_v24  ;;  %vm5440_vm2 = vmor %vm2313_vm14, %vm2314_vm0 }
 0x65b   :  { %v2311_v45 = vmul.f32 %v5320_v50, %v2310_v19  ;;  %v2317_v15 = vand.u32 2147483647, %v5297_v27  ;;  %v2334_v58 = vand.u32 2147483648, %v5309_v31  ;;  %vm5449_vm4 = vmor %vm2298_vm10, %vm2299_vm13 }
 0x65c   :  { %v3018_v35 = vpop.eup %3017  ;;  %v2296_v20 = vmul.f32 %v5329_v56, %v2295_v28  ;;  %v2282_v3 = vadd.f32 %v5317_v40, %v2281_v21  ;;  %v2357_v4 = vadd.f32 %v2353_v22, %v5324_v55 }
 0x65d   :  { %v5347_v11 = vpop.eup %3019  ;;  %v5351_v54 = vadd.f32 1.0, %v3018_v35  ;;  %v2312_v41 = vadd.f32 %v5320_v50, %v2311_v45  ;;  %vm2318_vm7 = vcmp.eq.f32.partialorder %v2317_v15, 8.507059e+37  ;;  %v2335_v19 = vor.u32 1.1754944e-38, %v2334_v58 }
 0x65e   :  { %v2324_v14 = vmul.f32 %v5347_v11, %v5309_v31  ;;  %vm2329_vm15 = vweird.f32 %v5347_v11  ;;  %v2297_v33 = vadd.f32 %v5329_v56, %v2296_v20  ;;  %v2286_v34 = vsel %vm5436_vm1, %v5317_v40, %v2282_v3 }
 0x65f   :  { %3021 = vrcp.f32 %v5351_v54  ;;  %v2184_v9 = vpop.f32.mrf.mxu1  ;;  %vm5460_vm5 = vmor %vm2328_vm3, %vm2329_vm15  ;;  %v2291_v40 = vsel %vm5418_vm12, %v2290_v25, %v2286_v34  ;;  %v2349_v32 = vand.u32 2147483648, %v5351_v54  ;;  %vm2343_vm10 = vweird.f32 %v5351_v54 }
 0x660   :  { %v2185_v44 = vadd.f32 %v2184_v9, %v5813_v36  ;;  %v2325_v17 = vsub.f32 1.0, %v2324_v14  ;;  %v2316_v36 = vsel %vm5440_vm2, %v5320_v50, %v2312_v41  ;;  %v2301_v10 = vsel %vm5449_vm4, %v5329_v56, %v2297_v33 }
 0x661   :  { %v2306_v28 = vsel %vm2303_vm6, %v2305_v60, %v2301_v10  ;;  %v2350_v24 = vor.u32 1.1754944e-38, %v2349_v32  ;;  %v2438_v32 = vpop.permute.xlu0 %2437 }
 0x662   :  { %v2354_v51 = vmul.f32 %v2261_v6, %v2185_v44  ;;  %v2326_v49 = vmul.f32 %v5347_v11, %v2325_v17  ;;  %v2332_v44 = vand.u32 2147483647, %v5309_v31  ;;  %v2365_v21 = vsub.f32 1.0, %v2306_v28 }
 0x664   :  { %v2358_v43 = vadd.f32 %v2354_v51, %v2132_v8  ;;  %v2319_v8 = vand.u32 2147483648, %v5297_v27  ;;  %v2327_v14 = vadd.f32 %v5347_v11, %v2326_v49  ;;  %vm2333_vm9 = vcmp.eq.f32.partialorder %v2332_v44, 8.507059e+37 }
 0x665   :  { %v5399_v2 = vpop.eup %3021  ;;  %v3116_v51 = vmov 32.0   ;;  %v2373_v49 = vmul.f32 %v2306_v28, %v5236_v47  ;;  %v2443_v28 = vpop.permute.xlu1 %2442 }
 0x666   :  { %v2339_v59 = vmul.f32 %v5399_v2, %v5351_v54  ;;  %3023 = vtanh.f32 %v2358_v43  ;;  %v2320_v61 = vor.u32 1.1754944e-38, %v2319_v8  ;;  %v2331_v31 = vsel %vm5460_vm5, %v5347_v11, %v2327_v14 }
 0x667   :  { %v2187_v35 = vpop.f32.mrf.mxu1  ;;  %3025 = vtanh.f32 %v2357_v4  ;;  %vm2344_vm8 = vweird.f32 %v5399_v2  ;;  %v2336_v17 = vsel %vm2333_vm9, %v2335_v19, %v2331_v31 }
 0x668   :  { %v2188_v39 = vadd.f32 %v2187_v35, %v5818_v13  ;;  %v2340_v0 = vsub.f32 1.0, %v2339_v59  ;;  %v2321_v18 = vsel %vm2318_vm7, %v2320_v61, %v2316_v36  ;;  %vm2345_vm11 = vmor %vm2343_vm10, %vm2344_vm8  ;;  %v2367_v45 = vsub.f32 1.0, %v2336_v17 }
 0x669   :  { %v2366_v5 = vsub.f32 1.0, %v2321_v18  ;;  %v2374_v25 = vmul.f32 %v2321_v18, %v5232_v42  ;;  %v2375_v35 = vmul.f32 %v2336_v17, %v5228_v30 }
 0x66a   :  { %v2355_v7 = vmul.f32 %v2276_v29, %v2188_v39  ;;  %v2341_v48 = vmul.f32 %v5399_v2, %v2340_v0 }
 0x66c   :  { %v2359_v27 = vadd.f32 %v2355_v7, %v5333_v53  ;;  %v2342_v38 = vadd.f32 %v5399_v2, %v2341_v48  ;;  %v3024_v56 = vpop.eup %3023 }
 0x66d   :  { %v3026_v11 = vpop.eup %3025  ;;  %v2370_v23 = vmul.f32 %v3024_v56, %v2366_v5  ;;  %v2448_v5 = vpop.permute.xlu2 %2447 }
 0x66e   :  { %3027 = vtanh.f32 %v2359_v27  ;;  %v2346_v22 = vsel %vm2345_vm11, %v5399_v2, %v2342_v38  ;;  %v2369_v59 = vmul.f32 %v3026_v11, %v2365_v21 }
 0x66f   :  { %v2190_v50 = vpop.f32.mrf.mxu1  ;;  %3029 = vrcp.f32 %v3116_v51  ;;  %v2378_v52 = vadd.f32 %v2374_v25, %v2370_v23 }
 0x670   :  { %v2191_v16 = vadd.f32 %v2190_v50, %v3567_v26  ;;  %v2347_v26 = vand.u32 2147483647, %v5351_v54 }
 0x672   :  { %v2356_v6 = vmul.f32 %v2291_v40, %v2191_v16  ;;  %vm2348_vm12 = vcmp.eq.f32.partialorder %v2347_v26, 8.507059e+37  ;;  %v2453_v26 = vpop.permute.xlu0 %2452 }
 0x673   :  { %v2351_v54 = vsel %vm2348_vm12, %v2350_v24, %v2346_v22 }
 0x674   :  { %v3028_v37 = vpop.eup %3027  ;;  %v2360_v57 = vadd.f32 %v2356_v6, %v5336_v46  ;;  %v2377_v46 = vadd.f32 %v2373_v49, %v2369_v59  ;;  %v2368_v13 = vsub.f32 1.0, %v2351_v54  ;;  %v2376_v62 = vmul.f32 %v2351_v54, %v5224_v63 }
 0x675   :  { %v2371_v20 = vmul.f32 %v3028_v37, %v2367_v45  ;;  %v3030_v12 = vpop.eup %3029  ;;  %v2466_v37 = vpop.permute.xlu1 %2465 }
 0x676   :  { %3031 = vtanh.f32 %v2360_v57  ;;  %v2391_v29 = vmul.f32 32.0, %v3030_v12  ;;  %v2381_v2 = vadd.f32 %v2378_v52, %v2377_v46  ;;  %vm2395_vm0 = vweird.f32 %v3030_v12  ;;  %v2471_v49 = vpop.permute.xlu2 %2470 }
 0x677   :  { %v2379_v43 = vadd.f32 %v2375_v35, %v2371_v20 }
 0x678   :  { %v2392_v4 = vsub.f32 1.0, %v2391_v29 }
 0x679   :  { %v2382_v0 = vadd.f32 %v2381_v2, %v2379_v43 }
 0x67a   :  { %v2393_v7 = vmul.f32 %v3030_v12, %v2392_v4 }
 0x67c   :  { %v3032_v39 = vpop.eup %3031  ;;  %v2394_v15 = vadd.f32 %v3030_v12, %v2393_v7 }
 0x67d   :  { %v2372_v3 = vmul.f32 %v3032_v39, %v2368_v13  ;;  %v2481_v35 = vpop.permute.xlu1 %2480 }
 0x67e   :  { %v2396_v55 = vsel %vm2395_vm0, %v3030_v12, %v2394_v15 }
 0x67f   :  { %v2380_v42 = vadd.f32 %v2376_v62, %v2372_v3 }
 0x681   :  { %v2383_v41 = vadd.f32 %v2382_v0, %v2380_v42 }
 0x683   :  { %v2384_v8 = vrot.slane %v2383_v41, 4 }
 0x685   :  { %v2385_v33 = vadd.f32 %v2384_v8, %v2383_v41 }
 0x687   :  { %v2386_v47 = vrot.slane %v2385_v33, 2 }
 0x689   :  { %v2387_v14 = vadd.f32 %v2386_v47, %v2385_v33 }
 0x68b   :  { %v2388_v30 = vrot.slane %v2387_v14, 1 }
 0x68d   :  { %v2389_v9 = vadd.f32 %v2388_v30, %v2387_v14 }
 0x68f   :  { %v2397_v58 = vmul.f32 %v2396_v55, %v2389_v9 }
 0x691   :  { %v2398_v27 = vsub.f32 %v2377_v46, %v2397_v58  ;;  %v2399_v1 = vsub.f32 %v2378_v52, %v2397_v58  ;;  %v2400_v48 = vsub.f32 %v2379_v43, %v2397_v58  ;;  %v2401_v36 = vsub.f32 %v2380_v42, %v2397_v58  ;;  %v2476_v52 = vpop.permute.xlu0 %2475 }
 0x693   :  { %v2402_v63 = vmul.f32 %v2398_v27, %v2398_v27  ;;  %v2403_v44 = vmul.f32 %v2399_v1, %v2399_v1  ;;  %v2404_v60 = vmul.f32 %v2400_v48, %v2400_v48  ;;  %v2405_v53 = vmul.f32 %v2401_v36, %v2401_v36 }
 0x695   :  { %v2406_v61 = vadd.f32 %v2403_v44, %v2402_v63 }
 0x697   :  { %v2407_v34 = vadd.f32 %v2406_v61, %v2404_v60 }
 0x699   :  { %v2408_v10 = vadd.f32 %v2407_v34, %v2405_v53 }
 0x69b   :  { %v2409_v31 = vrot.slane %v2408_v10, 4 }
 0x69d   :  { %v2410_v50 = vadd.f32 %v2409_v31, %v2408_v10 }
 0x69f   :  { %v2411_v19 = vrot.slane %v2410_v50, 2 }
 0x6a1   :  { %v2412_v18 = vadd.f32 %v2411_v19, %v2410_v50 }
 0x6a3   :  { %v2413_v16 = vrot.slane %v2412_v18, 1 }
 0x6a5   :  { %v2414_v40 = vadd.f32 %v2413_v16, %v2412_v18 }
 0x6a7   :  { %v2415_v38 = vmul.f32 %v2414_v40, %v2396_v55 }
 0x6a9   :  { %v2416_v56 = vadd.f32 1e-05, %v2415_v38 }
 0x6ab   :  { %3033 = vrsqrt.f32 %v2416_v56  ;;  %vm2423_vm14 = vweird.f32 %v2416_v56 }
 0x6b1   :  { %v3034_v17 = vpop.eup %3033 }
 0x6b2   :  { %v2418_v6 = vmul.f32 %v3034_v17, %v2416_v56  ;;  %vm2424_vm13 = vweird.f32 %v3034_v17 }
 0x6b3   :  { %vm2425_vm15 = vmor %vm2423_vm14, %vm2424_vm13 }
 0x6b4   :  { %v2419_v11 = vmul.f32 %v3034_v17, %v2418_v6 }
 0x6b6   :  { %v2420_v51 = vmul.f32 0.5, %v2419_v11 }
 0x6b8   :  { %v2421_v57 = vsub.f32 1.5, %v2420_v51 }
 0x6ba   :  { %v2422_v21 = vmul.f32 %v3034_v17, %v2421_v57 }
 0x6bc   :  { %v2426_v23 = vsel %vm2425_vm15, %v3034_v17, %v2422_v21 }
 0x6bd   :  { %v2427_v45 = vmul.f32 %v2426_v23, %v2398_v27  ;;  %v2428_v22 = vmul.f32 %v2426_v23, %v2399_v1  ;;  %v2429_v24 = vmul.f32 %v2426_v23, %v2400_v48  ;;  %v2430_v59 = vmul.f32 %v2426_v23, %v2401_v36 }
 0x6bf   :  { %v2455_v25 = vmul.f32 %v2438_v32, %v2427_v45  ;;  %v2456_v20 = vmul.f32 %v2443_v28, %v2428_v22  ;;  %v2457_v54 = vmul.f32 %v2448_v5, %v2429_v24  ;;  %v2458_v12 = vmul.f32 %v2453_v26, %v2430_v59 }
 0x6c1   :  { %v2483_v46 = vadd.f32 %v2466_v37, %v2455_v25  ;;  %v2484_v43 = vadd.f32 %v2471_v49, %v2456_v20  ;;  %v2485_v13 = vadd.f32 %v2476_v52, %v2457_v54  ;;  %v2486_v39 = vadd.f32 %v2481_v35, %v2458_v12 }
 0x6c3   :  { %2487 = vst [vmem:[#allocation5] sm:$0xff] %v2483_v46 }
 0x6c4   :  { %2488 = vst [vmem:[#allocation5 + $0x8] sm:$0xff] %v2484_v43 }
 0x6c5   :  { %2489 = vst [vmem:[#allocation5 + $0x10] sm:$0xff] %v2485_v13 }
 0x6c6   :  { %2490 = vst [vmem:[#allocation5 + $0x18] sm:$0xff] %v2486_v39 }
 0x6c7   :  { %2503 = dma.vmem_to_hbm [thread:$0]  %s2496_s25, 512, %s2498_s27, [#allocation4], %s3113_s29, %s3113_s29, %s3114_s30  }
 0x6c8   :  { %3110 = dma.done.wait [#allocation4], 512  }
 0x6c9   :  { %3111 = vsyncadd [#allocation4], 4294966784 }
 0x6ca   :  { %2508 = vsyncpa [#allocation3], 1 }
 0x6cb   :  { %2509 = vsyncpa [#allocation4], 1 }

</bundles_post_ra>
